<compile_context>
chip_gen: v7x
topology: tpu7x:2x2x1
jax: 0.10.0
libtpu: 0.0.40
codegen_flags: <defaults>
</compile_context>

<pallas_src>
import jax
import jax.numpy as jnp
from jax import lax
from jax.experimental import pallas as pl
from jax.experimental.pallas import tpu as pltpu


# ----------------------------- Pallas kernel ------------------------------- #
def _bilstm_rec_kernel(gin_ref, mf_ref, mb_ref, whh_ref, out_ref,
                       mask2, h_st, c_st):
    """Serial bidirectional LSTM recurrence.

    gin_ref : (T, B, 8Hp) bf16  precomputed input gates, columns ordered
              [i_f, i_b, f_f, f_b, g_f, g_b, o_f, o_b]; bwd rows time-reversed.
    mf_ref  : (T, B, 1)  f32    forward mask.
    mb_ref  : (T, B, 1)  f32    backward mask (already time-reversed).
    whh_ref : (2Hp, 8Hp) bf16   block-diagonal recurrent weights (fwd rows hit
              fwd gate columns only, bwd rows hit bwd gate columns only).
    out_ref : (T, B, 2Hp) bf16  out[t, :, :Hp] = h_fwd[t],
                                out[t, :, Hp:] = h_bwd[T-1-t].
    mask2   : (T, B, 2Hp) f32   scratch, combined per-step mask (built once).
    h_st/c_st : (B, 2Hp) f32    state, lanes [fwd | bwd].
    """
    T, B, _ = gin_ref.shape
    Hp2 = h_st.shape[-1]            # 2 * Hp
    Hp = Hp2 // 2

    # ---- prologue: expand the per-step masks once (no per-step concat) ----
    mask2[:, :, :Hp] = jnp.broadcast_to(mf_ref[...], (T, B, Hp))
    mask2[:, :, Hp:] = jnp.broadcast_to(mb_ref[...], (T, B, Hp))
    h_st[...] = jnp.zeros_like(h_st)
    c_st[...] = jnp.zeros_like(c_st)

    whh = whh_ref[...]              # (2Hp, 8Hp) bf16, resident across steps
    # TODO(synk): keep whh in MXU weight registers (matmul_push_rhs) instead
    #             of re-streaming it through the systolic array every step.

    def step(t, carry):
        # Single fused recurrent matmul for both directions (block-diagonal).
        rec = jnp.dot(h_st[...].astype(whh.dtype), whh,
                      preferred_element_type=jnp.float32)          # (B, 8Hp)
        gates = rec + gin_ref[t]                                   # f32 + bf16

        i_g = jax.nn.sigmoid(gates[:, 0 * Hp2:1 * Hp2])            # (B, 2Hp)
        f_g = jax.nn.sigmoid(gates[:, 1 * Hp2:2 * Hp2])
        g_g = jnp.tanh(gates[:, 2 * Hp2:3 * Hp2])
        o_g = jax.nn.sigmoid(gates[:, 3 * Hp2:4 * Hp2])

        # Masked (padded) steps: mask zeroes c, hence tanh(c)=0, hence h=0 —
        # no second mask multiply needed for h.
        c_new = (f_g * c_st[...] + i_g * g_g) * mask2[t]
        h_new = o_g * jnp.tanh(c_new)
        c_st[...] = c_new
        h_st[...] = h_new

        out_ref[t] = h_new.astype(out_ref.dtype)   # one lane-dense store/step
        return carry

    unroll = True if T <= 16 else 4
    lax.fori_loop(0, T, step, 0, unroll=unroll)


# --------------------------- wrapper / plumbing ----------------------------- #
def _round_up(x, m):
    return (x + m - 1) // m * m


def _pad_gate_cols(w, H, Hp):
    """(K, 4H) -> (K, 4*Hp): zero-pad each of the 4 gate blocks from H to Hp."""
    K = w.shape[0]
    w4 = w.reshape(K, 4, H)
    if Hp != H:
        w4 = jnp.pad(w4, ((0, 0), (0, 0), (0, Hp - H)))
    return w4.reshape(K, 4 * Hp)


def _pad_rows(w, Kp):
    K = w.shape[0]
    return w if K == Kp else jnp.pad(w, ((0, Kp - K), (0, 0)))


def _block_diag_whh(whh_f, whh_b, H, Hp):
    """Build the (2Hp, 8Hp) block-diagonal recurrent weight with interleaved
    gate columns [i_f,i_b,f_f,f_b,g_f,g_b,o_f,o_b]."""
    wf = _pad_gate_cols(whh_f, H, Hp).reshape(H, 4, Hp)
    wb = _pad_gate_cols(whh_b, H, Hp).reshape(H, 4, Hp)
    if Hp != H:
        wf = jnp.pad(wf, ((0, Hp - H), (0, 0), (0, 0)))
        wb = jnp.pad(wb, ((0, Hp - H), (0, 0), (0, 0)))
    z = jnp.zeros_like(wf)
    top = jnp.stack([wf, z], axis=2)        # fwd rows -> fwd gate columns
    bot = jnp.stack([z, wb], axis=2)        # bwd rows -> bwd gate columns
    return jnp.concatenate([top, bot], axis=0).reshape(2 * Hp, 8 * Hp)


def _input_gates(parts, bias, H, Hp):
    """Sum of XLA bf16 einsums (MXU-tiled by XLA) + bias -> (T, B, 4Hp) f32.
    parts: list of (x (T,B,K), w (K,4H)) pairs."""
    acc = None
    for x, w in parts:
        wp = _pad_gate_cols(w, H, Hp).astype(jnp.bfloat16)
        term = jnp.einsum("tbk,kg->tbg", x.astype(jnp.bfloat16), wp,
                          preferred_element_type=jnp.float32)
        acc = term if acc is None else acc + term
    return acc + _pad_gate_cols(bias, H, Hp)


def _interleave_gates(gf, gb, Hp):
    """(T,B,4Hp) x2 -> (T,B,8Hp) with columns [i_f,i_b,f_f,f_b,g_f,g_b,o_f,o_b]."""
    T, B = gf.shape[:2]
    return jnp.stack([gf.reshape(T, B, 4, Hp),
                      gb.reshape(T, B, 4, Hp)], axis=3).reshape(T, B, 8 * Hp)


def _vmem_limit_bytes(need_bytes):
    """Right-size the VMEM limit: footprint + headroom, capped per generation."""
    try:
        cap = int(getattr(pltpu.get_tpu_info(), "vmem_capacity_bytes", 64 << 20))
    except Exception:
        cap = 64 << 20
    want = int(need_bytes) + (8 << 20)
    return int(max(16 << 20, min(want, (cap * 3) // 4)))


def _run_rec_kernel(gin, mask_f, mask_b, whh_bd, Hp):
    T, Bp, _ = gin.shape
    Hp2 = 2 * Hp

    out_bytes = T * Bp * Hp2 * 2
    vmem_need = (2 * (gin.size * 2 + whh_bd.size * 2 + out_bytes
                      + (mask_f.size + mask_b.size) * 4)        # double-buffered
                 + T * Bp * Hp2 * 4 + 2 * Bp * Hp2 * 4)         # scratch
    flops = int(2 * T * Bp * Hp2 * 4 * Hp2 + 12 * T * Bp * Hp2)
    trans = int(5 * T * Bp * Hp2)
    bytes_accessed = int(gin.size * 2 + whh_bd.size * 2 + out_bytes
                         + (mask_f.size + mask_b.size) * 4)

    return pl.pallas_call(
        _bilstm_rec_kernel,
        out_shape=jax.ShapeDtypeStruct((T, Bp, Hp2), jnp.bfloat16),
        scratch_shapes=[
            pltpu.VMEM((T, Bp, Hp2), jnp.float32),   # combined per-step mask
            pltpu.VMEM((Bp, Hp2), jnp.float32),      # h state [fwd | bwd] lanes
            pltpu.VMEM((Bp, Hp2), jnp.float32),      # c state
        ],
        compiler_params=pltpu.CompilerParams(
            vmem_limit_bytes=_vmem_limit_bytes(vmem_need)),
        cost_estimate=pl.CostEstimate(flops=flops, transcendentals=trans,
                                      bytes_accessed=bytes_accessed),
    )(gin, mask_f, mask_b, whh_bd)


def _bilstm_layer_apply(parts_f, parts_b, layer_p, mask_f, mask_b, H, Hp):
    """parts_f: (input, weight) pairs for the fwd direction (time-aligned).
       parts_b: (input, weight) pairs for the bwd direction with inputs already
       time-reversed, so gin_b comes out in the kernel's storage order."""
    gin_f = _input_gates(parts_f, layer_p["b_f"], H, Hp)
    gin_b = _input_gates(parts_b, layer_p["b_b"], H, Hp)
    gin = _interleave_gates(gin_f, gin_b, Hp).astype(jnp.bfloat16)
    whh_bd = _block_diag_whh(layer_p["whh_f"], layer_p["whh_b"],
                             H, Hp).astype(jnp.bfloat16)
    return _run_rec_kernel(gin, mask_f, mask_b, whh_bd, Hp)


def init_word_encoder_params(key, input_size, hidden_size, num_layers):
    """Gate order (i, f, g, o); b = b_ih + b_hh folded per direction."""
    params = []
    for layer in range(num_layers):
        d_in = input_size if layer == 0 else 2 * hidden_size
        layer_p = {}
        for direction in ("f", "b"):
            key, k1, k2, k3 = jax.random.split(key, 4)
            layer_p[f"wih_{direction}"] = (
                0.1 * jax.random.normal(k1, (d_in, 4 * hidden_size), jnp.float32))
            layer_p[f"whh_{direction}"] = (
                0.1 * jax.random.normal(k2, (hidden_size, 4 * hidden_size), jnp.float32))
            layer_p[f"b_{direction}"] = (
                0.1 * jax.random.normal(k3, (1, 4 * hidden_size), jnp.float32))
        params.append(layer_p)
    return params


def word_encoder_forward(batch_inputs, batch_masks, params, hidden_size):
    """batch_inputs: (B, T, D) f32, batch_masks: (B, T) f32.
    Returns hiddens of shape (T, B, 2*H) (eval mode, no dropout)."""
    B, T, D = batch_inputs.shape
    H = hidden_size
    Hp = _round_up(H, 128)      # lane-dense gate slices & output stores
    Bp = _round_up(B, 8)        # sublane-aligned state / matmul rows

    x = jnp.transpose(batch_inputs, (1, 0, 2)).astype(jnp.float32)   # (T, B, D)
    m = jnp.transpose(batch_masks, (1, 0))[:, :, None].astype(jnp.float32)
    if Bp != B:
        x = jnp.pad(x, ((0, 0), (0, Bp - B), (0, 0)))
        m = jnp.pad(m, ((0, 0), (0, Bp - B), (0, 0)))   # padded rows masked out
    mask_f = m
    mask_b = jnp.flip(m, axis=0)

    # ---- layer 0: both directions project the raw features ----
    p0 = params[0]
    out = _bilstm_layer_apply(
        parts_f=[(x, p0["wih_f"])],
        parts_b=[(jnp.flip(x, axis=0), p0["wih_b"])],
        layer_p=p0, mask_f=mask_f, mask_b=mask_b, H=H, Hp=Hp)

    # ---- layers 1..L-1: consume fwd/bwd halves directly (no (T,B,2H) concat) ----
    for p in params[1:]:
        h_f = out[:, :, :Hp]               # fwd hidden at time t       (bf16)
        h_b_rev = out[:, :, Hp:]           # bwd hidden at time T-1-t, stored @ t
        h_b = jnp.flip(h_b_rev, axis=0)    # bwd hidden at time t
        h_f_rev = jnp.flip(h_f, axis=0)
        wf_fh = _pad_rows(p["wih_f"][:H], Hp)
        wf_bh = _pad_rows(p["wih_f"][H:], Hp)
        wb_fh = _pad_rows(p["wih_b"][:H], Hp)
        wb_bh = _pad_rows(p["wih_b"][H:], Hp)
        out = _bilstm_layer_apply(
            parts_f=[(h_f, wf_fh), (h_b, wf_bh)],
            parts_b=[(h_f_rev, wb_fh), (h_b_rev, wb_bh)],
            layer_p=p, mask_f=mask_f, mask_b=mask_b, H=H, Hp=Hp)

    h_f = out[:, :B, :H].astype(jnp.float32)
    h_b = jnp.flip(out[:, :B, Hp:Hp + H], axis=0).astype(jnp.float32)
    return jnp.concatenate([h_f, h_b], axis=-1)                      # (T, B, 2H)


# ----------------------- pure-JAX reference for sanity ----------------------- #
def _ref_layer(x_tm, mask_tm, p, H):
    T, B, _ = x_tm.shape

    def run_dir(wih, whh, b, reverse):
        def cell(carry, inp):
            h, c = carry
            x_t, m_t = inp
            g = x_t @ wih + h @ whh + b
            i = jax.nn.sigmoid(g[:, 0 * H:1 * H])
            f = jax.nn.sigmoid(g[:, 1 * H:2 * H])
            gg = jnp.tanh(g[:, 2 * H:3 * H])
            o = jax.nn.sigmoid(g[:, 3 * H:4 * H])
            c = (f * c + i * gg) * m_t
            h = (o * jnp.tanh(c)) * m_t
            return (h, c), h
        init = (jnp.zeros((B, H), jnp.float32), jnp.zeros((B, H), jnp.float32))
        _, hs = lax.scan(cell, init, (x_tm, mask_tm), reverse=reverse)
        return hs

    hf = run_dir(p["wih_f"], p["whh_f"], p["b_f"], reverse=False)
    hb = run_dir(p["wih_b"], p["whh_b"], p["b_b"], reverse=True)
    return jnp.concatenate([hf, hb], axis=-1)


def _ref_forward(batch_inputs, batch_masks, params, H):
    h = jnp.transpose(batch_inputs, (1, 0, 2))
    m = jnp.transpose(batch_masks, (1, 0))[:, :, None]
    for p in params:
        h = _ref_layer(h, m, p, H)
    return h


if __name__ == "__main__":
    # Small shapes consistent with WordEncoder: batch=2, seq=8, input_size=32,
    # word_hidden_size=32, word_num_layers=2.
    B, T, D, H, L = 2, 8, 32, 32, 2

    key = jax.random.PRNGKey(0)
    key, kx = jax.random.split(key)
    batch_inputs = jax.random.normal(kx, (B, T, D), jnp.float32)

    # masks: first sequence full length, second padded after 5 tokens.
    lengths = jnp.array([T, 5], jnp.int32)
    batch_masks = (jnp.arange(T)[None, :] < lengths[:, None]).astype(jnp.float32)

    params = init_word_encoder_params(key, D, H, L)

    hiddens = word_encoder_forward(batch_inputs, batch_masks, params, H)
    hiddens = jax.block_until_ready(hiddens)

    ref = jax.block_until_ready(_ref_forward(batch_inputs, batch_masks, params, H))
    assert hiddens.shape == (T, B, 2 * H)
    # bf16 weights / input gates / inter-layer activations (f32 state & accum)
    # -> loosened tolerance vs. the pure-f32 reference.
    assert jnp.allclose(hiddens, ref, atol=3e-2, rtol=3e-2), (
        float(jnp.max(jnp.abs(hiddens - ref))))

    print("KERNEL_OK")
</pallas_src>

<mosaic_0001>
module attributes {stable_mosaic.version = 11 : i64} {
  func.func @_bilstm_rec_kernel(%arg0: memref<8x8x1024xbf16, #tpu.memory_space<vmem>>, %arg1: memref<8x8x1xf32, #tpu.memory_space<vmem>>, %arg2: memref<8x8x1xf32, #tpu.memory_space<vmem>>, %arg3: memref<256x1024xbf16, #tpu.memory_space<vmem>>, %arg4: memref<8x8x256xbf16, #tpu.memory_space<vmem>>, %arg5: memref<8x8x256xf32, #tpu.memory_space<vmem>>, %arg6: memref<8x256xf32, #tpu.memory_space<vmem>>, %arg7: memref<8x256xf32, #tpu.memory_space<vmem>>) attributes {dimension_semantics = [], scalar_prefetch = 0 : i64, scratch_operands = 3 : i64, tpu.core_type = #tpu.core_type<tc>} {
    %c0 = arith.constant 0 : index
    %c0_0 = arith.constant 0 : index
    %c0_1 = arith.constant 0 : index
    %0 = vector.load %arg1[%c0, %c0_0, %c0_1] : memref<8x8x1xf32, #tpu.memory_space<vmem>>, vector<8x8x1xf32>
    %1 = vector.shape_cast %0 : vector<8x8x1xf32> to vector<8x8x1xf32>
    %2 = vector.broadcast %1 : vector<8x8x1xf32> to vector<8x8x128xf32>
    %c0_2 = arith.constant 0 : index
    %c0_3 = arith.constant 0 : index
    %c0_4 = arith.constant 0 : index
    %3 = vector.load %arg5[%c0_2, %c0_3, %c0_4] : memref<8x8x256xf32, #tpu.memory_space<vmem>>, vector<8x8x128xf32>
    tpu.vector_store %arg5[%c0_2, %c0_3, %c0_4], %2 {strides = array<i32>} : memref<8x8x256xf32, #tpu.memory_space<vmem>>, vector<8x8x128xf32>,
    %c0_5 = arith.constant 0 : index
    %c0_6 = arith.constant 0 : index
    %c0_7 = arith.constant 0 : index
    %4 = vector.load %arg2[%c0_5, %c0_6, %c0_7] : memref<8x8x1xf32, #tpu.memory_space<vmem>>, vector<8x8x1xf32>
    %5 = vector.shape_cast %4 : vector<8x8x1xf32> to vector<8x8x1xf32>
    %6 = vector.broadcast %5 : vector<8x8x1xf32> to vector<8x8x128xf32>
    %c0_8 = arith.constant 0 : index
    %c0_9 = arith.constant 0 : index
    %c128 = arith.constant 128 : index
    %7 = vector.load %arg5[%c0_8, %c0_9, %c128] : memref<8x8x256xf32, #tpu.memory_space<vmem>>, vector<8x8x128xf32>
    tpu.vector_store %arg5[%c0_8, %c0_9, %c128], %6 {strides = array<i32>} : memref<8x8x256xf32, #tpu.memory_space<vmem>>, vector<8x8x128xf32>,
    %cst = arith.constant 0.000000e+00 : f32
    %8 = vector.broadcast %cst : f32 to vector<8x256xf32>
    %c0_10 = arith.constant 0 : index
    %c0_11 = arith.constant 0 : index
    %9 = vector.load %arg6[%c0_10, %c0_11] : memref<8x256xf32, #tpu.memory_space<vmem>>, vector<8x256xf32>
    tpu.vector_store %arg6[%c0_10, %c0_11], %8 {strides = array<i32>} : memref<8x256xf32, #tpu.memory_space<vmem>>, vector<8x256xf32>,
    %cst_12 = arith.constant 0.000000e+00 : f32
    %10 = vector.broadcast %cst_12 : f32 to vector<8x256xf32>
    %c0_13 = arith.constant 0 : index
    %c0_14 = arith.constant 0 : index
    %11 = vector.load %arg7[%c0_13, %c0_14] : memref<8x256xf32, #tpu.memory_space<vmem>>, vector<8x256xf32>
    tpu.vector_store %arg7[%c0_13, %c0_14], %10 {strides = array<i32>} : memref<8x256xf32, #tpu.memory_space<vmem>>, vector<8x256xf32>,
    %c0_15 = arith.constant 0 : index
    %c0_16 = arith.constant 0 : index
    %12 = vector.load %arg3[%c0_15, %c0_16] : memref<256x1024xbf16, #tpu.memory_space<vmem>>, vector<256x1024xbf16>
    %c0_i32 = arith.constant 0 : i32
    %c0_17 = arith.constant 0 : index
    %c0_18 = arith.constant 0 : index
    %13 = vector.load %arg6[%c0_17, %c0_18] : memref<8x256xf32, #tpu.memory_space<vmem>>, vector<8x256xf32>
    %14 = arith.truncf %13 : vector<8x256xf32> to vector<8x256xbf16>
    %cst_19 = arith.constant dense<0.000000e+00> : vector<8x1024xf32>
    %15 = tpu.matmul %14, %12, %cst_19 {dimension_numbers = #tpu.dot_dimension_numbers<[1], [0], [0], [1], [0, 0, 1, 1], [], []>} : vector<8x256xbf16>, vector<256x1024xbf16>, vector<8x1024xf32> -> vector<8x1024xf32>
    %16 = arith.index_cast %c0_i32 : i32 to index
    %c0_20 = arith.constant 0 : index
    %c0_21 = arith.constant 0 : index
    %17 = vector.load %arg0[%16, %c0_20, %c0_21] : memref<8x8x1024xbf16, #tpu.memory_space<vmem>>, vector<1x8x1024xbf16>
    %18 = vector.shape_cast %17 : vector<1x8x1024xbf16> to vector<8x1024xbf16>
    %19 = arith.extf %18 : vector<8x1024xbf16> to vector<8x1024xf32>
    %20 = arith.addf %15, %19 : vector<8x1024xf32>
    %21 = vector.extract_strided_slice %20 {offsets = [0, 0], sizes = [8, 256], strides = [1, 1]} : vector<8x1024xf32> to vector<8x256xf32>
    %22 = arith.negf %21 : vector<8x256xf32>
    %23 = math.exp %22 : vector<8x256xf32>
    %cst_22 = arith.constant 1.000000e+00 : f32
    %24 = vector.broadcast %cst_22 : f32 to vector<8x256xf32>
    %25 = arith.addf %24, %23 : vector<8x256xf32>
    %26 = arith.divf %24, %25 : vector<8x256xf32>
    %27 = vector.extract_strided_slice %20 {offsets = [0, 256], sizes = [8, 256], strides = [1, 1]} : vector<8x1024xf32> to vector<8x256xf32>
    %28 = arith.negf %27 : vector<8x256xf32>
    %29 = math.exp %28 : vector<8x256xf32>
    %cst_23 = arith.constant 1.000000e+00 : f32
    %30 = vector.broadcast %cst_23 : f32 to vector<8x256xf32>
    %31 = arith.addf %30, %29 : vector<8x256xf32>
    %32 = arith.divf %30, %31 : vector<8x256xf32>
    %33 = vector.extract_strided_slice %20 {offsets = [0, 512], sizes = [8, 256], strides = [1, 1]} : vector<8x1024xf32> to vector<8x256xf32>
    %34 = math.tanh %33 : vector<8x256xf32>
    %35 = vector.extract_strided_slice %20 {offsets = [0, 768], sizes = [8, 256], strides = [1, 1]} : vector<8x1024xf32> to vector<8x256xf32>
    %36 = arith.negf %35 : vector<8x256xf32>
    %37 = math.exp %36 : vector<8x256xf32>
    %cst_24 = arith.constant 1.000000e+00 : f32
    %38 = vector.broadcast %cst_24 : f32 to vector<8x256xf32>
    %39 = arith.addf %38, %37 : vector<8x256xf32>
    %40 = arith.divf %38, %39 : vector<8x256xf32>
    %c0_25 = arith.constant 0 : index
    %c0_26 = arith.constant 0 : index
    %41 = vector.load %arg7[%c0_25, %c0_26] : memref<8x256xf32, #tpu.memory_space<vmem>>, vector<8x256xf32>
    %42 = arith.mulf %32, %41 : vector<8x256xf32>
    %43 = arith.mulf %26, %34 : vector<8x256xf32>
    %44 = arith.addf %42, %43 : vector<8x256xf32>
    %45 = arith.index_cast %c0_i32 : i32 to index
    %c0_27 = arith.constant 0 : index
    %c0_28 = arith.constant 0 : index
    %46 = vector.load %arg5[%45, %c0_27, %c0_28] : memref<8x8x256xf32, #tpu.memory_space<vmem>>, vector<1x8x256xf32>
    %47 = vector.shape_cast %46 : vector<1x8x256xf32> to vector<8x256xf32>
    %48 = arith.mulf %44, %47 : vector<8x256xf32>
    %49 = math.tanh %48 : vector<8x256xf32>
    %50 = arith.mulf %40, %49 : vector<8x256xf32>
    %c0_29 = arith.constant 0 : index
    %c0_30 = arith.constant 0 : index
    %51 = vector.load %arg7[%c0_29, %c0_30] : memref<8x256xf32, #tpu.memory_space<vmem>>, vector<8x256xf32>
    tpu.vector_store %arg7[%c0_29, %c0_30], %48 {strides = array<i32>} : memref<8x256xf32, #tpu.memory_space<vmem>>, vector<8x256xf32>,
    %c0_31 = arith.constant 0 : index
    %c0_32 = arith.constant 0 : index
    %52 = vector.load %arg6[%c0_31, %c0_32] : memref<8x256xf32, #tpu.memory_space<vmem>>, vector<8x256xf32>
    tpu.vector_store %arg6[%c0_31, %c0_32], %50 {strides = array<i32>} : memref<8x256xf32, #tpu.memory_space<vmem>>, vector<8x256xf32>,
    %53 = arith.truncf %50 : vector<8x256xf32> to vector<8x256xbf16>
    %54 = arith.index_cast %c0_i32 : i32 to index
    %c0_33 = arith.constant 0 : index
    %c0_34 = arith.constant 0 : index
    %55 = vector.load %arg4[%54, %c0_33, %c0_34] : memref<8x8x256xbf16, #tpu.memory_space<vmem>>, vector<1x8x256xbf16>
    %56 = vector.shape_cast %55 : vector<1x8x256xbf16> to vector<8x256xbf16>
    %57 = vector.shape_cast %53 : vector<8x256xbf16> to vector<1x8x256xbf16>
    tpu.vector_store %arg4[%54, %c0_33, %c0_34], %57 {strides = array<i32>} : memref<8x8x256xbf16, #tpu.memory_space<vmem>>, vector<1x8x256xbf16>,
    %c1_i32 = arith.constant 1 : i32
    %c0_35 = arith.constant 0 : index
    %c0_36 = arith.constant 0 : index
    %58 = vector.load %arg6[%c0_35, %c0_36] : memref<8x256xf32, #tpu.memory_space<vmem>>, vector<8x256xf32>
    %59 = arith.truncf %58 : vector<8x256xf32> to vector<8x256xbf16>
    %cst_37 = arith.constant dense<0.000000e+00> : vector<8x1024xf32>
    %60 = tpu.matmul %59, %12, %cst_37 {dimension_numbers = #tpu.dot_dimension_numbers<[1], [0], [0], [1], [0, 0, 1, 1], [], []>} : vector<8x256xbf16>, vector<256x1024xbf16>, vector<8x1024xf32> -> vector<8x1024xf32>
    %61 = arith.index_cast %c1_i32 : i32 to index
    %c0_38 = arith.constant 0 : index
    %c0_39 = arith.constant 0 : index
    %62 = vector.load %arg0[%61, %c0_38, %c0_39] : memref<8x8x1024xbf16, #tpu.memory_space<vmem>>, vector<1x8x1024xbf16>
    %63 = vector.shape_cast %62 : vector<1x8x1024xbf16> to vector<8x1024xbf16>
    %64 = arith.extf %63 : vector<8x1024xbf16> to vector<8x1024xf32>
    %65 = arith.addf %60, %64 : vector<8x1024xf32>
    %66 = vector.extract_strided_slice %65 {offsets = [0, 0], sizes = [8, 256], strides = [1, 1]} : vector<8x1024xf32> to vector<8x256xf32>
    %67 = arith.negf %66 : vector<8x256xf32>
    %68 = math.exp %67 : vector<8x256xf32>
    %cst_40 = arith.constant 1.000000e+00 : f32
    %69 = vector.broadcast %cst_40 : f32 to vector<8x256xf32>
    %70 = arith.addf %69, %68 : vector<8x256xf32>
    %71 = arith.divf %69, %70 : vector<8x256xf32>
    %72 = vector.extract_strided_slice %65 {offsets = [0, 256], sizes = [8, 256], strides = [1, 1]} : vector<8x1024xf32> to vector<8x256xf32>
    %73 = arith.negf %72 : vector<8x256xf32>
    %74 = math.exp %73 : vector<8x256xf32>
    %cst_41 = arith.constant 1.000000e+00 : f32
    %75 = vector.broadcast %cst_41 : f32 to vector<8x256xf32>
    %76 = arith.addf %75, %74 : vector<8x256xf32>
    %77 = arith.divf %75, %76 : vector<8x256xf32>
    %78 = vector.extract_strided_slice %65 {offsets = [0, 512], sizes = [8, 256], strides = [1, 1]} : vector<8x1024xf32> to vector<8x256xf32>
    %79 = math.tanh %78 : vector<8x256xf32>
    %80 = vector.extract_strided_slice %65 {offsets = [0, 768], sizes = [8, 256], strides = [1, 1]} : vector<8x1024xf32> to vector<8x256xf32>
    %81 = arith.negf %80 : vector<8x256xf32>
    %82 = math.exp %81 : vector<8x256xf32>
    %cst_42 = arith.constant 1.000000e+00 : f32
    %83 = vector.broadcast %cst_42 : f32 to vector<8x256xf32>
    %84 = arith.addf %83, %82 : vector<8x256xf32>
    %85 = arith.divf %83, %84 : vector<8x256xf32>
    %c0_43 = arith.constant 0 : index
    %c0_44 = arith.constant 0 : index
    %86 = vector.load %arg7[%c0_43, %c0_44] : memref<8x256xf32, #tpu.memory_space<vmem>>, vector<8x256xf32>
    %87 = arith.mulf %77, %86 : vector<8x256xf32>
    %88 = arith.mulf %71, %79 : vector<8x256xf32>
    %89 = arith.addf %87, %88 : vector<8x256xf32>
    %90 = arith.index_cast %c1_i32 : i32 to index
    %c0_45 = arith.constant 0 : index
    %c0_46 = arith.constant 0 : index
    %91 = vector.load %arg5[%90, %c0_45, %c0_46] : memref<8x8x256xf32, #tpu.memory_space<vmem>>, vector<1x8x256xf32>
    %92 = vector.shape_cast %91 : vector<1x8x256xf32> to vector<8x256xf32>
    %93 = arith.mulf %89, %92 : vector<8x256xf32>
    %94 = math.tanh %93 : vector<8x256xf32>
    %95 = arith.mulf %85, %94 : vector<8x256xf32>
    %c0_47 = arith.constant 0 : index
    %c0_48 = arith.constant 0 : index
    %96 = vector.load %arg7[%c0_47, %c0_48] : memref<8x256xf32, #tpu.memory_space<vmem>>, vector<8x256xf32>
    tpu.vector_store %arg7[%c0_47, %c0_48], %93 {strides = array<i32>} : memref<8x256xf32, #tpu.memory_space<vmem>>, vector<8x256xf32>,
    %c0_49 = arith.constant 0 : index
    %c0_50 = arith.constant 0 : index
    %97 = vector.load %arg6[%c0_49, %c0_50] : memref<8x256xf32, #tpu.memory_space<vmem>>, vector<8x256xf32>
    tpu.vector_store %arg6[%c0_49, %c0_50], %95 {strides = array<i32>} : memref<8x256xf32, #tpu.memory_space<vmem>>, vector<8x256xf32>,
    %98 = arith.truncf %95 : vector<8x256xf32> to vector<8x256xbf16>
    %99 = arith.index_cast %c1_i32 : i32 to index
    %c0_51 = arith.constant 0 : index
    %c0_52 = arith.constant 0 : index
    %100 = vector.load %arg4[%99, %c0_51, %c0_52] : memref<8x8x256xbf16, #tpu.memory_space<vmem>>, vector<1x8x256xbf16>
    %101 = vector.shape_cast %100 : vector<1x8x256xbf16> to vector<8x256xbf16>
    %102 = vector.shape_cast %98 : vector<8x256xbf16> to vector<1x8x256xbf16>
    tpu.vector_store %arg4[%99, %c0_51, %c0_52], %102 {strides = array<i32>} : memref<8x8x256xbf16, #tpu.memory_space<vmem>>, vector<1x8x256xbf16>,
    %c2_i32 = arith.constant 2 : i32
    %c0_53 = arith.constant 0 : index
    %c0_54 = arith.constant 0 : index
    %103 = vector.load %arg6[%c0_53, %c0_54] : memref<8x256xf32, #tpu.memory_space<vmem>>, vector<8x256xf32>
    %104 = arith.truncf %103 : vector<8x256xf32> to vector<8x256xbf16>
    %cst_55 = arith.constant dense<0.000000e+00> : vector<8x1024xf32>
    %105 = tpu.matmul %104, %12, %cst_55 {dimension_numbers = #tpu.dot_dimension_numbers<[1], [0], [0], [1], [0, 0, 1, 1], [], []>} : vector<8x256xbf16>, vector<256x1024xbf16>, vector<8x1024xf32> -> vector<8x1024xf32>
    %106 = arith.index_cast %c2_i32 : i32 to index
    %c0_56 = arith.constant 0 : index
    %c0_57 = arith.constant 0 : index
    %107 = vector.load %arg0[%106, %c0_56, %c0_57] : memref<8x8x1024xbf16, #tpu.memory_space<vmem>>, vector<1x8x1024xbf16>
    %108 = vector.shape_cast %107 : vector<1x8x1024xbf16> to vector<8x1024xbf16>
    %109 = arith.extf %108 : vector<8x1024xbf16> to vector<8x1024xf32>
    %110 = arith.addf %105, %109 : vector<8x1024xf32>
    %111 = vector.extract_strided_slice %110 {offsets = [0, 0], sizes = [8, 256], strides = [1, 1]} : vector<8x1024xf32> to vector<8x256xf32>
    %112 = arith.negf %111 : vector<8x256xf32>
    %113 = math.exp %112 : vector<8x256xf32>
    %cst_58 = arith.constant 1.000000e+00 : f32
    %114 = vector.broadcast %cst_58 : f32 to vector<8x256xf32>
    %115 = arith.addf %114, %113 : vector<8x256xf32>
    %116 = arith.divf %114, %115 : vector<8x256xf32>
    %117 = vector.extract_strided_slice %110 {offsets = [0, 256], sizes = [8, 256], strides = [1, 1]} : vector<8x1024xf32> to vector<8x256xf32>
    %118 = arith.negf %117 : vector<8x256xf32>
    %119 = math.exp %118 : vector<8x256xf32>
    %cst_59 = arith.constant 1.000000e+00 : f32
    %120 = vector.broadcast %cst_59 : f32 to vector<8x256xf32>
    %121 = arith.addf %120, %119 : vector<8x256xf32>
    %122 = arith.divf %120, %121 : vector<8x256xf32>
    %123 = vector.extract_strided_slice %110 {offsets = [0, 512], sizes = [8, 256], strides = [1, 1]} : vector<8x1024xf32> to vector<8x256xf32>
    %124 = math.tanh %123 : vector<8x256xf32>
    %125 = vector.extract_strided_slice %110 {offsets = [0, 768], sizes = [8, 256], strides = [1, 1]} : vector<8x1024xf32> to vector<8x256xf32>
    %126 = arith.negf %125 : vector<8x256xf32>
    %127 = math.exp %126 : vector<8x256xf32>
    %cst_60 = arith.constant 1.000000e+00 : f32
    %128 = vector.broadcast %cst_60 : f32 to vector<8x256xf32>
    %129 = arith.addf %128, %127 : vector<8x256xf32>
    %130 = arith.divf %128, %129 : vector<8x256xf32>
    %c0_61 = arith.constant 0 : index
    %c0_62 = arith.constant 0 : index
    %131 = vector.load %arg7[%c0_61, %c0_62] : memref<8x256xf32, #tpu.memory_space<vmem>>, vector<8x256xf32>
    %132 = arith.mulf %122, %131 : vector<8x256xf32>
    %133 = arith.mulf %116, %124 : vector<8x256xf32>
    %134 = arith.addf %132, %133 : vector<8x256xf32>
    %135 = arith.index_cast %c2_i32 : i32 to index
    %c0_63 = arith.constant 0 : index
    %c0_64 = arith.constant 0 : index
    %136 = vector.load %arg5[%135, %c0_63, %c0_64] : memref<8x8x256xf32, #tpu.memory_space<vmem>>, vector<1x8x256xf32>
    %137 = vector.shape_cast %136 : vector<1x8x256xf32> to vector<8x256xf32>
    %138 = arith.mulf %134, %137 : vector<8x256xf32>
    %139 = math.tanh %138 : vector<8x256xf32>
    %140 = arith.mulf %130, %139 : vector<8x256xf32>
    %c0_65 = arith.constant 0 : index
    %c0_66 = arith.constant 0 : index
    %141 = vector.load %arg7[%c0_65, %c0_66] : memref<8x256xf32, #tpu.memory_space<vmem>>, vector<8x256xf32>
    tpu.vector_store %arg7[%c0_65, %c0_66], %138 {strides = array<i32>} : memref<8x256xf32, #tpu.memory_space<vmem>>, vector<8x256xf32>,
    %c0_67 = arith.constant 0 : index
    %c0_68 = arith.constant 0 : index
    %142 = vector.load %arg6[%c0_67, %c0_68] : memref<8x256xf32, #tpu.memory_space<vmem>>, vector<8x256xf32>
    tpu.vector_store %arg6[%c0_67, %c0_68], %140 {strides = array<i32>} : memref<8x256xf32, #tpu.memory_space<vmem>>, vector<8x256xf32>,
    %143 = arith.truncf %140 : vector<8x256xf32> to vector<8x256xbf16>
    %144 = arith.index_cast %c2_i32 : i32 to index
    %c0_69 = arith.constant 0 : index
    %c0_70 = arith.constant 0 : index
    %145 = vector.load %arg4[%144, %c0_69, %c0_70] : memref<8x8x256xbf16, #tpu.memory_space<vmem>>, vector<1x8x256xbf16>
    %146 = vector.shape_cast %145 : vector<1x8x256xbf16> to vector<8x256xbf16>
    %147 = vector.shape_cast %143 : vector<8x256xbf16> to vector<1x8x256xbf16>
    tpu.vector_store %arg4[%144, %c0_69, %c0_70], %147 {strides = array<i32>} : memref<8x8x256xbf16, #tpu.memory_space<vmem>>, vector<1x8x256xbf16>,
    %c3_i32 = arith.constant 3 : i32
    %c0_71 = arith.constant 0 : index
    %c0_72 = arith.constant 0 : index
    %148 = vector.load %arg6[%c0_71, %c0_72] : memref<8x256xf32, #tpu.memory_space<vmem>>, vector<8x256xf32>
    %149 = arith.truncf %148 : vector<8x256xf32> to vector<8x256xbf16>
    %cst_73 = arith.constant dense<0.000000e+00> : vector<8x1024xf32>
    %150 = tpu.matmul %149, %12, %cst_73 {dimension_numbers = #tpu.dot_dimension_numbers<[1], [0], [0], [1], [0, 0, 1, 1], [], []>} : vector<8x256xbf16>, vector<256x1024xbf16>, vector<8x1024xf32> -> vector<8x1024xf32>
    %151 = arith.index_cast %c3_i32 : i32 to index
    %c0_74 = arith.constant 0 : index
    %c0_75 = arith.constant 0 : index
    %152 = vector.load %arg0[%151, %c0_74, %c0_75] : memref<8x8x1024xbf16, #tpu.memory_space<vmem>>, vector<1x8x1024xbf16>
    %153 = vector.shape_cast %152 : vector<1x8x1024xbf16> to vector<8x1024xbf16>
    %154 = arith.extf %153 : vector<8x1024xbf16> to vector<8x1024xf32>
    %155 = arith.addf %150, %154 : vector<8x1024xf32>
    %156 = vector.extract_strided_slice %155 {offsets = [0, 0], sizes = [8, 256], strides = [1, 1]} : vector<8x1024xf32> to vector<8x256xf32>
    %157 = arith.negf %156 : vector<8x256xf32>
    %158 = math.exp %157 : vector<8x256xf32>
    %cst_76 = arith.constant 1.000000e+00 : f32
    %159 = vector.broadcast %cst_76 : f32 to vector<8x256xf32>
    %160 = arith.addf %159, %158 : vector<8x256xf32>
    %161 = arith.divf %159, %160 : vector<8x256xf32>
    %162 = vector.extract_strided_slice %155 {offsets = [0, 256], sizes = [8, 256], strides = [1, 1]} : vector<8x1024xf32> to vector<8x256xf32>
    %163 = arith.negf %162 : vector<8x256xf32>
    %164 = math.exp %163 : vector<8x256xf32>
    %cst_77 = arith.constant 1.000000e+00 : f32
    %165 = vector.broadcast %cst_77 : f32 to vector<8x256xf32>
    %166 = arith.addf %165, %164 : vector<8x256xf32>
    %167 = arith.divf %165, %166 : vector<8x256xf32>
    %168 = vector.extract_strided_slice %155 {offsets = [0, 512], sizes = [8, 256], strides = [1, 1]} : vector<8x1024xf32> to vector<8x256xf32>
    %169 = math.tanh %168 : vector<8x256xf32>
    %170 = vector.extract_strided_slice %155 {offsets = [0, 768], sizes = [8, 256], strides = [1, 1]} : vector<8x1024xf32> to vector<8x256xf32>
    %171 = arith.negf %170 : vector<8x256xf32>
    %172 = math.exp %171 : vector<8x256xf32>
    %cst_78 = arith.constant 1.000000e+00 : f32
    %173 = vector.broadcast %cst_78 : f32 to vector<8x256xf32>
    %174 = arith.addf %173, %172 : vector<8x256xf32>
    %175 = arith.divf %173, %174 : vector<8x256xf32>
    %c0_79 = arith.constant 0 : index
    %c0_80 = arith.constant 0 : index
    %176 = vector.load %arg7[%c0_79, %c0_80] : memref<8x256xf32, #tpu.memory_space<vmem>>, vector<8x256xf32>
    %177 = arith.mulf %167, %176 : vector<8x256xf32>
    %178 = arith.mulf %161, %169 : vector<8x256xf32>
    %179 = arith.addf %177, %178 : vector<8x256xf32>
    %180 = arith.index_cast %c3_i32 : i32 to index
    %c0_81 = arith.constant 0 : index
    %c0_82 = arith.constant 0 : index
    %181 = vector.load %arg5[%180, %c0_81, %c0_82] : memref<8x8x256xf32, #tpu.memory_space<vmem>>, vector<1x8x256xf32>
    %182 = vector.shape_cast %181 : vector<1x8x256xf32> to vector<8x256xf32>
    %183 = arith.mulf %179, %182 : vector<8x256xf32>
    %184 = math.tanh %183 : vector<8x256xf32>
    %185 = arith.mulf %175, %184 : vector<8x256xf32>
    %c0_83 = arith.constant 0 : index
    %c0_84 = arith.constant 0 : index
    %186 = vector.load %arg7[%c0_83, %c0_84] : memref<8x256xf32, #tpu.memory_space<vmem>>, vector<8x256xf32>
    tpu.vector_store %arg7[%c0_83, %c0_84], %183 {strides = array<i32>} : memref<8x256xf32, #tpu.memory_space<vmem>>, vector<8x256xf32>,
    %c0_85 = arith.constant 0 : index
    %c0_86 = arith.constant 0 : index
    %187 = vector.load %arg6[%c0_85, %c0_86] : memref<8x256xf32, #tpu.memory_space<vmem>>, vector<8x256xf32>
    tpu.vector_store %arg6[%c0_85, %c0_86], %185 {strides = array<i32>} : memref<8x256xf32, #tpu.memory_space<vmem>>, vector<8x256xf32>,
    %188 = arith.truncf %185 : vector<8x256xf32> to vector<8x256xbf16>
    %189 = arith.index_cast %c3_i32 : i32 to index
    %c0_87 = arith.constant 0 : index
    %c0_88 = arith.constant 0 : index
    %190 = vector.load %arg4[%189, %c0_87, %c0_88] : memref<8x8x256xbf16, #tpu.memory_space<vmem>>, vector<1x8x256xbf16>
    %191 = vector.shape_cast %190 : vector<1x8x256xbf16> to vector<8x256xbf16>
    %192 = vector.shape_cast %188 : vector<8x256xbf16> to vector<1x8x256xbf16>
    tpu.vector_store %arg4[%189, %c0_87, %c0_88], %192 {strides = array<i32>} : memref<8x8x256xbf16, #tpu.memory_space<vmem>>, vector<1x8x256xbf16>,
    %c4_i32 = arith.constant 4 : i32
    %c0_89 = arith.constant 0 : index
    %c0_90 = arith.constant 0 : index
    %193 = vector.load %arg6[%c0_89, %c0_90] : memref<8x256xf32, #tpu.memory_space<vmem>>, vector<8x256xf32>
    %194 = arith.truncf %193 : vector<8x256xf32> to vector<8x256xbf16>
    %cst_91 = arith.constant dense<0.000000e+00> : vector<8x1024xf32>
    %195 = tpu.matmul %194, %12, %cst_91 {dimension_numbers = #tpu.dot_dimension_numbers<[1], [0], [0], [1], [0, 0, 1, 1], [], []>} : vector<8x256xbf16>, vector<256x1024xbf16>, vector<8x1024xf32> -> vector<8x1024xf32>
    %196 = arith.index_cast %c4_i32 : i32 to index
    %c0_92 = arith.constant 0 : index
    %c0_93 = arith.constant 0 : index
    %197 = vector.load %arg0[%196, %c0_92, %c0_93] : memref<8x8x1024xbf16, #tpu.memory_space<vmem>>, vector<1x8x1024xbf16>
    %198 = vector.shape_cast %197 : vector<1x8x1024xbf16> to vector<8x1024xbf16>
    %199 = arith.extf %198 : vector<8x1024xbf16> to vector<8x1024xf32>
    %200 = arith.addf %195, %199 : vector<8x1024xf32>
    %201 = vector.extract_strided_slice %200 {offsets = [0, 0], sizes = [8, 256], strides = [1, 1]} : vector<8x1024xf32> to vector<8x256xf32>
    %202 = arith.negf %201 : vector<8x256xf32>
    %203 = math.exp %202 : vector<8x256xf32>
    %cst_94 = arith.constant 1.000000e+00 : f32
    %204 = vector.broadcast %cst_94 : f32 to vector<8x256xf32>
    %205 = arith.addf %204, %203 : vector<8x256xf32>
    %206 = arith.divf %204, %205 : vector<8x256xf32>
    %207 = vector.extract_strided_slice %200 {offsets = [0, 256], sizes = [8, 256], strides = [1, 1]} : vector<8x1024xf32> to vector<8x256xf32>
    %208 = arith.negf %207 : vector<8x256xf32>
    %209 = math.exp %208 : vector<8x256xf32>
    %cst_95 = arith.constant 1.000000e+00 : f32
    %210 = vector.broadcast %cst_95 : f32 to vector<8x256xf32>
    %211 = arith.addf %210, %209 : vector<8x256xf32>
    %212 = arith.divf %210, %211 : vector<8x256xf32>
    %213 = vector.extract_strided_slice %200 {offsets = [0, 512], sizes = [8, 256], strides = [1, 1]} : vector<8x1024xf32> to vector<8x256xf32>
    %214 = math.tanh %213 : vector<8x256xf32>
    %215 = vector.extract_strided_slice %200 {offsets = [0, 768], sizes = [8, 256], strides = [1, 1]} : vector<8x1024xf32> to vector<8x256xf32>
    %216 = arith.negf %215 : vector<8x256xf32>
    %217 = math.exp %216 : vector<8x256xf32>
    %cst_96 = arith.constant 1.000000e+00 : f32
    %218 = vector.broadcast %cst_96 : f32 to vector<8x256xf32>
    %219 = arith.addf %218, %217 : vector<8x256xf32>
    %220 = arith.divf %218, %219 : vector<8x256xf32>
    %c0_97 = arith.constant 0 : index
    %c0_98 = arith.constant 0 : index
    %221 = vector.load %arg7[%c0_97, %c0_98] : memref<8x256xf32, #tpu.memory_space<vmem>>, vector<8x256xf32>
    %222 = arith.mulf %212, %221 : vector<8x256xf32>
    %223 = arith.mulf %206, %214 : vector<8x256xf32>
    %224 = arith.addf %222, %223 : vector<8x256xf32>
    %225 = arith.index_cast %c4_i32 : i32 to index
    %c0_99 = arith.constant 0 : index
    %c0_100 = arith.constant 0 : index
    %226 = vector.load %arg5[%225, %c0_99, %c0_100] : memref<8x8x256xf32, #tpu.memory_space<vmem>>, vector<1x8x256xf32>
    %227 = vector.shape_cast %226 : vector<1x8x256xf32> to vector<8x256xf32>
    %228 = arith.mulf %224, %227 : vector<8x256xf32>
    %229 = math.tanh %228 : vector<8x256xf32>
    %230 = arith.mulf %220, %229 : vector<8x256xf32>
    %c0_101 = arith.constant 0 : index
    %c0_102 = arith.constant 0 : index
    %231 = vector.load %arg7[%c0_101, %c0_102] : memref<8x256xf32, #tpu.memory_space<vmem>>, vector<8x256xf32>
    tpu.vector_store %arg7[%c0_101, %c0_102], %228 {strides = array<i32>} : memref<8x256xf32, #tpu.memory_space<vmem>>, vector<8x256xf32>,
    %c0_103 = arith.constant 0 : index
    %c0_104 = arith.constant 0 : index
    %232 = vector.load %arg6[%c0_103, %c0_104] : memref<8x256xf32, #tpu.memory_space<vmem>>, vector<8x256xf32>
    tpu.vector_store %arg6[%c0_103, %c0_104], %230 {strides = array<i32>} : memref<8x256xf32, #tpu.memory_space<vmem>>, vector<8x256xf32>,
    %233 = arith.truncf %230 : vector<8x256xf32> to vector<8x256xbf16>
    %234 = arith.index_cast %c4_i32 : i32 to index
    %c0_105 = arith.constant 0 : index
    %c0_106 = arith.constant 0 : index
    %235 = vector.load %arg4[%234, %c0_105, %c0_106] : memref<8x8x256xbf16, #tpu.memory_space<vmem>>, vector<1x8x256xbf16>
    %236 = vector.shape_cast %235 : vector<1x8x256xbf16> to vector<8x256xbf16>
    %237 = vector.shape_cast %233 : vector<8x256xbf16> to vector<1x8x256xbf16>
    tpu.vector_store %arg4[%234, %c0_105, %c0_106], %237 {strides = array<i32>} : memref<8x8x256xbf16, #tpu.memory_space<vmem>>, vector<1x8x256xbf16>,
    %c5_i32 = arith.constant 5 : i32
    %c0_107 = arith.constant 0 : index
    %c0_108 = arith.constant 0 : index
    %238 = vector.load %arg6[%c0_107, %c0_108] : memref<8x256xf32, #tpu.memory_space<vmem>>, vector<8x256xf32>
    %239 = arith.truncf %238 : vector<8x256xf32> to vector<8x256xbf16>
    %cst_109 = arith.constant dense<0.000000e+00> : vector<8x1024xf32>
    %240 = tpu.matmul %239, %12, %cst_109 {dimension_numbers = #tpu.dot_dimension_numbers<[1], [0], [0], [1], [0, 0, 1, 1], [], []>} : vector<8x256xbf16>, vector<256x1024xbf16>, vector<8x1024xf32> -> vector<8x1024xf32>
    %241 = arith.index_cast %c5_i32 : i32 to index
    %c0_110 = arith.constant 0 : index
    %c0_111 = arith.constant 0 : index
    %242 = vector.load %arg0[%241, %c0_110, %c0_111] : memref<8x8x1024xbf16, #tpu.memory_space<vmem>>, vector<1x8x1024xbf16>
    %243 = vector.shape_cast %242 : vector<1x8x1024xbf16> to vector<8x1024xbf16>
    %244 = arith.extf %243 : vector<8x1024xbf16> to vector<8x1024xf32>
    %245 = arith.addf %240, %244 : vector<8x1024xf32>
    %246 = vector.extract_strided_slice %245 {offsets = [0, 0], sizes = [8, 256], strides = [1, 1]} : vector<8x1024xf32> to vector<8x256xf32>
    %247 = arith.negf %246 : vector<8x256xf32>
    %248 = math.exp %247 : vector<8x256xf32>
    %cst_112 = arith.constant 1.000000e+00 : f32
    %249 = vector.broadcast %cst_112 : f32 to vector<8x256xf32>
    %250 = arith.addf %249, %248 : vector<8x256xf32>
    %251 = arith.divf %249, %250 : vector<8x256xf32>
    %252 = vector.extract_strided_slice %245 {offsets = [0, 256], sizes = [8, 256], strides = [1, 1]} : vector<8x1024xf32> to vector<8x256xf32>
    %253 = arith.negf %252 : vector<8x256xf32>
    %254 = math.exp %253 : vector<8x256xf32>
    %cst_113 = arith.constant 1.000000e+00 : f32
    %255 = vector.broadcast %cst_113 : f32 to vector<8x256xf32>
    %256 = arith.addf %255, %254 : vector<8x256xf32>
    %257 = arith.divf %255, %256 : vector<8x256xf32>
    %258 = vector.extract_strided_slice %245 {offsets = [0, 512], sizes = [8, 256], strides = [1, 1]} : vector<8x1024xf32> to vector<8x256xf32>
    %259 = math.tanh %258 : vector<8x256xf32>
    %260 = vector.extract_strided_slice %245 {offsets = [0, 768], sizes = [8, 256], strides = [1, 1]} : vector<8x1024xf32> to vector<8x256xf32>
    %261 = arith.negf %260 : vector<8x256xf32>
    %262 = math.exp %261 : vector<8x256xf32>
    %cst_114 = arith.constant 1.000000e+00 : f32
    %263 = vector.broadcast %cst_114 : f32 to vector<8x256xf32>
    %264 = arith.addf %263, %262 : vector<8x256xf32>
    %265 = arith.divf %263, %264 : vector<8x256xf32>
    %c0_115 = arith.constant 0 : index
    %c0_116 = arith.constant 0 : index
    %266 = vector.load %arg7[%c0_115, %c0_116] : memref<8x256xf32, #tpu.memory_space<vmem>>, vector<8x256xf32>
    %267 = arith.mulf %257, %266 : vector<8x256xf32>
    %268 = arith.mulf %251, %259 : vector<8x256xf32>
    %269 = arith.addf %267, %268 : vector<8x256xf32>
    %270 = arith.index_cast %c5_i32 : i32 to index
    %c0_117 = arith.constant 0 : index
    %c0_118 = arith.constant 0 : index
    %271 = vector.load %arg5[%270, %c0_117, %c0_118] : memref<8x8x256xf32, #tpu.memory_space<vmem>>, vector<1x8x256xf32>
    %272 = vector.shape_cast %271 : vector<1x8x256xf32> to vector<8x256xf32>
    %273 = arith.mulf %269, %272 : vector<8x256xf32>
    %274 = math.tanh %273 : vector<8x256xf32>
    %275 = arith.mulf %265, %274 : vector<8x256xf32>
    %c0_119 = arith.constant 0 : index
    %c0_120 = arith.constant 0 : index
    %276 = vector.load %arg7[%c0_119, %c0_120] : memref<8x256xf32, #tpu.memory_space<vmem>>, vector<8x256xf32>
    tpu.vector_store %arg7[%c0_119, %c0_120], %273 {strides = array<i32>} : memref<8x256xf32, #tpu.memory_space<vmem>>, vector<8x256xf32>,
    %c0_121 = arith.constant 0 : index
    %c0_122 = arith.constant 0 : index
    %277 = vector.load %arg6[%c0_121, %c0_122] : memref<8x256xf32, #tpu.memory_space<vmem>>, vector<8x256xf32>
    tpu.vector_store %arg6[%c0_121, %c0_122], %275 {strides = array<i32>} : memref<8x256xf32, #tpu.memory_space<vmem>>, vector<8x256xf32>,
    %278 = arith.truncf %275 : vector<8x256xf32> to vector<8x256xbf16>
    %279 = arith.index_cast %c5_i32 : i32 to index
    %c0_123 = arith.constant 0 : index
    %c0_124 = arith.constant 0 : index
    %280 = vector.load %arg4[%279, %c0_123, %c0_124] : memref<8x8x256xbf16, #tpu.memory_space<vmem>>, vector<1x8x256xbf16>
    %281 = vector.shape_cast %280 : vector<1x8x256xbf16> to vector<8x256xbf16>
    %282 = vector.shape_cast %278 : vector<8x256xbf16> to vector<1x8x256xbf16>
    tpu.vector_store %arg4[%279, %c0_123, %c0_124], %282 {strides = array<i32>} : memref<8x8x256xbf16, #tpu.memory_space<vmem>>, vector<1x8x256xbf16>,
    %c6_i32 = arith.constant 6 : i32
    %c0_125 = arith.constant 0 : index
    %c0_126 = arith.constant 0 : index
    %283 = vector.load %arg6[%c0_125, %c0_126] : memref<8x256xf32, #tpu.memory_space<vmem>>, vector<8x256xf32>
    %284 = arith.truncf %283 : vector<8x256xf32> to vector<8x256xbf16>
    %cst_127 = arith.constant dense<0.000000e+00> : vector<8x1024xf32>
    %285 = tpu.matmul %284, %12, %cst_127 {dimension_numbers = #tpu.dot_dimension_numbers<[1], [0], [0], [1], [0, 0, 1, 1], [], []>} : vector<8x256xbf16>, vector<256x1024xbf16>, vector<8x1024xf32> -> vector<8x1024xf32>
    %286 = arith.index_cast %c6_i32 : i32 to index
    %c0_128 = arith.constant 0 : index
    %c0_129 = arith.constant 0 : index
    %287 = vector.load %arg0[%286, %c0_128, %c0_129] : memref<8x8x1024xbf16, #tpu.memory_space<vmem>>, vector<1x8x1024xbf16>
    %288 = vector.shape_cast %287 : vector<1x8x1024xbf16> to vector<8x1024xbf16>
    %289 = arith.extf %288 : vector<8x1024xbf16> to vector<8x1024xf32>
    %290 = arith.addf %285, %289 : vector<8x1024xf32>
    %291 = vector.extract_strided_slice %290 {offsets = [0, 0], sizes = [8, 256], strides = [1, 1]} : vector<8x1024xf32> to vector<8x256xf32>
    %292 = arith.negf %291 : vector<8x256xf32>
    %293 = math.exp %292 : vector<8x256xf32>
    %cst_130 = arith.constant 1.000000e+00 : f32
    %294 = vector.broadcast %cst_130 : f32 to vector<8x256xf32>
    %295 = arith.addf %294, %293 : vector<8x256xf32>
    %296 = arith.divf %294, %295 : vector<8x256xf32>
    %297 = vector.extract_strided_slice %290 {offsets = [0, 256], sizes = [8, 256], strides = [1, 1]} : vector<8x1024xf32> to vector<8x256xf32>
    %298 = arith.negf %297 : vector<8x256xf32>
    %299 = math.exp %298 : vector<8x256xf32>
    %cst_131 = arith.constant 1.000000e+00 : f32
    %300 = vector.broadcast %cst_131 : f32 to vector<8x256xf32>
    %301 = arith.addf %300, %299 : vector<8x256xf32>
    %302 = arith.divf %300, %301 : vector<8x256xf32>
    %303 = vector.extract_strided_slice %290 {offsets = [0, 512], sizes = [8, 256], strides = [1, 1]} : vector<8x1024xf32> to vector<8x256xf32>
    %304 = math.tanh %303 : vector<8x256xf32>
    %305 = vector.extract_strided_slice %290 {offsets = [0, 768], sizes = [8, 256], strides = [1, 1]} : vector<8x1024xf32> to vector<8x256xf32>
    %306 = arith.negf %305 : vector<8x256xf32>
    %307 = math.exp %306 : vector<8x256xf32>
    %cst_132 = arith.constant 1.000000e+00 : f32
    %308 = vector.broadcast %cst_132 : f32 to vector<8x256xf32>
    %309 = arith.addf %308, %307 : vector<8x256xf32>
    %310 = arith.divf %308, %309 : vector<8x256xf32>
    %c0_133 = arith.constant 0 : index
    %c0_134 = arith.constant 0 : index
    %311 = vector.load %arg7[%c0_133, %c0_134] : memref<8x256xf32, #tpu.memory_space<vmem>>, vector<8x256xf32>
    %312 = arith.mulf %302, %311 : vector<8x256xf32>
    %313 = arith.mulf %296, %304 : vector<8x256xf32>
    %314 = arith.addf %312, %313 : vector<8x256xf32>
    %315 = arith.index_cast %c6_i32 : i32 to index
    %c0_135 = arith.constant 0 : index
    %c0_136 = arith.constant 0 : index
    %316 = vector.load %arg5[%315, %c0_135, %c0_136] : memref<8x8x256xf32, #tpu.memory_space<vmem>>, vector<1x8x256xf32>
    %317 = vector.shape_cast %316 : vector<1x8x256xf32> to vector<8x256xf32>
    %318 = arith.mulf %314, %317 : vector<8x256xf32>
    %319 = math.tanh %318 : vector<8x256xf32>
    %320 = arith.mulf %310, %319 : vector<8x256xf32>
    %c0_137 = arith.constant 0 : index
    %c0_138 = arith.constant 0 : index
    %321 = vector.load %arg7[%c0_137, %c0_138] : memref<8x256xf32, #tpu.memory_space<vmem>>, vector<8x256xf32>
    tpu.vector_store %arg7[%c0_137, %c0_138], %318 {strides = array<i32>} : memref<8x256xf32, #tpu.memory_space<vmem>>, vector<8x256xf32>,
    %c0_139 = arith.constant 0 : index
    %c0_140 = arith.constant 0 : index
    %322 = vector.load %arg6[%c0_139, %c0_140] : memref<8x256xf32, #tpu.memory_space<vmem>>, vector<8x256xf32>
    tpu.vector_store %arg6[%c0_139, %c0_140], %320 {strides = array<i32>} : memref<8x256xf32, #tpu.memory_space<vmem>>, vector<8x256xf32>,
    %323 = arith.truncf %320 : vector<8x256xf32> to vector<8x256xbf16>
    %324 = arith.index_cast %c6_i32 : i32 to index
    %c0_141 = arith.constant 0 : index
    %c0_142 = arith.constant 0 : index
    %325 = vector.load %arg4[%324, %c0_141, %c0_142] : memref<8x8x256xbf16, #tpu.memory_space<vmem>>, vector<1x8x256xbf16>
    %326 = vector.shape_cast %325 : vector<1x8x256xbf16> to vector<8x256xbf16>
    %327 = vector.shape_cast %323 : vector<8x256xbf16> to vector<1x8x256xbf16>
    tpu.vector_store %arg4[%324, %c0_141, %c0_142], %327 {strides = array<i32>} : memref<8x8x256xbf16, #tpu.memory_space<vmem>>, vector<1x8x256xbf16>,
    %c7_i32 = arith.constant 7 : i32
    %c0_143 = arith.constant 0 : index
    %c0_144 = arith.constant 0 : index
    %328 = vector.load %arg6[%c0_143, %c0_144] : memref<8x256xf32, #tpu.memory_space<vmem>>, vector<8x256xf32>
    %329 = arith.truncf %328 : vector<8x256xf32> to vector<8x256xbf16>
    %cst_145 = arith.constant dense<0.000000e+00> : vector<8x1024xf32>
    %330 = tpu.matmul %329, %12, %cst_145 {dimension_numbers = #tpu.dot_dimension_numbers<[1], [0], [0], [1], [0, 0, 1, 1], [], []>} : vector<8x256xbf16>, vector<256x1024xbf16>, vector<8x1024xf32> -> vector<8x1024xf32>
    %331 = arith.index_cast %c7_i32 : i32 to index
    %c0_146 = arith.constant 0 : index
    %c0_147 = arith.constant 0 : index
    %332 = vector.load %arg0[%331, %c0_146, %c0_147] : memref<8x8x1024xbf16, #tpu.memory_space<vmem>>, vector<1x8x1024xbf16>
    %333 = vector.shape_cast %332 : vector<1x8x1024xbf16> to vector<8x1024xbf16>
    %334 = arith.extf %333 : vector<8x1024xbf16> to vector<8x1024xf32>
    %335 = arith.addf %330, %334 : vector<8x1024xf32>
    %336 = vector.extract_strided_slice %335 {offsets = [0, 0], sizes = [8, 256], strides = [1, 1]} : vector<8x1024xf32> to vector<8x256xf32>
    %337 = arith.negf %336 : vector<8x256xf32>
    %338 = math.exp %337 : vector<8x256xf32>
    %cst_148 = arith.constant 1.000000e+00 : f32
    %339 = vector.broadcast %cst_148 : f32 to vector<8x256xf32>
    %340 = arith.addf %339, %338 : vector<8x256xf32>
    %341 = arith.divf %339, %340 : vector<8x256xf32>
    %342 = vector.extract_strided_slice %335 {offsets = [0, 256], sizes = [8, 256], strides = [1, 1]} : vector<8x1024xf32> to vector<8x256xf32>
    %343 = arith.negf %342 : vector<8x256xf32>
    %344 = math.exp %343 : vector<8x256xf32>
    %cst_149 = arith.constant 1.000000e+00 : f32
    %345 = vector.broadcast %cst_149 : f32 to vector<8x256xf32>
    %346 = arith.addf %345, %344 : vector<8x256xf32>
    %347 = arith.divf %345, %346 : vector<8x256xf32>
    %348 = vector.extract_strided_slice %335 {offsets = [0, 512], sizes = [8, 256], strides = [1, 1]} : vector<8x1024xf32> to vector<8x256xf32>
    %349 = math.tanh %348 : vector<8x256xf32>
    %350 = vector.extract_strided_slice %335 {offsets = [0, 768], sizes = [8, 256], strides = [1, 1]} : vector<8x1024xf32> to vector<8x256xf32>
    %351 = arith.negf %350 : vector<8x256xf32>
    %352 = math.exp %351 : vector<8x256xf32>
    %cst_150 = arith.constant 1.000000e+00 : f32
    %353 = vector.broadcast %cst_150 : f32 to vector<8x256xf32>
    %354 = arith.addf %353, %352 : vector<8x256xf32>
    %355 = arith.divf %353, %354 : vector<8x256xf32>
    %c0_151 = arith.constant 0 : index
    %c0_152 = arith.constant 0 : index
    %356 = vector.load %arg7[%c0_151, %c0_152] : memref<8x256xf32, #tpu.memory_space<vmem>>, vector<8x256xf32>
    %357 = arith.mulf %347, %356 : vector<8x256xf32>
    %358 = arith.mulf %341, %349 : vector<8x256xf32>
    %359 = arith.addf %357, %358 : vector<8x256xf32>
    %360 = arith.index_cast %c7_i32 : i32 to index
    %c0_153 = arith.constant 0 : index
    %c0_154 = arith.constant 0 : index
    %361 = vector.load %arg5[%360, %c0_153, %c0_154] : memref<8x8x256xf32, #tpu.memory_space<vmem>>, vector<1x8x256xf32>
    %362 = vector.shape_cast %361 : vector<1x8x256xf32> to vector<8x256xf32>
    %363 = arith.mulf %359, %362 : vector<8x256xf32>
    %364 = math.tanh %363 : vector<8x256xf32>
    %365 = arith.mulf %355, %364 : vector<8x256xf32>
    %c0_155 = arith.constant 0 : index
    %c0_156 = arith.constant 0 : index
    %366 = vector.load %arg7[%c0_155, %c0_156] : memref<8x256xf32, #tpu.memory_space<vmem>>, vector<8x256xf32>
    tpu.vector_store %arg7[%c0_155, %c0_156], %363 {strides = array<i32>} : memref<8x256xf32, #tpu.memory_space<vmem>>, vector<8x256xf32>,
    %c0_157 = arith.constant 0 : index
    %c0_158 = arith.constant 0 : index
    %367 = vector.load %arg6[%c0_157, %c0_158] : memref<8x256xf32, #tpu.memory_space<vmem>>, vector<8x256xf32>
    tpu.vector_store %arg6[%c0_157, %c0_158], %365 {strides = array<i32>} : memref<8x256xf32, #tpu.memory_space<vmem>>, vector<8x256xf32>,
    %368 = arith.truncf %365 : vector<8x256xf32> to vector<8x256xbf16>
    %369 = arith.index_cast %c7_i32 : i32 to index
    %c0_159 = arith.constant 0 : index
    %c0_160 = arith.constant 0 : index
    %370 = vector.load %arg4[%369, %c0_159, %c0_160] : memref<8x8x256xbf16, #tpu.memory_space<vmem>>, vector<1x8x256xbf16>
    %371 = vector.shape_cast %370 : vector<1x8x256xbf16> to vector<8x256xbf16>
    %372 = vector.shape_cast %368 : vector<8x256xbf16> to vector<1x8x256xbf16>
    tpu.vector_store %arg4[%369, %c0_159, %c0_160], %372 {strides = array<i32>} : memref<8x8x256xbf16, #tpu.memory_space<vmem>>, vector<1x8x256xbf16>,
    %c8_i32 = arith.constant 8 : i32
    return
  }
}

</mosaic_0001>

<bundles_post_ra>
// kernel: tpu_custom_call.1
= control target key start
LH: loop header
LB: loop body
LE: loop exit
PB: predicated region body
PF: predicated region fallthrough
CT: control target
= control target key end

     0   :  { %9 = vsyncpa [#allocation6], 0  ;;  %s4980_s0 = inlined_call_operand.hbm [shape: bf16[8,8,1024], index: 0, kind: input, shape index: {}]   ;;  %s4981_s1 = inlined_call_operand.vmem [shape: f32[8,8,1], index: 1, kind: input, shape index: {}]   ;;  %s4982_s2 = inlined_call_operand.vmem [shape: f32[8,8,1], index: 2, kind: input, shape index: {}]   ;;  %s4983_s3 = inlined_call_operand.hbm [shape: bf16[256,1024], index: 3, kind: input, shape index: {}]   ;;  %s4984_s4 = inlined_call_operand.hbm [shape: bf16[8,8,256], index: 4, kind: output, shape index: {}]  }
   0x1   :  { %10 = vsyncpa [#allocation9], 0 }
   0x2   :  { %11 = vsyncpa [#allocation7], 0  ;;  %s3476_s15 = smov [#allocation5]   ;;  %s3404_s19 = scalar_lea.hbm %s4980_s0, 4096 }
   0x3   :  { %s17_s16 = sshll.u32 %s3476_s15, 4  ;;  %p3405_p0 = scmp.ne.s32.totalorder %s4980_s0, %s3404_s19  ;;  %s18_s16 = int_to_ptr.vmem [resolvable:$true] %s17_s16 }
   0x4   :  { %p3408_p1 = scmp.lt.u32.totalorder %s3404_s19, %s4980_s0 }
   0x6   :  { %p3410_p2 = pnand %p3408_p1, %p3405_p0 }
   0x8   :  { %3413 = shalt.err (!%p3410_p2)
}
   0x9   :  { %s3414_s24 = scalar_lea.vmem %s18_s16, 4096  ;;  %p3419_p4 = scmp.lt.s32.totalorder %s18_s16, %s18_s16 }
   0xa   :  { %p3415_p3 = scmp.ne.s32.totalorder %s18_s16, %s3414_s24  ;;  %p3420_p5 = scmp.lt.s32.totalorder %s3414_s24, %s3414_s24 }
   0xc   :  { %p3421_p6 = por %p3420_p5, %p3419_p4 }
   0xe   :  { %p3422_p7 = pnand %p3421_p6, %p3415_p3 }
  0x10   :  { %3425 = shalt.err (!%p3422_p7)
}
  0x11   :  { %s3477_s25 = smov 512   ;;  %s3478_s26 = smov 32  }
  0x12   :  { %23 = dma.hbm_to_vmem [thread:$0]  %s4980_s0, 4096, %s18_s16, [#allocation6], %s3477_s25, %s3477_s25, %s3478_s26  }
  0x13   :  { %s3479_s29 = smov [#allocation8]   ;;  %s3426_s7 = scalar_lea.hbm %s4983_s3, 16384 }
  0x14   :  { %s33_s30 = sshll.u32 %s3479_s29, 4  ;;  %p3427_p8 = scmp.ne.s32.totalorder %s4983_s3, %s3426_s7  ;;  %s34_s30 = int_to_ptr.vmem [resolvable:$true] %s33_s30 }
  0x15   :  { %p3430_p9 = scmp.lt.u32.totalorder %s3426_s7, %s4983_s3 }
  0x17   :  { %p3432_p10 = pnand %p3430_p9, %p3427_p8 }
  0x19   :  { %3435 = shalt.err (!%p3432_p10)
}
  0x1a   :  { %s3436_s12 = scalar_lea.vmem %s34_s30, 16384  ;;  %p3441_p12 = scmp.lt.s32.totalorder %s34_s30, %s34_s30 }
  0x1b   :  { %p3437_p11 = scmp.ne.s32.totalorder %s34_s30, %s3436_s12  ;;  %p3442_p13 = scmp.lt.s32.totalorder %s3436_s12, %s3436_s12 }
  0x1d   :  { %p3443_p0 = por %p3442_p13, %p3441_p12 }
  0x1f   :  { %p3444_p1 = pnand %p3443_p0, %p3437_p11 }
  0x21   :  { %3447 = shalt.err (!%p3444_p1)
}
  0x22   :  { %39 = dma.hbm_to_vmem [thread:$0]  %s4983_s3, 16384, %s34_s30, [#allocation9], %s3477_s25, %s3477_s25, %s3478_s26  }
  0x23   :  { %3470 = dma.done.wait [#allocation6], 4096  }
  0x24   :  { %3471 = vsyncadd [#allocation6], 4294963200 }
  0x25   :  { %3472 = dma.done.wait [#allocation9], 16384  }
  0x26   :  { %3473 = vsyncadd [#allocation9], 4294950912  ;;  %v4985_v0 = vmov 0.0|0.0   ;;  %v162_v1 = vld [vmem:[#allocation8] sm:$0xff]  ;;  %v163_v3 = vld [vmem:[#allocation8 + $0x8] sm:$0xff]  ;;  %v3481_v27 = vmov 0  }
  0x27   :  { %978 = vmatprep.mubr.bf16.mxu0 %v4985_v0  ;;  %1019 = vmatprep.mubr.bf16.mxu1 %v4985_v0  ;;  %v166_v2 = vld [vmem:[#allocation8 + $0x20] sm:$0xff]  ;;  %v167_v5 = vld [vmem:[#allocation8 + $0x28] sm:$0xff] }
  0x28   :  { %v3536_v4 = vcombine.high %v162_v1, %v166_v2  ;;  %v3538_v6 = vcombine.low %v162_v1, %v166_v2  ;;  %v170_v7 = vld [vmem:[#allocation8 + $0x40] sm:$0xff]  ;;  %v3540_v9 = vcombine.high %v163_v3, %v167_v5  ;;  %v3542_v10 = vcombine.low %v163_v3, %v167_v5  ;;  %v171_v12 = vld [vmem:[#allocation8 + $0x48] sm:$0xff]  ;;  %3146 = vset.pattern.permute.xlu0 %v3481_v27 }
  0x29   :  { %v174_v8 = vld [vmem:[#allocation8 + $0x60] sm:$0xff]  ;;  %v175_v13 = vld [vmem:[#allocation8 + $0x68] sm:$0xff]  ;;  %3147 = vset.pattern.permute.xlu1 %v3481_v27 }
  0x2a   :  { %5254 = vst [vmem:[#allocation14_spill] sm:$0xff] %v3536_v4  ;;  %5255 = vst [vmem:[#allocation15_spill] sm:$0xff] %v3538_v6  ;;  %v3544_v11 = vcombine.high %v170_v7, %v174_v8  ;;  %v178_v14 = vld [vmem:[#allocation8 + $0x80] sm:$0xff]  ;;  %946 = vmatprep.subr.bf16.mxu0 %v3536_v4  ;;  %v3547_v15 = vcombine.high %v171_v12, %v175_v13  ;;  %v179_v17 = vld [vmem:[#allocation8 + $0x88] sm:$0xff]  ;;  %987 = vmatprep.subr.bf16.mxu1 %v3540_v9 }
  0x2b   :  { %5256 = vst [vmem:[#allocation16_spill] sm:$0xff] %v3540_v9  ;;  %5257 = vst [vmem:[#allocation17_spill] sm:$0xff] %v3542_v10  ;;  %v182_v16 = vld [vmem:[#allocation8 + $0xa0] sm:$0xff]  ;;  %v183_v18 = vld [vmem:[#allocation8 + $0xa8] sm:$0xff]  ;;  %947 = vmatpush1.bf16.msra.mxu0 %v3538_v6  ;;  %v3551_v19 = vcombine.low %v170_v7, %v174_v8  ;;  %988 = vmatpush1.bf16.msra.mxu1 %v3542_v10  ;;  %v3555_v20 = vcombine.low %v171_v12, %v175_v13 }
  0x2c   :  { %5258 = vst [vmem:[#allocation18_spill] sm:$0xff] %v3544_v11  ;;  %5259 = vst [vmem:[#allocation19_spill] sm:$0xff] %v3547_v15  ;;  %948 = vmatprep.subr.bf16.mxu0 %v3544_v11  ;;  %v3557_v21 = vcombine.high %v178_v14, %v182_v16  ;;  %989 = vmatprep.subr.bf16.mxu1 %v3547_v15  ;;  %v3560_v22 = vcombine.high %v179_v17, %v183_v18  ;;  %v186_v23 = vld [vmem:[#allocation8 + $0xc0] sm:$0xff]  ;;  %v187_v25 = vld [vmem:[#allocation8 + $0xc8] sm:$0xff] }
  0x2d   :  { %5260 = vst [vmem:[#allocation20_spill] sm:$0xff] %v3551_v19  ;;  %5261 = vst [vmem:[#allocation21_spill] sm:$0xff] %v3555_v20  ;;  %v190_v24 = vld [vmem:[#allocation8 + $0xe0] sm:$0xff]  ;;  %v191_v26 = vld [vmem:[#allocation8 + $0xe8] sm:$0xff]  ;;  %v3563_v28 = vcombine.low %v178_v14, %v182_v16  ;;  %v3567_v29 = vcombine.low %v179_v17, %v183_v18 }
  0x2e   :  { %5262 = vst [vmem:[#allocation22_spill] sm:$0xff] %v3557_v21  ;;  %5263 = vst [vmem:[#allocation23_spill] sm:$0xff] %v3560_v22  ;;  %v3569_v30 = vcombine.high %v186_v23, %v190_v24  ;;  %v3572_v31 = vcombine.high %v187_v25, %v191_v26  ;;  %v194_v32 = vld [vmem:[#allocation8 + $0x100] sm:$0xff]  ;;  %v195_v34 = vld [vmem:[#allocation8 + $0x108] sm:$0xff]  ;;  %v3575_v36 = vcombine.low %v186_v23, %v190_v24 }
  0x2f   :  { %949 = vmatpush1.bf16.msra.mxu0 %v3551_v19  ;;  %5264 = vst [vmem:[#allocation24_spill] sm:$0xff] %v3563_v28  ;;  %990 = vmatpush1.bf16.msra.mxu1 %v3555_v20  ;;  %5265 = vst [vmem:[#allocation25_spill] sm:$0xff] %v3567_v29  ;;  %v198_v33 = vld [vmem:[#allocation8 + $0x120] sm:$0xff]  ;;  %v199_v35 = vld [vmem:[#allocation8 + $0x128] sm:$0xff]  ;;  %v3579_v37 = vcombine.low %v187_v25, %v191_v26 }
  0x30   :  { %950 = vmatprep.subr.bf16.mxu0 %v3557_v21  ;;  %5266 = vst [vmem:[#allocation26_spill] sm:$0xff] %v3569_v30  ;;  %991 = vmatprep.subr.bf16.mxu1 %v3560_v22  ;;  %5267 = vst [vmem:[#allocation27_spill] sm:$0xff] %v3572_v31  ;;  %v3581_v38 = vcombine.high %v194_v32, %v198_v33  ;;  %v3584_v39 = vcombine.high %v195_v34, %v199_v35  ;;  %v202_v40 = vld [vmem:[#allocation8 + $0x140] sm:$0xff]  ;;  %v203_v42 = vld [vmem:[#allocation8 + $0x148] sm:$0xff] }
  0x31   :  { %5268 = vst [vmem:[#allocation28_spill] sm:$0xff] %v3575_v36  ;;  %5269 = vst [vmem:[#allocation29_spill] sm:$0xff] %v3579_v37  ;;  %v206_v41 = vld [vmem:[#allocation8 + $0x160] sm:$0xff]  ;;  %v207_v43 = vld [vmem:[#allocation8 + $0x168] sm:$0xff]  ;;  %v3587_v44 = vcombine.low %v194_v32, %v198_v33  ;;  %v3591_v45 = vcombine.low %v195_v34, %v199_v35 }
  0x32   :  { %5270 = vst [vmem:[#allocation30_spill] sm:$0xff] %v3581_v38  ;;  %5271 = vst [vmem:[#allocation31_spill] sm:$0xff] %v3584_v39  ;;  %v3593_v46 = vcombine.high %v202_v40, %v206_v41  ;;  %v3596_v47 = vcombine.high %v203_v42, %v207_v43  ;;  %v210_v48 = vld [vmem:[#allocation8 + $0x180] sm:$0xff]  ;;  %v211_v50 = vld [vmem:[#allocation8 + $0x188] sm:$0xff]  ;;  %v3599_v52 = vcombine.low %v202_v40, %v206_v41 }
  0x33   :  { %951 = vmatpush1.bf16.msra.mxu0 %v3563_v28  ;;  %992 = vmatpush1.bf16.msra.mxu1 %v3567_v29  ;;  %5272 = vst [vmem:[#allocation32_spill] sm:$0xff] %v3587_v44  ;;  %5273 = vst [vmem:[#allocation33_spill] sm:$0xff] %v3591_v45  ;;  %v214_v49 = vld [vmem:[#allocation8 + $0x1a0] sm:$0xff]  ;;  %v215_v51 = vld [vmem:[#allocation8 + $0x1a8] sm:$0xff]  ;;  %v3603_v53 = vcombine.low %v203_v42, %v207_v43 }
  0x34   :  { %952 = vmatprep.subr.bf16.mxu0 %v3569_v30  ;;  %993 = vmatprep.subr.bf16.mxu1 %v3572_v31  ;;  %5274 = vst [vmem:[#allocation34_spill] sm:$0xff] %v3593_v46  ;;  %5275 = vst [vmem:[#allocation35_spill] sm:$0xff] %v3596_v47  ;;  %v3605_v54 = vcombine.high %v210_v48, %v214_v49  ;;  %v3608_v55 = vcombine.high %v211_v50, %v215_v51  ;;  %v218_v56 = vld [vmem:[#allocation8 + $0x1c0] sm:$0xff]  ;;  %v219_v58 = vld [vmem:[#allocation8 + $0x1c8] sm:$0xff] }
  0x35   :  { %5276 = vst [vmem:[#allocation36_spill] sm:$0xff] %v3599_v52  ;;  %5277 = vst [vmem:[#allocation37_spill] sm:$0xff] %v3603_v53  ;;  %v222_v57 = vld [vmem:[#allocation8 + $0x1e0] sm:$0xff]  ;;  %v223_v59 = vld [vmem:[#allocation8 + $0x1e8] sm:$0xff]  ;;  %v3611_v60 = vcombine.low %v210_v48, %v214_v49  ;;  %v3615_v61 = vcombine.low %v211_v50, %v215_v51 }
  0x36   :  { %5278 = vst [vmem:[#allocation38_spill] sm:$0xff] %v3605_v54  ;;  %5279 = vst [vmem:[#allocation39_spill] sm:$0xff] %v3608_v55  ;;  %v3617_v62 = vcombine.high %v218_v56, %v222_v57  ;;  %v3620_v63 = vcombine.high %v219_v58, %v223_v59  ;;  %v226_v1 = vld [vmem:[#allocation8 + $0x200] sm:$0xff]  ;;  %v227_v3 = vld [vmem:[#allocation8 + $0x208] sm:$0xff]  ;;  %v3623_v7 = vcombine.low %v218_v56, %v222_v57 }
  0x37   :  { %953 = vmatpush1.bf16.msra.mxu0 %v3575_v36  ;;  %994 = vmatpush1.bf16.msra.mxu1 %v3579_v37  ;;  %5280 = vst [vmem:[#allocation40_spill] sm:$0xff] %v3611_v60  ;;  %5281 = vst [vmem:[#allocation41_spill] sm:$0xff] %v3615_v61  ;;  %v230_v2 = vld [vmem:[#allocation8 + $0x220] sm:$0xff]  ;;  %v231_v5 = vld [vmem:[#allocation8 + $0x228] sm:$0xff]  ;;  %v3627_v8 = vcombine.low %v219_v58, %v223_v59 }
  0x38   :  { %954 = vmatprep.subr.bf16.mxu0 %v3581_v38  ;;  %995 = vmatprep.subr.bf16.mxu1 %v3584_v39  ;;  %5282 = vst [vmem:[#allocation42_spill] sm:$0xff] %v3617_v62  ;;  %5283 = vst [vmem:[#allocation43_spill] sm:$0xff] %v3620_v63  ;;  %v3629_v12 = vcombine.high %v226_v1, %v230_v2  ;;  %v3632_v13 = vcombine.high %v227_v3, %v231_v5  ;;  %v234_v14 = vld [vmem:[#allocation8 + $0x240] sm:$0xff]  ;;  %v235_v17 = vld [vmem:[#allocation8 + $0x248] sm:$0xff] }
  0x39   :  { %5284 = vst [vmem:[#allocation44_spill] sm:$0xff] %v3623_v7  ;;  %5285 = vst [vmem:[#allocation45_spill] sm:$0xff] %v3627_v8  ;;  %v238_v16 = vld [vmem:[#allocation8 + $0x260] sm:$0xff]  ;;  %v239_v18 = vld [vmem:[#allocation8 + $0x268] sm:$0xff]  ;;  %v3635_v23 = vcombine.low %v226_v1, %v230_v2  ;;  %v3639_v24 = vcombine.low %v227_v3, %v231_v5 }
  0x3a   :  { %5286 = vst [vmem:[#allocation46_spill] sm:$0xff] %v3629_v12  ;;  %5287 = vst [vmem:[#allocation47_spill] sm:$0xff] %v3632_v13  ;;  %v3641_v25 = vcombine.high %v234_v14, %v238_v16  ;;  %v3644_v26 = vcombine.high %v235_v17, %v239_v18  ;;  %v242_v27 = vld [vmem:[#allocation8 + $0x280] sm:$0xff]  ;;  %v243_v33 = vld [vmem:[#allocation8 + $0x288] sm:$0xff]  ;;  %v3647_v35 = vcombine.low %v234_v14, %v238_v16 }
  0x3b   :  { %955 = vmatpush1.bf16.msra.mxu0 %v3587_v44  ;;  %996 = vmatpush1.bf16.msra.mxu1 %v3591_v45  ;;  %5288 = vst [vmem:[#allocation48_spill] sm:$0xff] %v3635_v23  ;;  %5289 = vst [vmem:[#allocation49_spill] sm:$0xff] %v3639_v24  ;;  %v246_v32 = vld [vmem:[#allocation8 + $0x2a0] sm:$0xff]  ;;  %v247_v34 = vld [vmem:[#allocation8 + $0x2a8] sm:$0xff]  ;;  %v3651_v40 = vcombine.low %v235_v17, %v239_v18 }
  0x3c   :  { %956 = vmatprep.subr.bf16.mxu0 %v3593_v46  ;;  %997 = vmatprep.subr.bf16.mxu1 %v3596_v47  ;;  %5290 = vst [vmem:[#allocation50_spill] sm:$0xff] %v3641_v25  ;;  %5291 = vst [vmem:[#allocation51_spill] sm:$0xff] %v3644_v26  ;;  %v3653_v41 = vcombine.high %v242_v27, %v246_v32  ;;  %v3656_v42 = vcombine.high %v243_v33, %v247_v34  ;;  %v250_v43 = vld [vmem:[#allocation8 + $0x2c0] sm:$0xff]  ;;  %v251_v49 = vld [vmem:[#allocation8 + $0x2c8] sm:$0xff] }
  0x3d   :  { %5292 = vst [vmem:[#allocation52_spill] sm:$0xff] %v3647_v35  ;;  %5293 = vst [vmem:[#allocation53_spill] sm:$0xff] %v3651_v40  ;;  %v254_v48 = vld [vmem:[#allocation8 + $0x2e0] sm:$0xff]  ;;  %v255_v50 = vld [vmem:[#allocation8 + $0x2e8] sm:$0xff]  ;;  %v3659_v51 = vcombine.low %v242_v27, %v246_v32  ;;  %v3663_v56 = vcombine.low %v243_v33, %v247_v34 }
  0x3e   :  { %5294 = vst [vmem:[#allocation54_spill] sm:$0xff] %v3653_v41  ;;  %5295 = vst [vmem:[#allocation55_spill] sm:$0xff] %v3656_v42  ;;  %v3665_v57 = vcombine.high %v250_v43, %v254_v48  ;;  %v3668_v58 = vcombine.high %v251_v49, %v255_v50  ;;  %v258_v59 = vld [vmem:[#allocation8 + $0x300] sm:$0xff]  ;;  %v259_v3 = vld [vmem:[#allocation8 + $0x308] sm:$0xff]  ;;  %v3674_v14 = vcombine.low %v250_v43, %v254_v48 }
  0x3f   :  { %957 = vmatpush1.bf16.msra.mxu0 %v3599_v52  ;;  %998 = vmatpush1.bf16.msra.mxu1 %v3603_v53  ;;  %5296 = vst [vmem:[#allocation56_spill] sm:$0xff] %v3659_v51  ;;  %5297 = vst [vmem:[#allocation57_spill] sm:$0xff] %v3663_v56  ;;  %v262_v1 = vld [vmem:[#allocation8 + $0x320] sm:$0xff]  ;;  %v263_v5 = vld [vmem:[#allocation8 + $0x328] sm:$0xff]  ;;  %v3681_v17 = vcombine.low %v251_v49, %v255_v50 }
  0x40   :  { %958 = vmatprep.subr.bf16.mxu0 %v3605_v54  ;;  %999 = vmatprep.subr.bf16.mxu1 %v3608_v55  ;;  %5298 = vst [vmem:[#allocation58_spill] sm:$0xff] %v3665_v57  ;;  %5299 = vst [vmem:[#allocation59_spill] sm:$0xff] %v3668_v58  ;;  %v102_v2 = vld [vmem:[%s4982_s2] sm:$0xff]  ;;  %v3683_v18 = vcombine.high %v258_v59, %v262_v1  ;;  %v3686_v27 = vcombine.high %v259_v3, %v263_v5  ;;  %v267_v34 = vld [vmem:[#allocation8 + $0x348] sm:$0xff] }
  0x41   :  { %112 = vperm.xlu0 %3146, %v102_v2   ;;  %5300 = vst [vmem:[#allocation60_spill] sm:$0xff] %v3674_v14  ;;  %v46_v16 = vld [vmem:[%s4981_s1] sm:$0xff]  ;;  %5301 = vst [vmem:[#allocation61_spill] sm:$0xff] %v3681_v17  ;;  %v271_v43 = vld [vmem:[#allocation8 + $0x368] sm:$0xff]  ;;  %v3689_v48 = vcombine.low %v258_v59, %v262_v1  ;;  %v3696_v50 = vcombine.low %v259_v3, %v263_v5 }
  0x42   :  { %5302 = vst [vmem:[#allocation62_spill] sm:$0xff] %v3683_v18  ;;  %5303 = vst [vmem:[#allocation63_spill] sm:$0xff] %v3686_v27  ;;  %v266_v32 = vld [vmem:[#allocation8 + $0x340] sm:$0xff]  ;;  %v104_v49 = vld [vmem:[%s4982_s2 + $0x10] sm:$0xff]  ;;  %v3701_v0 = vcombine.high %v267_v34, %v271_v43  ;;  %v3711_v5 = vcombine.low %v267_v34, %v271_v43 }
  0x43   :  { %959 = vmatpush1.bf16.msra.mxu0 %v3611_v60  ;;  %1000 = vmatpush1.bf16.msra.mxu1 %v3615_v61  ;;  %v270_v33 = vld [vmem:[#allocation8 + $0x360] sm:$0xff]  ;;  %5304 = vst [vmem:[#allocation64_spill] sm:$0xff] %v3689_v48  ;;  %5305 = vst [vmem:[#allocation65_spill] sm:$0xff] %v3696_v50  ;;  %v275_v59 = vld [vmem:[#allocation8 + $0x388] sm:$0xff] }
  0x44   :  { %960 = vmatprep.subr.bf16.mxu0 %v3617_v62  ;;  %1001 = vmatprep.subr.bf16.mxu1 %v3620_v63  ;;  %v3698_v2 = vcombine.high %v266_v32, %v270_v33  ;;  %5307 = vst [vmem:[#allocation67_spill] sm:$0xff] %v3701_v0  ;;  %v279_v1 = vld [vmem:[#allocation8 + $0x3a8] sm:$0xff]  ;;  %v105_v3 = vld [vmem:[%s4982_s2 + $0x18] sm:$0xff]  ;;  %5309 = vst [vmem:[#allocation69_spill] sm:$0xff] %v3711_v5 }
  0x45   :  { %56 = vperm.xlu0 %3146, %v46_v16   ;;  %v274_v16 = vld [vmem:[#allocation8 + $0x380] sm:$0xff]  ;;  %v3726_v43 = vcombine.low %v275_v59, %v279_v1 }
  0x46   :  { %5306 = vst [vmem:[#allocation66_spill] sm:$0xff] %v3698_v2  ;;  %v106_v34 = vld [vmem:[%s4982_s2 + $0x20] sm:$0xff] }
  0x47   :  { %961 = vmatpush1.bf16.msra.mxu0 %v3623_v7  ;;  %1002 = vmatpush1.bf16.msra.mxu1 %v3627_v8  ;;  %5313 = vst [vmem:[#allocation73_spill] sm:$0xff] %v3726_v43 }
  0x48   :  { %962 = vmatprep.subr.bf16.mxu0 %v3629_v12  ;;  %1003 = vmatprep.subr.bf16.mxu1 %v3632_v13 }
  0x49   :  { %122 = vperm.xlu0 %3146, %v104_v49   ;;  %v282_v49 = vld [vmem:[#allocation8 + $0x3c0] sm:$0xff] }
  0x4b   :  { %963 = vmatpush1.bf16.msra.mxu0 %v3635_v23  ;;  %1004 = vmatpush1.bf16.msra.mxu1 %v3639_v24 }
  0x4c   :  { %964 = vmatprep.subr.bf16.mxu0 %v3641_v25  ;;  %1005 = vmatprep.subr.bf16.mxu1 %v3644_v26 }
  0x4d   :  { %127 = vperm.xlu0 %3146, %v105_v3   ;;  %v164_v3 = vld [vmem:[#allocation8 + $0x10] sm:$0xff] }
  0x4f   :  { %965 = vmatpush1.bf16.msra.mxu0 %v3647_v35  ;;  %1006 = vmatpush1.bf16.msra.mxu1 %v3651_v40 }
  0x50   :  { %966 = vmatprep.subr.bf16.mxu0 %v3653_v41  ;;  %1007 = vmatprep.subr.bf16.mxu1 %v3656_v42 }
  0x51   :  { %132 = vperm.xlu0 %3146, %v106_v34   ;;  %v172_v34 = vld [vmem:[#allocation8 + $0x50] sm:$0xff] }
  0x53   :  { %967 = vmatpush1.bf16.msra.mxu0 %v3659_v51  ;;  %1008 = vmatpush1.bf16.msra.mxu1 %v3663_v56  ;;  %v197_v56 = vld [vmem:[#allocation8 + $0x118] sm:$0xff] }
  0x54   :  { %968 = vmatprep.subr.bf16.mxu0 %v3665_v57  ;;  %1009 = vmatprep.subr.bf16.mxu1 %v3668_v58  ;;  %v3704_v58 = vcombine.low %v266_v32, %v270_v33  ;;  %v283_v32 = vld [vmem:[#allocation8 + $0x3c8] sm:$0xff]  ;;  %v200_v57 = vld [vmem:[#allocation8 + $0x130] sm:$0xff] }
  0x55   :  { %v287_v33 = vld [vmem:[#allocation8 + $0x3e8] sm:$0xff] }
  0x56   :  { %5308 = vst [vmem:[#allocation68_spill] sm:$0xff] %v3704_v58 }
  0x57   :  { %969 = vmatpush1.bf16.msra.mxu0 %v3674_v14  ;;  %1010 = vmatpush1.bf16.msra.mxu1 %v3681_v17  ;;  %v278_v14 = vld [vmem:[#allocation8 + $0x3a0] sm:$0xff] }
  0x58   :  { %970 = vmatprep.subr.bf16.mxu0 %v3683_v18  ;;  %1011 = vmatprep.subr.bf16.mxu1 %v3686_v27  ;;  %v3713_v27 = vcombine.high %v274_v16, %v278_v14  ;;  %v3716_v18 = vcombine.high %v275_v59, %v279_v1  ;;  %v3719_v17 = vcombine.low %v274_v16, %v278_v14  ;;  %v165_v14 = vld [vmem:[#allocation8 + $0x18] sm:$0xff]  ;;  %v107_v59 = vld [vmem:[%s4982_s2 + $0x28] sm:$0xff] }
  0x59   :  { %v169_v16 = vld [vmem:[#allocation8 + $0x38] sm:$0xff]  ;;  %v3741_v1 = vcombine.low %v283_v32, %v287_v33  ;;  %137 = vperm.xlu0 %3146, %v107_v59   ;;  %v180_v59 = vld [vmem:[#allocation8 + $0x90] sm:$0xff] }
  0x5a   :  { %5310 = vst [vmem:[#allocation70_spill] sm:$0xff] %v3713_v27  ;;  %5311 = vst [vmem:[#allocation71_spill] sm:$0xff] %v3716_v18 }
  0x5b   :  { %971 = vmatpush1.bf16.msra.mxu0 %v3689_v48  ;;  %1012 = vmatpush1.bf16.msra.mxu1 %v3696_v50  ;;  %v286_v48 = vld [vmem:[#allocation8 + $0x3e0] sm:$0xff]  ;;  %5312 = vst [vmem:[#allocation72_spill] sm:$0xff] %v3719_v17  ;;  %5317 = vst [vmem:[#allocation77_spill] sm:$0xff] %v3741_v1 }
  0x5c   :  { %972 = vmatprep.subr.bf16.mxu0 %v3698_v2  ;;  %1013 = vmatprep.subr.bf16.mxu1 %v3701_v0  ;;  %v3728_v0 = vcombine.high %v282_v49, %v286_v48  ;;  %v3731_v2 = vcombine.high %v283_v32, %v287_v33  ;;  %v3734_v50 = vcombine.low %v282_v49, %v286_v48  ;;  %v173_v48 = vld [vmem:[#allocation8 + $0x58] sm:$0xff]  ;;  %v108_v32 = vld [vmem:[%s4982_s2 + $0x30] sm:$0xff] }
  0x5d   :  { %v177_v49 = vld [vmem:[#allocation8 + $0x78] sm:$0xff]  ;;  %v3756_v33 = vcombine.low %v165_v14, %v169_v16  ;;  %142 = vperm.xlu0 %3146, %v108_v32  }
  0x5e   :  { %5314 = vst [vmem:[#allocation74_spill] sm:$0xff] %v3728_v0  ;;  %5315 = vst [vmem:[#allocation75_spill] sm:$0xff] %v3731_v2 }
  0x5f   :  { %973 = vmatpush1.bf16.msra.mxu0 %v3704_v58  ;;  %1014 = vmatpush1.bf16.msra.mxu1 %v3711_v5  ;;  %v168_v58 = vld [vmem:[#allocation8 + $0x30] sm:$0xff]  ;;  %5316 = vst [vmem:[#allocation76_spill] sm:$0xff] %v3734_v50  ;;  %5321 = vst [vmem:[#allocation81_spill] sm:$0xff] %v3756_v33 }
  0x60   :  { %974 = vmatprep.subr.bf16.mxu0 %v3713_v27  ;;  %1015 = vmatprep.subr.bf16.mxu1 %v3716_v18  ;;  %v3743_v18 = vcombine.high %v164_v3, %v168_v58  ;;  %v3746_v27 = vcombine.high %v165_v14, %v169_v16  ;;  %v3749_v5 = vcombine.low %v164_v3, %v168_v58  ;;  %v5324_v58 = vmov 0.0|0.0   ;;  %v181_v3 = vld [vmem:[#allocation8 + $0x98] sm:$0xff] }
  0x61   :  { %v53_v14 = vld [vmem:[%s4981_s1 + $0x38] sm:$0xff]  ;;  %v3773_v16 = vcombine.low %v173_v48, %v177_v49 }
  0x62   :  { %5318 = vst [vmem:[#allocation78_spill] sm:$0xff] %v3743_v18  ;;  %5319 = vst [vmem:[#allocation79_spill] sm:$0xff] %v3746_v27  ;;  %91 = vperm.xlu0 %3146, %v53_v14   ;;  %v201_v14 = vld [vmem:[#allocation8 + $0x138] sm:$0xff] }
  0x63   :  { %975 = vmatpush1.bf16.msra.mxu0 %v3719_v17  ;;  %1016 = vmatpush1.bf16.msra.mxu1 %v3726_v43  ;;  %v176_v17 = vld [vmem:[#allocation8 + $0x70] sm:$0xff]  ;;  %5320 = vst [vmem:[#allocation80_spill] sm:$0xff] %v3749_v5  ;;  %v185_v43 = vld [vmem:[#allocation8 + $0xb8] sm:$0xff]  ;;  %5326 = vst [vmem:[#allocation85_spill] sm:$0xff] %v3773_v16 }
  0x64   :  { %976 = vmatprep.subr.bf16.mxu0 %v3728_v0  ;;  %1017 = vmatprep.subr.bf16.mxu1 %v3731_v2  ;;  %v3758_v2 = vcombine.high %v172_v34, %v176_v17  ;;  %v3761_v0 = vcombine.high %v173_v48, %v177_v49  ;;  %v3778_v32 = vcombine.high %v181_v3, %v185_v43 }
  0x65   :  { %v3787_v48 = vcombine.low %v181_v3, %v185_v43  ;;  %v3804_v3 = vcombine.high %v197_v56, %v201_v14 }
  0x66   :  { %5322 = vst [vmem:[#allocation82_spill] sm:$0xff] %v3758_v2  ;;  %5323 = vst [vmem:[#allocation83_spill] sm:$0xff] %v3761_v0 }
  0x67   :  { %977 = vmatpush1.bf16.msra.mxu0 %v3734_v50  ;;  %1018 = vmatpush1.bf16.msra.mxu1 %v3741_v1  ;;  %v184_v50 = vld [vmem:[#allocation8 + $0xb0] sm:$0xff]  ;;  %5328 = vst [vmem:[#allocation87_spill] sm:$0xff] %v3778_v32  ;;  %5330 = vst [vmem:[#allocation89_spill] sm:$0xff] %v3787_v48 }
  0x68   :  { %1028 = vmatprep.subr.bf16.mxu0 %v3743_v18  ;;  %1069 = vmatprep.subr.bf16.mxu1 %v3746_v27  ;;  %v3766_v18 = vcombine.low %v172_v34, %v176_v17  ;;  %v3775_v27 = vcombine.high %v180_v59, %v184_v50  ;;  %v188_v1 = vld [vmem:[#allocation8 + $0xd0] sm:$0xff]  ;;  %v189_v17 = vld [vmem:[#allocation8 + $0xd8] sm:$0xff]  ;;  %5336 = vst [vmem:[#allocation95_spill] sm:$0xff] %v3804_v3 }
  0x69   :  { %v193_v34 = vld [vmem:[#allocation8 + $0xf8] sm:$0xff] }
  0x6a   :  { %979 = vmatmul.mubr.bf16.vlgmr.msra.gmra.mrb[0].mxu0 %v5324_v58  ;;  %1020 = vmatmul.mubr.bf16.vlgmr.msra.gmra.mrb[0].mxu1 %v5324_v58  ;;  %5325 = vst [vmem:[#allocation84_spill] sm:$0xff] %v3766_v18  ;;  %5327 = vst [vmem:[#allocation86_spill] sm:$0xff] %v3775_v27  ;;  %v3799_v43 = vcombine.low %v189_v17, %v193_v34 }
  0x6b   :  { %1029 = vmatpush1.bf16.msra.mxu0 %v3749_v5  ;;  %1070 = vmatpush1.bf16.msra.mxu1 %v3756_v33  ;;  %v192_v5 = vld [vmem:[#allocation8 + $0xf0] sm:$0xff] }
  0x6c   :  { %1030 = vmatprep.subr.bf16.mxu0 %v3758_v2  ;;  %1071 = vmatprep.subr.bf16.mxu1 %v3761_v0  ;;  %v3783_v2 = vcombine.low %v180_v59, %v184_v50  ;;  %v3789_v49 = vcombine.high %v188_v1, %v192_v5  ;;  %v3792_v0 = vcombine.high %v189_v17, %v193_v34  ;;  %v196_v33 = vld [vmem:[#allocation8 + $0x110] sm:$0xff] }
  0x6d   :  { %1060 = vmatprep.mubr.bf16.mxu0 %v5324_v58  ;;  %1101 = vmatprep.mubr.bf16.mxu1 %v5324_v58  ;;  %v3795_v50 = vcombine.low %v188_v1, %v192_v5  ;;  %5334 = vst [vmem:[#allocation93_spill] sm:$0xff] %v3799_v43  ;;  %v3801_v59 = vcombine.high %v196_v33, %v200_v57 }
  0x6e   :  { %5329 = vst [vmem:[#allocation88_spill] sm:$0xff] %v3783_v2  ;;  %5331 = vst [vmem:[#allocation90_spill] sm:$0xff] %v3789_v49  ;;  %v3807_v5 = vcombine.low %v196_v33, %v200_v57  ;;  %v3811_v1 = vcombine.low %v197_v56, %v201_v14 }
  0x6f   :  { %1031 = vmatpush1.bf16.msra.mxu0 %v3766_v18  ;;  %1072 = vmatpush1.bf16.msra.mxu1 %v3773_v16  ;;  %5332 = vst [vmem:[#allocation91_spill] sm:$0xff] %v3792_v0  ;;  %5333 = vst [vmem:[#allocation92_spill] sm:$0xff] %v3795_v50  ;;  %v205_v16 = vld [vmem:[#allocation8 + $0x158] sm:$0xff] }
  0x70   :  { %1032 = vmatprep.subr.bf16.mxu0 %v3775_v27  ;;  %1073 = vmatprep.subr.bf16.mxu1 %v3778_v32  ;;  %5335 = vst [vmem:[#allocation94_spill] sm:$0xff] %v3801_v59  ;;  %v204_v32 = vld [vmem:[#allocation8 + $0x150] sm:$0xff]  ;;  %v209_v18 = vld [vmem:[#allocation8 + $0x178] sm:$0xff]  ;;  %5337 = vst [vmem:[#allocation96_spill] sm:$0xff] %v3807_v5 }
  0x71   :  { %v208_v27 = vld [vmem:[#allocation8 + $0x170] sm:$0xff]  ;;  %5338 = vst [vmem:[#allocation97_spill] sm:$0xff] %v3811_v1  ;;  %v3816_v34 = vcombine.high %v205_v16, %v209_v18  ;;  %v3823_v56 = vcombine.low %v205_v16, %v209_v18 }
  0x72   :  { %v3813_v17 = vcombine.high %v204_v32, %v208_v27  ;;  %v3819_v57 = vcombine.low %v204_v32, %v208_v27 }
  0x73   :  { %1033 = vmatpush1.bf16.msra.mxu0 %v3783_v2  ;;  %1074 = vmatpush1.bf16.msra.mxu1 %v3787_v48  ;;  %5340 = vst [vmem:[#allocation99_spill] sm:$0xff] %v3816_v34  ;;  %v213_v48 = vld [vmem:[#allocation8 + $0x198] sm:$0xff]  ;;  %5342 = vst [vmem:[#allocation101_spill] sm:$0xff] %v3823_v56 }
  0x74   :  { %1034 = vmatprep.subr.bf16.mxu0 %v3789_v49  ;;  %1075 = vmatprep.subr.bf16.mxu1 %v3792_v0  ;;  %5339 = vst [vmem:[#allocation98_spill] sm:$0xff] %v3813_v17  ;;  %v212_v0 = vld [vmem:[#allocation8 + $0x190] sm:$0xff]  ;;  %v217_v2 = vld [vmem:[#allocation8 + $0x1b8] sm:$0xff]  ;;  %5341 = vst [vmem:[#allocation100_spill] sm:$0xff] %v3819_v57 }
  0x75   :  { %v216_v49 = vld [vmem:[#allocation8 + $0x1b0] sm:$0xff]  ;;  %v3828_v14 = vcombine.high %v213_v48, %v217_v2  ;;  %v3835_v18 = vcombine.low %v213_v48, %v217_v2 }
  0x76   :  { %v3825_v33 = vcombine.high %v212_v0, %v216_v49  ;;  %v3831_v27 = vcombine.low %v212_v0, %v216_v49 }
  0x77   :  { %1035 = vmatpush1.bf16.msra.mxu0 %v3795_v50  ;;  %1076 = vmatpush1.bf16.msra.mxu1 %v3799_v43  ;;  %5344 = vst [vmem:[#allocation103_spill] sm:$0xff] %v3828_v14  ;;  %v221_v43 = vld [vmem:[#allocation8 + $0x1d8] sm:$0xff]  ;;  %5346 = vst [vmem:[#allocation105_spill] sm:$0xff] %v3835_v18 }
  0x78   :  { %1036 = vmatprep.subr.bf16.mxu0 %v3801_v59  ;;  %1077 = vmatprep.subr.bf16.mxu1 %v3804_v3  ;;  %5343 = vst [vmem:[#allocation102_spill] sm:$0xff] %v3825_v33  ;;  %v220_v3 = vld [vmem:[#allocation8 + $0x1d0] sm:$0xff]  ;;  %v225_v50 = vld [vmem:[#allocation8 + $0x1f8] sm:$0xff]  ;;  %5345 = vst [vmem:[#allocation104_spill] sm:$0xff] %v3831_v27 }
  0x79   :  { %v224_v59 = vld [vmem:[#allocation8 + $0x1f0] sm:$0xff]  ;;  %v3840_v32 = vcombine.high %v221_v43, %v225_v50  ;;  %v3847_v2 = vcombine.low %v221_v43, %v225_v50 }
  0x7a   :  { %v3837_v16 = vcombine.high %v220_v3, %v224_v59  ;;  %v3843_v0 = vcombine.low %v220_v3, %v224_v59 }
  0x7b   :  { %1037 = vmatpush1.bf16.msra.mxu0 %v3807_v5  ;;  %1078 = vmatpush1.bf16.msra.mxu1 %v3811_v1  ;;  %5348 = vst [vmem:[#allocation107_spill] sm:$0xff] %v3840_v32  ;;  %v229_v1 = vld [vmem:[#allocation8 + $0x218] sm:$0xff]  ;;  %5350 = vst [vmem:[#allocation109_spill] sm:$0xff] %v3847_v2 }
  0x7c   :  { %1038 = vmatprep.subr.bf16.mxu0 %v3813_v17  ;;  %1079 = vmatprep.subr.bf16.mxu1 %v3816_v34  ;;  %5347 = vst [vmem:[#allocation106_spill] sm:$0xff] %v3837_v16  ;;  %v228_v34 = vld [vmem:[#allocation8 + $0x210] sm:$0xff]  ;;  %v233_v5 = vld [vmem:[#allocation8 + $0x238] sm:$0xff]  ;;  %5349 = vst [vmem:[#allocation108_spill] sm:$0xff] %v3843_v0 }
  0x7d   :  { %v232_v17 = vld [vmem:[#allocation8 + $0x230] sm:$0xff]  ;;  %v3852_v49 = vcombine.high %v229_v1, %v233_v5  ;;  %v3859_v50 = vcombine.low %v229_v1, %v233_v5 }
  0x7e   :  { %v3849_v48 = vcombine.high %v228_v34, %v232_v17  ;;  %v3855_v59 = vcombine.low %v228_v34, %v232_v17 }
  0x7f   :  { %1039 = vmatpush1.bf16.msra.mxu0 %v3819_v57  ;;  %1080 = vmatpush1.bf16.msra.mxu1 %v3823_v56  ;;  %5352 = vst [vmem:[#allocation111_spill] sm:$0xff] %v3852_v49  ;;  %v237_v56 = vld [vmem:[#allocation8 + $0x258] sm:$0xff]  ;;  %5354 = vst [vmem:[#allocation113_spill] sm:$0xff] %v3859_v50 }
  0x80   :  { %1040 = vmatprep.subr.bf16.mxu0 %v3825_v33  ;;  %1081 = vmatprep.subr.bf16.mxu1 %v3828_v14  ;;  %5351 = vst [vmem:[#allocation110_spill] sm:$0xff] %v3849_v48  ;;  %v236_v14 = vld [vmem:[#allocation8 + $0x250] sm:$0xff]  ;;  %v241_v57 = vld [vmem:[#allocation8 + $0x278] sm:$0xff]  ;;  %5353 = vst [vmem:[#allocation112_spill] sm:$0xff] %v3855_v59 }
  0x81   :  { %v240_v33 = vld [vmem:[#allocation8 + $0x270] sm:$0xff]  ;;  %v3864_v3 = vcombine.high %v237_v56, %v241_v57  ;;  %v3871_v5 = vcombine.low %v237_v56, %v241_v57 }
  0x82   :  { %v3861_v43 = vcombine.high %v236_v14, %v240_v33  ;;  %v3867_v17 = vcombine.low %v236_v14, %v240_v33 }
  0x83   :  { %1041 = vmatpush1.bf16.msra.mxu0 %v3831_v27  ;;  %1082 = vmatpush1.bf16.msra.mxu1 %v3835_v18  ;;  %5356 = vst [vmem:[#allocation115_spill] sm:$0xff] %v3864_v3  ;;  %v245_v18 = vld [vmem:[#allocation8 + $0x298] sm:$0xff]  ;;  %5358 = vst [vmem:[#allocation117_spill] sm:$0xff] %v3871_v5 }
  0x84   :  { %1042 = vmatprep.subr.bf16.mxu0 %v3837_v16  ;;  %1083 = vmatprep.subr.bf16.mxu1 %v3840_v32  ;;  %5355 = vst [vmem:[#allocation114_spill] sm:$0xff] %v3861_v43  ;;  %v244_v32 = vld [vmem:[#allocation8 + $0x290] sm:$0xff]  ;;  %v249_v27 = vld [vmem:[#allocation8 + $0x2b8] sm:$0xff]  ;;  %5357 = vst [vmem:[#allocation116_spill] sm:$0xff] %v3867_v17 }
  0x85   :  { %v248_v16 = vld [vmem:[#allocation8 + $0x2b0] sm:$0xff]  ;;  %v3876_v34 = vcombine.high %v245_v18, %v249_v27  ;;  %v3883_v57 = vcombine.low %v245_v18, %v249_v27 }
  0x86   :  { %v3873_v1 = vcombine.high %v244_v32, %v248_v16  ;;  %v3879_v33 = vcombine.low %v244_v32, %v248_v16 }
  0x87   :  { %1043 = vmatpush1.bf16.msra.mxu0 %v3843_v0  ;;  %1084 = vmatpush1.bf16.msra.mxu1 %v3847_v2  ;;  %5360 = vst [vmem:[#allocation119_spill] sm:$0xff] %v3876_v34  ;;  %v253_v2 = vld [vmem:[#allocation8 + $0x2d8] sm:$0xff]  ;;  %5362 = vst [vmem:[#allocation121_spill] sm:$0xff] %v3883_v57 }
  0x88   :  { %1044 = vmatprep.subr.bf16.mxu0 %v3849_v48  ;;  %1085 = vmatprep.subr.bf16.mxu1 %v3852_v49  ;;  %5359 = vst [vmem:[#allocation118_spill] sm:$0xff] %v3873_v1  ;;  %v252_v49 = vld [vmem:[#allocation8 + $0x2d0] sm:$0xff]  ;;  %v257_v0 = vld [vmem:[#allocation8 + $0x2f8] sm:$0xff]  ;;  %5361 = vst [vmem:[#allocation120_spill] sm:$0xff] %v3879_v33 }
  0x89   :  { %v256_v48 = vld [vmem:[#allocation8 + $0x2f0] sm:$0xff]  ;;  %v3888_v14 = vcombine.high %v253_v2, %v257_v0  ;;  %v3895_v27 = vcombine.low %v253_v2, %v257_v0 }
  0x8a   :  { %v3885_v56 = vcombine.high %v252_v49, %v256_v48  ;;  %v3891_v16 = vcombine.low %v252_v49, %v256_v48 }
  0x8b   :  { %1045 = vmatpush1.bf16.msra.mxu0 %v3855_v59  ;;  %1086 = vmatpush1.bf16.msra.mxu1 %v3859_v50  ;;  %5364 = vst [vmem:[#allocation123_spill] sm:$0xff] %v3888_v14  ;;  %v261_v50 = vld [vmem:[#allocation8 + $0x318] sm:$0xff]  ;;  %5366 = vst [vmem:[#allocation125_spill] sm:$0xff] %v3895_v27 }
  0x8c   :  { %1046 = vmatprep.subr.bf16.mxu0 %v3861_v43  ;;  %1087 = vmatprep.subr.bf16.mxu1 %v3864_v3  ;;  %5363 = vst [vmem:[#allocation122_spill] sm:$0xff] %v3885_v56  ;;  %v260_v3 = vld [vmem:[#allocation8 + $0x310] sm:$0xff]  ;;  %v265_v59 = vld [vmem:[#allocation8 + $0x338] sm:$0xff]  ;;  %5365 = vst [vmem:[#allocation124_spill] sm:$0xff] %v3891_v16 }
  0x8d   :  { %v264_v43 = vld [vmem:[#allocation8 + $0x330] sm:$0xff]  ;;  %v3900_v32 = vcombine.high %v261_v50, %v265_v59  ;;  %v3907_v0 = vcombine.low %v261_v50, %v265_v59 }
  0x8e   :  { %v3897_v18 = vcombine.high %v260_v3, %v264_v43  ;;  %v3903_v48 = vcombine.low %v260_v3, %v264_v43 }
  0x8f   :  { %1047 = vmatpush1.bf16.msra.mxu0 %v3867_v17  ;;  %1088 = vmatpush1.bf16.msra.mxu1 %v3871_v5  ;;  %5368 = vst [vmem:[#allocation127_spill] sm:$0xff] %v3900_v32  ;;  %v269_v5 = vld [vmem:[#allocation8 + $0x358] sm:$0xff]  ;;  %5370 = vst [vmem:[#allocation129_spill] sm:$0xff] %v3907_v0 }
  0x90   :  { %1048 = vmatprep.subr.bf16.mxu0 %v3873_v1  ;;  %1089 = vmatprep.subr.bf16.mxu1 %v3876_v34  ;;  %5367 = vst [vmem:[#allocation126_spill] sm:$0xff] %v3897_v18  ;;  %v268_v34 = vld [vmem:[#allocation8 + $0x350] sm:$0xff]  ;;  %v273_v17 = vld [vmem:[#allocation8 + $0x378] sm:$0xff]  ;;  %5369 = vst [vmem:[#allocation128_spill] sm:$0xff] %v3903_v48 }
  0x91   :  { %v272_v1 = vld [vmem:[#allocation8 + $0x370] sm:$0xff]  ;;  %v3912_v49 = vcombine.high %v269_v5, %v273_v17  ;;  %v3919_v59 = vcombine.low %v269_v5, %v273_v17 }
  0x92   :  { %v3909_v2 = vcombine.high %v268_v34, %v272_v1  ;;  %v3915_v43 = vcombine.low %v268_v34, %v272_v1 }
  0x93   :  { %1049 = vmatpush1.bf16.msra.mxu0 %v3879_v33  ;;  %1090 = vmatpush1.bf16.msra.mxu1 %v3883_v57  ;;  %5372 = vst [vmem:[#allocation131_spill] sm:$0xff] %v3912_v49  ;;  %v277_v57 = vld [vmem:[#allocation8 + $0x398] sm:$0xff]  ;;  %5374 = vst [vmem:[#allocation133_spill] sm:$0xff] %v3919_v59 }
  0x94   :  { %1050 = vmatprep.subr.bf16.mxu0 %v3885_v56  ;;  %1091 = vmatprep.subr.bf16.mxu1 %v3888_v14  ;;  %5371 = vst [vmem:[#allocation130_spill] sm:$0xff] %v3909_v2  ;;  %v276_v14 = vld [vmem:[#allocation8 + $0x390] sm:$0xff]  ;;  %v281_v33 = vld [vmem:[#allocation8 + $0x3b8] sm:$0xff]  ;;  %5373 = vst [vmem:[#allocation132_spill] sm:$0xff] %v3915_v43 }
  0x95   :  { %v280_v56 = vld [vmem:[#allocation8 + $0x3b0] sm:$0xff]  ;;  %v3924_v3 = vcombine.high %v277_v57, %v281_v33  ;;  %v3931_v17 = vcombine.low %v277_v57, %v281_v33  ;;  %v5384_v33 = vld [vmem:[#allocation58_spill] sm:$0xff]  ;;  %v5385_v57 = vld [vmem:[#allocation59_spill] sm:$0xff] }
  0x96   :  { %v3921_v50 = vcombine.high %v276_v14, %v280_v56  ;;  %v3927_v1 = vcombine.low %v276_v14, %v280_v56  ;;  %v5386_v14 = vld [vmem:[#allocation60_spill] sm:$0xff] }
  0x97   :  { %1051 = vmatpush1.bf16.msra.mxu0 %v3891_v16  ;;  %1092 = vmatpush1.bf16.msra.mxu1 %v3895_v27  ;;  %5376 = vst [vmem:[#allocation135_spill] sm:$0xff] %v3924_v3  ;;  %v285_v27 = vld [vmem:[#allocation8 + $0x3d8] sm:$0xff]  ;;  %5378 = vst [vmem:[#allocation137_spill] sm:$0xff] %v3931_v17 }
  0x98   :  { %1052 = vmatprep.subr.bf16.mxu0 %v3897_v18  ;;  %1093 = vmatprep.subr.bf16.mxu1 %v3900_v32  ;;  %5375 = vst [vmem:[#allocation134_spill] sm:$0xff] %v3921_v50  ;;  %v284_v32 = vld [vmem:[#allocation8 + $0x3d0] sm:$0xff]  ;;  %v289_v16 = vld [vmem:[#allocation8 + $0x3f8] sm:$0xff]  ;;  %5377 = vst [vmem:[#allocation136_spill] sm:$0xff] %v3927_v1 }
  0x99   :  { %v288_v18 = vld [vmem:[#allocation8 + $0x3f0] sm:$0xff]  ;;  %v3936_v34 = vcombine.high %v285_v27, %v289_v16  ;;  %v3943_v56 = vcombine.low %v285_v27, %v289_v16  ;;  %v5387_v16 = vld [vmem:[#allocation61_spill] sm:$0xff]  ;;  %v5388_v27 = vld [vmem:[#allocation62_spill] sm:$0xff] }
  0x9a   :  { %v3933_v5 = vcombine.high %v284_v32, %v288_v18 }
  0x9b   :  { %1053 = vmatpush1.bf16.msra.mxu0 %v3903_v48  ;;  %1094 = vmatpush1.bf16.msra.mxu1 %v3907_v0  ;;  %5380 = vst [vmem:[#allocation139_spill] sm:$0xff] %v3936_v34  ;;  %5382 = vst [vmem:[#allocation141_spill] sm:$0xff] %v3943_v56 }
  0x9c   :  { %1054 = vmatprep.subr.bf16.mxu0 %v3909_v2  ;;  %1095 = vmatprep.subr.bf16.mxu1 %v3912_v49  ;;  %5379 = vst [vmem:[#allocation138_spill] sm:$0xff] %v3933_v5  ;;  %v3939_v49 = vcombine.low %v284_v32, %v288_v18  ;;  %v5389_v18 = vld [vmem:[#allocation63_spill] sm:$0xff]  ;;  %v5390_v32 = vld [vmem:[#allocation64_spill] sm:$0xff] }
  0x9e   :  { %5381 = vst [vmem:[#allocation140_spill] sm:$0xff] %v3939_v49 }
  0x9f   :  { %1055 = vmatpush1.bf16.msra.mxu0 %v3915_v43  ;;  %1096 = vmatpush1.bf16.msra.mxu1 %v3919_v59 }
  0xa0   :  { %1056 = vmatprep.subr.bf16.mxu0 %v3921_v50  ;;  %1097 = vmatprep.subr.bf16.mxu1 %v3924_v3 }
  0xa3   :  { %1057 = vmatpush1.bf16.msra.mxu0 %v3927_v1  ;;  %1098 = vmatpush1.bf16.msra.mxu1 %v3931_v17 }
  0xa4   :  { %1058 = vmatprep.subr.bf16.mxu0 %v3933_v5  ;;  %1099 = vmatprep.subr.bf16.mxu1 %v3936_v34 }
  0xa7   :  { %1059 = vmatpush1.bf16.msra.mxu0 %v3939_v49  ;;  %1100 = vmatpush1.bf16.msra.mxu1 %v3943_v56 }
  0xa8   :  { %1194 = vmatprep.subr.bf16.mxu0 %v3536_v4  ;;  %1235 = vmatprep.subr.bf16.mxu1 %v3540_v9 }
  0xaa   :  { %1061 = vmatmul.mubr.bf16.vlgmr.msra.gmra.mrb[4].mxu0 %v5324_v58  ;;  %1102 = vmatmul.mubr.bf16.vlgmr.msra.gmra.mrb[4].mxu1 %v5324_v58  ;;  %v5383_v58 = vld [vmem:[#allocation57_spill] sm:$0xff] }
  0xab   :  { %1195 = vmatpush1.bf16.msra.mxu0 %v3538_v6  ;;  %1236 = vmatpush1.bf16.msra.mxu1 %v3542_v10 }
  0xac   :  { %1196 = vmatprep.subr.bf16.mxu0 %v3544_v11  ;;  %1237 = vmatprep.subr.bf16.mxu1 %v3547_v15 }
  0xaf   :  { %1197 = vmatpush1.bf16.msra.mxu0 %v3551_v19  ;;  %1238 = vmatpush1.bf16.msra.mxu1 %v3555_v20 }
  0xb0   :  { %1198 = vmatprep.subr.bf16.mxu0 %v3557_v21  ;;  %1239 = vmatprep.subr.bf16.mxu1 %v3560_v22 }
  0xb3   :  { %1199 = vmatpush1.bf16.msra.mxu0 %v3563_v28  ;;  %1240 = vmatpush1.bf16.msra.mxu1 %v3567_v29 }
  0xb4   :  { %1200 = vmatprep.subr.bf16.mxu0 %v3569_v30  ;;  %1241 = vmatprep.subr.bf16.mxu1 %v3572_v31 }
  0xb7   :  { %1201 = vmatpush1.bf16.msra.mxu0 %v3575_v36  ;;  %1242 = vmatpush1.bf16.msra.mxu1 %v3579_v37 }
  0xb8   :  { %1202 = vmatprep.subr.bf16.mxu0 %v3581_v38  ;;  %1243 = vmatprep.subr.bf16.mxu1 %v3584_v39 }
  0xbb   :  { %1203 = vmatpush1.bf16.msra.mxu0 %v3587_v44  ;;  %1244 = vmatpush1.bf16.msra.mxu1 %v3591_v45 }
  0xbc   :  { %1204 = vmatprep.subr.bf16.mxu0 %v3593_v46  ;;  %1245 = vmatprep.subr.bf16.mxu1 %v3596_v47 }
  0xbf   :  { %1205 = vmatpush1.bf16.msra.mxu0 %v3599_v52  ;;  %1246 = vmatpush1.bf16.msra.mxu1 %v3603_v53 }
  0xc0   :  { %1206 = vmatprep.subr.bf16.mxu0 %v3605_v54  ;;  %1247 = vmatprep.subr.bf16.mxu1 %v3608_v55 }
  0xc3   :  { %1207 = vmatpush1.bf16.msra.mxu0 %v3611_v60  ;;  %1248 = vmatpush1.bf16.msra.mxu1 %v3615_v61 }
  0xc4   :  { %1208 = vmatprep.subr.bf16.mxu0 %v3617_v62  ;;  %1249 = vmatprep.subr.bf16.mxu1 %v3620_v63  ;;  %v113_v63 = vpop.permute.xlu0 %112 }
  0xc7   :  { %1209 = vmatpush1.bf16.msra.mxu0 %v3623_v7  ;;  %1250 = vmatpush1.bf16.msra.mxu1 %v3627_v8 }
  0xc8   :  { %1210 = vmatprep.subr.bf16.mxu0 %v3629_v12  ;;  %1251 = vmatprep.subr.bf16.mxu1 %v3632_v13 }
  0xcb   :  { %1211 = vmatpush1.bf16.msra.mxu0 %v3635_v23  ;;  %1252 = vmatpush1.bf16.msra.mxu1 %v3639_v24 }
  0xcc   :  { %1212 = vmatprep.subr.bf16.mxu0 %v3641_v25  ;;  %1253 = vmatprep.subr.bf16.mxu1 %v3644_v26  ;;  %v294_v25 = vld [vmem:[#allocation5] sm:$0xff] }
  0xcd   :  { %v298_v24 = vunpack.c.l.bf16 %v294_v25  ;;  %v299_v23 = vunpack.c.h.bf16 %v294_v25 }
  0xcf   :  { %1213 = vmatpush1.bf16.msra.mxu0 %v3647_v35  ;;  %1254 = vmatpush1.bf16.msra.mxu1 %v3651_v40 }
  0xd0   :  { %1214 = vmatprep.subr.bf16.mxu0 %v3653_v41  ;;  %1255 = vmatprep.subr.bf16.mxu1 %v3656_v42  ;;  %v5391_v41 = vld [vmem:[#allocation65_spill] sm:$0xff]  ;;  %v5392_v42 = vld [vmem:[#allocation66_spill] sm:$0xff] }
  0xd3   :  { %1215 = vmatpush1.bf16.msra.mxu0 %v3659_v51  ;;  %1256 = vmatpush1.bf16.msra.mxu1 %v5383_v58  ;;  %v5393_v51 = vld [vmem:[#allocation67_spill] sm:$0xff]  ;;  %v5394_v58 = vld [vmem:[#allocation68_spill] sm:$0xff] }
  0xd4   :  { %1216 = vmatprep.subr.bf16.mxu0 %v5384_v33  ;;  %1257 = vmatprep.subr.bf16.mxu1 %v5385_v57  ;;  %v5395_v33 = vld [vmem:[#allocation69_spill] sm:$0xff]  ;;  %v5396_v57 = vld [vmem:[#allocation70_spill] sm:$0xff] }
  0xd7   :  { %1217 = vmatpush1.bf16.msra.mxu0 %v5386_v14  ;;  %1258 = vmatpush1.bf16.msra.mxu1 %v5387_v16  ;;  %v5397_v14 = vld [vmem:[#allocation71_spill] sm:$0xff]  ;;  %v5398_v16 = vld [vmem:[#allocation72_spill] sm:$0xff] }
  0xd8   :  { %1218 = vmatprep.subr.bf16.mxu0 %v5388_v27  ;;  %1259 = vmatprep.subr.bf16.mxu1 %v5389_v18  ;;  %v5399_v27 = vld [vmem:[#allocation73_spill] sm:$0xff]  ;;  %v5400_v18 = vld [vmem:[#allocation74_spill] sm:$0xff] }
  0xdb   :  { %1219 = vmatpush1.bf16.msra.mxu0 %v5390_v32  ;;  %1260 = vmatpush1.bf16.msra.mxu1 %v5391_v41  ;;  %v5401_v32 = vld [vmem:[#allocation75_spill] sm:$0xff]  ;;  %v5402_v41 = vld [vmem:[#allocation76_spill] sm:$0xff] }
  0xdc   :  { %1220 = vmatprep.subr.bf16.mxu0 %v5392_v42  ;;  %1261 = vmatprep.subr.bf16.mxu1 %v5393_v51  ;;  %v5403_v42 = vld [vmem:[#allocation77_spill] sm:$0xff]  ;;  %v5404_v51 = vld [vmem:[#allocation78_spill] sm:$0xff] }
  0xdf   :  { %1221 = vmatpush1.bf16.msra.mxu0 %v5394_v58  ;;  %1262 = vmatpush1.bf16.msra.mxu1 %v5395_v33  ;;  %v5405_v58 = vld [vmem:[#allocation79_spill] sm:$0xff] }
  0xe0   :  { %1222 = vmatprep.subr.bf16.mxu0 %v5396_v57  ;;  %1263 = vmatprep.subr.bf16.mxu1 %v5397_v14 }
  0xe3   :  { %1223 = vmatpush1.bf16.msra.mxu0 %v5398_v16  ;;  %1264 = vmatpush1.bf16.msra.mxu1 %v5399_v27 }
  0xe4   :  { %1224 = vmatprep.subr.bf16.mxu0 %v5400_v18  ;;  %1265 = vmatprep.subr.bf16.mxu1 %v5401_v32  ;;  %v295_v18 = vld [vmem:[#allocation5 + $0x8] sm:$0xff] }
  0xe5   :  { %v300_v32 = vunpack.c.l.bf16 %v295_v18 }
  0xe7   :  { %1225 = vmatpush1.bf16.msra.mxu0 %v5402_v41  ;;  %1266 = vmatpush1.bf16.msra.mxu1 %v5403_v42  ;;  %v301_v41 = vunpack.c.h.bf16 %v295_v18  ;;  %v52_v18 = vld [vmem:[%s4981_s1 + $0x30] sm:$0xff] }
  0xe8   :  { %1276 = vmatprep.subr.bf16.mxu0 %v5404_v51  ;;  %1317 = vmatprep.subr.bf16.mxu1 %v5405_v58  ;;  %v103_v51 = vld [vmem:[%s4982_s2 + $0x8] sm:$0xff] }
  0xe9   :  { %117 = vperm.xlu1 %3147, %v103_v51  }
 0x13d   :  { %v980_v33 = vpop.f32.mrb[0].mxu0  ;;  %v1021_v57 = vpop.f32.mrb[0].mxu1 }
 0x13e   :  { %v982_v40 = vpop.f32.mrb[1].mxu0  ;;  %v1023_v14 = vpop.f32.mrb[1].mxu1  ;;  %v981_v13 = vadd.f32 %v980_v33, %v298_v24  ;;  %v1022_v58 = vadd.f32 %v1021_v57, %v300_v32  ;;  %v48_v24 = vld [vmem:[%s4981_s1 + $0x10] sm:$0xff]  ;;  %v297_v57 = vld [vmem:[#allocation5 + $0x18] sm:$0xff] }
 0x13f   :  { %v984_v35 = vpop.f32.mrb[2].mxu0  ;;  %v1025_v16 = vpop.f32.mrb[2].mxu1  ;;  %v983_v42 = vadd.f32 %v982_v40, %v299_v23  ;;  %v49_v23 = vld [vmem:[%s4981_s1 + $0x18] sm:$0xff] }
 0x140   :  { %v985_v26 = vpop.f32.mrb[3].mxu0  ;;  %v1026_v27 = vpop.f32.mrb[3].mxu1  ;;  %v47_v35 = vld [vmem:[%s4981_s1 + $0x8] sm:$0xff]  ;;  %v3073_v16 = vmul.f32 -1.442695, %v981_v13  ;;  %v50_v13 = vld [vmem:[%s4981_s1 + $0x20] sm:$0xff] }
 0x141   :  { %v1024_v26 = vadd.f32 %v1023_v14, %v301_v41  ;;  %v3075_v27 = vmul.f32 -1.442695, %v1022_v58  ;;  %61 = vperm.xlu1 %3147, %v47_v35   ;;  %v3074_v12 = vmul.f32 -1.442695, %v983_v42  ;;  %v51_v41 = vld [vmem:[%s4981_s1 + $0x28] sm:$0xff]  ;;  %v296_v58 = vld [vmem:[#allocation5 + $0x10] sm:$0xff] }
 0x142   :  { %3148 = vpow2.f32 %v3073_v16  ;;  %v302_v35 = vunpack.c.l.bf16 %v296_v58  ;;  %v304_v16 = vunpack.c.l.bf16 %v297_v57  ;;  %s3482_s1 = smov [#allocation10]  }
 0x143   :  { %v3076_v25 = vmul.f32 -1.442695, %v1024_v26  ;;  %3150 = vpow2.f32 %v3075_v27  ;;  %v303_v27 = vunpack.c.h.bf16 %v296_v58 }
 0x144   :  { %3152 = vpow2.f32 %v3074_v12 }
 0x145   :  { %66 = vperm.xlu1 %3147, %v48_v24   ;;  %3154 = vpow2.f32 %v3076_v25  ;;  %v305_v24 = vunpack.c.h.bf16 %v297_v57 }
 0x149   :  { %71 = vperm.xlu1 %3147, %v49_v23   ;;  %v109_v23 = vld [vmem:[%s4982_s2 + $0x38] sm:$0xff]  ;;  %s2932_s2 = sshll.u32 %s3482_s1, 4  ;;  %s2933_s2 = int_to_ptr.vmem [resolvable:$true] %s2932_s2 }
 0x14a   :  { %s3448_s17 = scalar_lea.vmem %s2933_s2, 1024  ;;  %p3453_p3 = scmp.lt.s32.totalorder %s2933_s2, %s2933_s2 }
 0x14b   :  { %p3449_p2 = scmp.ne.s32.totalorder %s2933_s2, %s3448_s17  ;;  %p3454_p4 = scmp.lt.s32.totalorder %s3448_s17, %s3448_s17 }
 0x14c   :  { %v3149_v40 = vpop.eup %3148 }
 0x14d   :  { %76 = vperm.xlu1 %3147, %v50_v13   ;;  %v3151_v42 = vpop.eup %3150  ;;  %v1116_v33 = vadd.f32 1.0, %v3149_v40  ;;  %p3455_p5 = por %p3454_p4, %p3453_p3 }
 0x14e   :  { %v3153_v51 = vpop.eup %3152  ;;  %v1128_v14 = vadd.f32 1.0, %v3151_v42 }
 0x14f   :  { %v3155_v12 = vpop.eup %3154  ;;  %v1117_v32 = vadd.f32 1.0, %v3153_v51  ;;  %3156 = vrcp.f32 %v1116_v33  ;;  %p3456_p6 = pnand %p3455_p5, %p3449_p2 }
 0x150   :  { %v1129_v26 = vadd.f32 1.0, %v3155_v12  ;;  %3158 = vrcp.f32 %v1128_v14 }
 0x151   :  { %81 = vperm.xlu1 %3147, %v51_v41   ;;  %3160 = vrcp.f32 %v1117_v32 }
 0x152   :  { %3162 = vrcp.f32 %v1129_v26 }
 0x155   :  { %86 = vperm.xlu1 %3147, %v52_v18  }
 0x159   :  { %147 = vperm.xlu1 %3147, %v109_v23   ;;  %v3157_v32 = vpop.eup %3156 }
 0x17d   :  { %v1062_v25 = vpop.f32.mrb[4].mxu0  ;;  %v1103_v40 = vpop.f32.mrb[4].mxu1 }
 0x17e   :  { %v1063_v13 = vadd.f32 %v1062_v25, %v302_v35  ;;  %v1064_v41 = vpop.f32.mrb[5].mxu0  ;;  %v1104_v42 = vadd.f32 %v1103_v40, %v304_v16  ;;  %v1105_v8 = vpop.f32.mrb[5].mxu1 }
 0x17f   :  { %v1065_v51 = vadd.f32 %v1064_v41, %v303_v27  ;;  %v1066_v12 = vpop.f32.mrb[6].mxu0  ;;  %v1106_v58 = vadd.f32 %v1105_v8, %v305_v24  ;;  %v1107_v33 = vpop.f32.mrb[6].mxu1 }
 0x180   :  { %3164 = vtanh.f32 %v1063_v13  ;;  %v1067_v57 = vpop.f32.mrb[7].mxu0  ;;  %v3077_v14 = vmul.f32 -1.442695, %v1104_v42  ;;  %v1108_v18 = vpop.f32.mrb[7].mxu1 }
 0x181   :  { %3166 = vtanh.f32 %v1065_v51  ;;  %v3078_v7 = vmul.f32 -1.442695, %v1106_v58  ;;  %v3159_v35 = vpop.eup %3158  ;;  %v57_v42 = vpop.permute.xlu0 %56 }
 0x182   :  { %3168 = vpow2.f32 %v3077_v14  ;;  %v3161_v25 = vpop.eup %3160  ;;  %v1150_v40 = vmul.f32 0.0, %v3159_v35 }
 0x183   :  { %3170 = vpow2.f32 %v3078_v7  ;;  %v3163_v26 = vpop.eup %3162 }
 0x184   :  { %v1151_v13 = vmul.f32 0.0, %v3163_v26 }
 0x18a   :  { %v3165_v16 = vpop.eup %3164 }
 0x18b   :  { %v3167_v27 = vpop.eup %3166  ;;  %v1152_v41 = vmul.f32 %v3165_v16, %v3157_v32 }
 0x18c   :  { %v1153_v8 = vmul.f32 %v3167_v27, %v3161_v25  ;;  %v3169_v24 = vpop.eup %3168 }
 0x18d   :  { %v1154_v12 = vadd.f32 %v1152_v41, %v1150_v40  ;;  %v3171_v23 = vpop.eup %3170  ;;  %v1142_v51 = vadd.f32 1.0, %v3169_v24  ;;  %v5407_v41 = vld [vmem:[#allocation81_spill] sm:$0xff]  ;;  %v5410_v24 = vld [vmem:[#allocation84_spill] sm:$0xff] }
 0x18e   :  { %v1155_v33 = vadd.f32 %v1153_v8, %v1151_v13  ;;  %v1143_v7 = vadd.f32 1.0, %v3171_v23  ;;  %v5408_v13 = vld [vmem:[#allocation82_spill] sm:$0xff]  ;;  %v5409_v8 = vld [vmem:[#allocation83_spill] sm:$0xff] }
 0x18f   :  { %v4040_v58 = vmul.f32 %v1154_v12, %v57_v42  ;;  %3172 = vrcp.f32 %v1142_v51  ;;  %v5411_v12 = vld [vmem:[#allocation85_spill] sm:$0xff]  ;;  %v5412_v23 = vld [vmem:[#allocation86_spill] sm:$0xff]  ;;  %v5413_v42 = vld [vmem:[#allocation87_spill] sm:$0xff] }
 0x190   :  { %v4042_v57 = vmul.f32 %v1155_v33, %v113_v63  ;;  %v5406_v63 = vld [vmem:[#allocation80_spill] sm:$0xff]  ;;  %v5415_v33 = vld [vmem:[#allocation89_spill] sm:$0xff] }
 0x191   :  { %3174 = vtanh.f32 %v4040_v58  ;;  %v5414_v51 = vld [vmem:[#allocation88_spill] sm:$0xff] }
 0x192   :  { %3176 = vtanh.f32 %v4042_v57 }
 0x193   :  { %3178 = vrcp.f32 %v1143_v7  ;;  %v5416_v7 = vld [vmem:[#allocation90_spill] sm:$0xff] }
 0x199   :  { %v3173_v14 = vpop.eup %3172 }
 0x19b   :  { %v3175_v18 = vpop.eup %3174 }
 0x19c   :  { %v3177_v32 = vpop.eup %3176  ;;  %v1162_v35 = vmul.f32 %v3175_v18, %v3173_v14  ;;  %v5417_v14 = vld [vmem:[#allocation91_spill] sm:$0xff]  ;;  %v5418_v18 = vld [vmem:[#allocation92_spill] sm:$0xff] }
 0x19d   :  { %v3179_v25 = vpop.eup %3178 }
 0x19e   :  { %v1163_v26 = vmul.f32 %v3179_v25, %v3177_v32  ;;  %v4046_v40 = vpack.c.bf16 %v1162_v35, %v1162_v35  ;;  %v5419_v32 = vld [vmem:[#allocation93_spill] sm:$0xff]  ;;  %v5421_v25 = vld [vmem:[#allocation95_spill] sm:$0xff] }
 0x1a0   :  { %v1180_v16 = vpack.c.bf16 %v1163_v26, %v1163_v26  ;;  %v3129_v27 = vpack.c.bf16 %v1163_v26, %v1162_v35  ;;  %v5420_v35 = vld [vmem:[#allocation94_spill] sm:$0xff]  ;;  %v5422_v26 = vld [vmem:[#allocation96_spill] sm:$0xff] }
 0x1a2   :  { %1226 = vmatprep.mubr.bf16.mxu0 %v1180_v16  ;;  %1267 = vmatprep.mubr.bf16.mxu1 %v1180_v16  ;;  %1176 = vst [vmem:[#allocation10] sm:$0xff] %v3129_v27  ;;  %v5424_v27 = vld [vmem:[#allocation98_spill] sm:$0xff] }
 0x1a3   :  { %1227 = vmatmul.mubr.bf16.vlgmr.msra.gmra.mrb[8].mxu0 %v4046_v40  ;;  %1268 = vmatmul.mubr.bf16.vlgmr.msra.gmra.mrb[8].mxu1 %v4046_v40 }
 0x1a4   :  { %1277 = vmatpush1.bf16.msra.mxu0 %v5406_v63  ;;  %1318 = vmatpush1.bf16.msra.mxu1 %v5407_v41 }
 0x1a5   :  { %1308 = vmatprep.mubr.bf16.mxu0 %v1180_v16  ;;  %1349 = vmatprep.mubr.bf16.mxu1 %v1180_v16  ;;  %v5423_v16 = vld [vmem:[#allocation97_spill] sm:$0xff] }
 0x1a6   :  { %1278 = vmatprep.subr.bf16.mxu0 %v5408_v13  ;;  %1319 = vmatprep.subr.bf16.mxu1 %v5409_v8 }
 0x1a8   :  { %1279 = vmatpush1.bf16.msra.mxu0 %v5410_v24  ;;  %1320 = vmatpush1.bf16.msra.mxu1 %v5411_v12 }
 0x1a9   :  { %1280 = vmatprep.subr.bf16.mxu0 %v5412_v23  ;;  %1321 = vmatprep.subr.bf16.mxu1 %v5413_v42 }
 0x1ac   :  { %1281 = vmatpush1.bf16.msra.mxu0 %v5414_v51  ;;  %1322 = vmatpush1.bf16.msra.mxu1 %v5415_v33  ;;  %v5425_v51 = vld [vmem:[#allocation99_spill] sm:$0xff]  ;;  %v5426_v33 = vld [vmem:[#allocation100_spill] sm:$0xff] }
 0x1ad   :  { %1282 = vmatprep.subr.bf16.mxu0 %v5416_v7  ;;  %1323 = vmatprep.subr.bf16.mxu1 %v5417_v14  ;;  %v5427_v7 = vld [vmem:[#allocation101_spill] sm:$0xff]  ;;  %v5428_v14 = vld [vmem:[#allocation102_spill] sm:$0xff] }
 0x1b0   :  { %1283 = vmatpush1.bf16.msra.mxu0 %v5418_v18  ;;  %1324 = vmatpush1.bf16.msra.mxu1 %v5419_v32  ;;  %v5429_v18 = vld [vmem:[#allocation103_spill] sm:$0xff]  ;;  %v5430_v32 = vld [vmem:[#allocation104_spill] sm:$0xff] }
 0x1b1   :  { %1284 = vmatprep.subr.bf16.mxu0 %v5420_v35  ;;  %1325 = vmatprep.subr.bf16.mxu1 %v5421_v25  ;;  %v5431_v35 = vld [vmem:[#allocation105_spill] sm:$0xff]  ;;  %v5432_v25 = vld [vmem:[#allocation106_spill] sm:$0xff] }
 0x1b4   :  { %1285 = vmatpush1.bf16.msra.mxu0 %v5422_v26  ;;  %1326 = vmatpush1.bf16.msra.mxu1 %v5423_v16  ;;  %v5433_v26 = vld [vmem:[#allocation107_spill] sm:$0xff]  ;;  %v5434_v16 = vld [vmem:[#allocation108_spill] sm:$0xff] }
 0x1b5   :  { %1286 = vmatprep.subr.bf16.mxu0 %v5424_v27  ;;  %1327 = vmatprep.subr.bf16.mxu1 %v5425_v51  ;;  %v5435_v27 = vld [vmem:[#allocation109_spill] sm:$0xff]  ;;  %v5436_v51 = vld [vmem:[#allocation110_spill] sm:$0xff] }
 0x1b8   :  { %1287 = vmatpush1.bf16.msra.mxu0 %v5426_v33  ;;  %1328 = vmatpush1.bf16.msra.mxu1 %v5427_v7  ;;  %v5437_v33 = vld [vmem:[#allocation111_spill] sm:$0xff]  ;;  %v5438_v7 = vld [vmem:[#allocation112_spill] sm:$0xff] }
 0x1b9   :  { %1288 = vmatprep.subr.bf16.mxu0 %v5428_v14  ;;  %1329 = vmatprep.subr.bf16.mxu1 %v5429_v18  ;;  %v5439_v14 = vld [vmem:[#allocation113_spill] sm:$0xff]  ;;  %v5440_v18 = vld [vmem:[#allocation114_spill] sm:$0xff] }
 0x1bc   :  { %1289 = vmatpush1.bf16.msra.mxu0 %v5430_v32  ;;  %1330 = vmatpush1.bf16.msra.mxu1 %v5431_v35  ;;  %v5441_v32 = vld [vmem:[#allocation115_spill] sm:$0xff]  ;;  %v5442_v35 = vld [vmem:[#allocation116_spill] sm:$0xff] }
 0x1bd   :  { %1290 = vmatprep.subr.bf16.mxu0 %v5432_v25  ;;  %1331 = vmatprep.subr.bf16.mxu1 %v5433_v26  ;;  %v5443_v25 = vld [vmem:[#allocation117_spill] sm:$0xff]  ;;  %v5444_v26 = vld [vmem:[#allocation118_spill] sm:$0xff] }
 0x1c0   :  { %1291 = vmatpush1.bf16.msra.mxu0 %v5434_v16  ;;  %1332 = vmatpush1.bf16.msra.mxu1 %v5435_v27  ;;  %v5445_v16 = vld [vmem:[#allocation119_spill] sm:$0xff]  ;;  %v5446_v27 = vld [vmem:[#allocation120_spill] sm:$0xff] }
 0x1c1   :  { %1292 = vmatprep.subr.bf16.mxu0 %v5436_v51  ;;  %1333 = vmatprep.subr.bf16.mxu1 %v5437_v33  ;;  %v5447_v51 = vld [vmem:[#allocation121_spill] sm:$0xff]  ;;  %v5448_v33 = vld [vmem:[#allocation122_spill] sm:$0xff] }
 0x1c4   :  { %1293 = vmatpush1.bf16.msra.mxu0 %v5438_v7  ;;  %1334 = vmatpush1.bf16.msra.mxu1 %v5439_v14  ;;  %v5449_v7 = vld [vmem:[#allocation123_spill] sm:$0xff]  ;;  %v5450_v14 = vld [vmem:[#allocation124_spill] sm:$0xff] }
 0x1c5   :  { %1294 = vmatprep.subr.bf16.mxu0 %v5440_v18  ;;  %1335 = vmatprep.subr.bf16.mxu1 %v5441_v32  ;;  %v5451_v18 = vld [vmem:[#allocation125_spill] sm:$0xff]  ;;  %v5452_v32 = vld [vmem:[#allocation126_spill] sm:$0xff] }
 0x1c8   :  { %1295 = vmatpush1.bf16.msra.mxu0 %v5442_v35  ;;  %1336 = vmatpush1.bf16.msra.mxu1 %v5443_v25  ;;  %v5453_v35 = vld [vmem:[#allocation127_spill] sm:$0xff] }
 0x1c9   :  { %1296 = vmatprep.subr.bf16.mxu0 %v5444_v26  ;;  %1337 = vmatprep.subr.bf16.mxu1 %v5445_v16 }
 0x1cc   :  { %1297 = vmatpush1.bf16.msra.mxu0 %v5446_v27  ;;  %1338 = vmatpush1.bf16.msra.mxu1 %v5447_v51  ;;  %v5454_v27 = vld [vmem:[#allocation131_spill] sm:$0xff] }
 0x1cd   :  { %1298 = vmatprep.subr.bf16.mxu0 %v5448_v33  ;;  %1339 = vmatprep.subr.bf16.mxu1 %v5449_v7 }
 0x1d0   :  { %1299 = vmatpush1.bf16.msra.mxu0 %v5450_v14  ;;  %1340 = vmatpush1.bf16.msra.mxu1 %v5451_v18 }
 0x1d1   :  { %1300 = vmatprep.subr.bf16.mxu0 %v5452_v32  ;;  %1341 = vmatprep.subr.bf16.mxu1 %v5453_v35 }
 0x1d4   :  { %1301 = vmatpush1.bf16.msra.mxu0 %v3903_v48  ;;  %1342 = vmatpush1.bf16.msra.mxu1 %v3907_v0 }
 0x1d5   :  { %1302 = vmatprep.subr.bf16.mxu0 %v3909_v2  ;;  %1343 = vmatprep.subr.bf16.mxu1 %v5454_v27 }
 0x1d8   :  { %1303 = vmatpush1.bf16.msra.mxu0 %v3915_v43  ;;  %1344 = vmatpush1.bf16.msra.mxu1 %v3919_v59 }
 0x1d9   :  { %1304 = vmatprep.subr.bf16.mxu0 %v3921_v50  ;;  %1345 = vmatprep.subr.bf16.mxu1 %v3924_v3 }
 0x1dc   :  { %1305 = vmatpush1.bf16.msra.mxu0 %v3927_v1  ;;  %1346 = vmatpush1.bf16.msra.mxu1 %v3931_v17 }
 0x1dd   :  { %1306 = vmatprep.subr.bf16.mxu0 %v3933_v5  ;;  %1347 = vmatprep.subr.bf16.mxu1 %v3936_v34 }
 0x1e0   :  { %1307 = vmatpush1.bf16.msra.mxu0 %v3939_v49  ;;  %1348 = vmatpush1.bf16.msra.mxu1 %v3943_v56 }
 0x1e1   :  { %1444 = vmatprep.subr.bf16.mxu0 %v3536_v4  ;;  %1485 = vmatprep.subr.bf16.mxu1 %v3540_v9 }
 0x1e3   :  { %1309 = vmatmul.mubr.bf16.vlgmr.msra.gmra.mrb[12].mxu0 %v4046_v40  ;;  %1350 = vmatmul.mubr.bf16.vlgmr.msra.gmra.mrb[12].mxu1 %v4046_v40  ;;  %v5455_v40 = vld [vmem:[#allocation43_spill] sm:$0xff] }
 0x1e4   :  { %1445 = vmatpush1.bf16.msra.mxu0 %v3538_v6  ;;  %1486 = vmatpush1.bf16.msra.mxu1 %v3542_v10 }
 0x1e5   :  { %1446 = vmatprep.subr.bf16.mxu0 %v3544_v11  ;;  %1487 = vmatprep.subr.bf16.mxu1 %v3547_v15 }
 0x1e8   :  { %1447 = vmatpush1.bf16.msra.mxu0 %v3551_v19  ;;  %1488 = vmatpush1.bf16.msra.mxu1 %v3555_v20  ;;  %v1185_v20 = vld [vmem:[#allocation5 + $0x38] sm:$0xff] }
 0x1e9   :  { %1448 = vmatprep.subr.bf16.mxu0 %v3557_v21  ;;  %1489 = vmatprep.subr.bf16.mxu1 %v3560_v22 }
 0x1ec   :  { %1449 = vmatpush1.bf16.msra.mxu0 %v3563_v28  ;;  %1490 = vmatpush1.bf16.msra.mxu1 %v3567_v29 }
 0x1ed   :  { %1450 = vmatprep.subr.bf16.mxu0 %v3569_v30  ;;  %1491 = vmatprep.subr.bf16.mxu1 %v3572_v31 }
 0x1f0   :  { %1451 = vmatpush1.bf16.msra.mxu0 %v3575_v36  ;;  %1492 = vmatpush1.bf16.msra.mxu1 %v3579_v37  ;;  %v1182_v37 = vld [vmem:[#allocation5 + $0x20] sm:$0xff] }
 0x1f1   :  { %1452 = vmatprep.subr.bf16.mxu0 %v3581_v38  ;;  %1493 = vmatprep.subr.bf16.mxu1 %v3584_v39  ;;  %v1186_v36 = vunpack.c.l.bf16 %v1182_v37  ;;  %v1187_v31 = vunpack.c.h.bf16 %v1182_v37 }
 0x1f4   :  { %1453 = vmatpush1.bf16.msra.mxu0 %v3587_v44  ;;  %1494 = vmatpush1.bf16.msra.mxu1 %v3591_v45  ;;  %v5456_v45 = vld [vmem:[#allocation44_spill] sm:$0xff] }
 0x1f5   :  { %1454 = vmatprep.subr.bf16.mxu0 %v3593_v46  ;;  %1495 = vmatprep.subr.bf16.mxu1 %v3596_v47  ;;  %v5457_v46 = vld [vmem:[#allocation45_spill] sm:$0xff]  ;;  %v5458_v47 = vld [vmem:[#allocation46_spill] sm:$0xff] }
 0x1f8   :  { %1455 = vmatpush1.bf16.msra.mxu0 %v3599_v52  ;;  %1496 = vmatpush1.bf16.msra.mxu1 %v3603_v53  ;;  %v5459_v52 = vld [vmem:[#allocation47_spill] sm:$0xff]  ;;  %v5460_v53 = vld [vmem:[#allocation48_spill] sm:$0xff] }
 0x1f9   :  { %1456 = vmatprep.subr.bf16.mxu0 %v3605_v54  ;;  %1497 = vmatprep.subr.bf16.mxu1 %v3608_v55  ;;  %v5461_v54 = vld [vmem:[#allocation49_spill] sm:$0xff]  ;;  %v5462_v55 = vld [vmem:[#allocation50_spill] sm:$0xff] }
 0x1fc   :  { %1457 = vmatpush1.bf16.msra.mxu0 %v3611_v60  ;;  %1498 = vmatpush1.bf16.msra.mxu1 %v3615_v61  ;;  %v5463_v60 = vld [vmem:[#allocation51_spill] sm:$0xff]  ;;  %v5464_v61 = vld [vmem:[#allocation52_spill] sm:$0xff] }
 0x1fd   :  { %1458 = vmatprep.subr.bf16.mxu0 %v3617_v62  ;;  %1499 = vmatprep.subr.bf16.mxu1 %v5455_v40  ;;  %v5465_v62 = vld [vmem:[#allocation53_spill] sm:$0xff]  ;;  %v5466_v40 = vld [vmem:[#allocation54_spill] sm:$0xff] }
 0x200   :  { %1459 = vmatpush1.bf16.msra.mxu0 %v5456_v45  ;;  %1500 = vmatpush1.bf16.msra.mxu1 %v5457_v46  ;;  %v5467_v45 = vld [vmem:[#allocation55_spill] sm:$0xff]  ;;  %v5468_v46 = vld [vmem:[#allocation56_spill] sm:$0xff] }
 0x201   :  { %1460 = vmatprep.subr.bf16.mxu0 %v5458_v47  ;;  %1501 = vmatprep.subr.bf16.mxu1 %v5459_v52  ;;  %v5469_v47 = vld [vmem:[#allocation57_spill] sm:$0xff]  ;;  %v5470_v52 = vld [vmem:[#allocation58_spill] sm:$0xff] }
 0x204   :  { %1461 = vmatpush1.bf16.msra.mxu0 %v5460_v53  ;;  %1502 = vmatpush1.bf16.msra.mxu1 %v5461_v54  ;;  %v5471_v53 = vld [vmem:[#allocation59_spill] sm:$0xff]  ;;  %v5472_v54 = vld [vmem:[#allocation60_spill] sm:$0xff] }
 0x205   :  { %1462 = vmatprep.subr.bf16.mxu0 %v5462_v55  ;;  %1503 = vmatprep.subr.bf16.mxu1 %v5463_v60  ;;  %v5473_v55 = vld [vmem:[#allocation61_spill] sm:$0xff]  ;;  %v5474_v60 = vld [vmem:[#allocation62_spill] sm:$0xff] }
 0x208   :  { %1463 = vmatpush1.bf16.msra.mxu0 %v5464_v61  ;;  %1504 = vmatpush1.bf16.msra.mxu1 %v5465_v62  ;;  %v5475_v61 = vld [vmem:[#allocation63_spill] sm:$0xff]  ;;  %v5476_v62 = vld [vmem:[#allocation64_spill] sm:$0xff] }
 0x209   :  { %1464 = vmatprep.subr.bf16.mxu0 %v5466_v40  ;;  %1505 = vmatprep.subr.bf16.mxu1 %v5467_v45  ;;  %v5477_v40 = vld [vmem:[#allocation65_spill] sm:$0xff]  ;;  %v5478_v45 = vld [vmem:[#allocation66_spill] sm:$0xff] }
 0x20c   :  { %1465 = vmatpush1.bf16.msra.mxu0 %v5468_v46  ;;  %1506 = vmatpush1.bf16.msra.mxu1 %v5469_v47  ;;  %v5479_v46 = vld [vmem:[#allocation67_spill] sm:$0xff]  ;;  %v5480_v47 = vld [vmem:[#allocation68_spill] sm:$0xff] }
 0x20d   :  { %1466 = vmatprep.subr.bf16.mxu0 %v5470_v52  ;;  %1507 = vmatprep.subr.bf16.mxu1 %v5471_v53  ;;  %v5481_v52 = vld [vmem:[#allocation69_spill] sm:$0xff]  ;;  %v5482_v53 = vld [vmem:[#allocation70_spill] sm:$0xff] }
 0x210   :  { %1467 = vmatpush1.bf16.msra.mxu0 %v5472_v54  ;;  %1508 = vmatpush1.bf16.msra.mxu1 %v5473_v55  ;;  %v5483_v54 = vld [vmem:[#allocation71_spill] sm:$0xff]  ;;  %v5484_v55 = vld [vmem:[#allocation72_spill] sm:$0xff] }
 0x211   :  { %1468 = vmatprep.subr.bf16.mxu0 %v5474_v60  ;;  %1509 = vmatprep.subr.bf16.mxu1 %v5475_v61  ;;  %v5485_v60 = vld [vmem:[#allocation73_spill] sm:$0xff]  ;;  %v5486_v61 = vld [vmem:[#allocation74_spill] sm:$0xff] }
 0x214   :  { %1469 = vmatpush1.bf16.msra.mxu0 %v5476_v62  ;;  %1510 = vmatpush1.bf16.msra.mxu1 %v5477_v40  ;;  %v5487_v62 = vld [vmem:[#allocation75_spill] sm:$0xff]  ;;  %v5488_v40 = vld [vmem:[#allocation76_spill] sm:$0xff] }
 0x215   :  { %1470 = vmatprep.subr.bf16.mxu0 %v5478_v45  ;;  %1511 = vmatprep.subr.bf16.mxu1 %v5479_v46  ;;  %v5489_v45 = vld [vmem:[#allocation77_spill] sm:$0xff]  ;;  %v5490_v46 = vld [vmem:[#allocation78_spill] sm:$0xff] }
 0x218   :  { %1471 = vmatpush1.bf16.msra.mxu0 %v5480_v47  ;;  %1512 = vmatpush1.bf16.msra.mxu1 %v5481_v52  ;;  %v5491_v47 = vld [vmem:[#allocation79_spill] sm:$0xff] }
 0x219   :  { %1472 = vmatprep.subr.bf16.mxu0 %v5482_v53  ;;  %1513 = vmatprep.subr.bf16.mxu1 %v5483_v54 }
 0x21c   :  { %1473 = vmatpush1.bf16.msra.mxu0 %v5484_v55  ;;  %1514 = vmatpush1.bf16.msra.mxu1 %v5485_v60 }
 0x21d   :  { %1474 = vmatprep.subr.bf16.mxu0 %v5486_v61  ;;  %1515 = vmatprep.subr.bf16.mxu1 %v5487_v62  ;;  %v1183_v61 = vld [vmem:[#allocation5 + $0x28] sm:$0xff] }
 0x21e   :  { %v1188_v62 = vunpack.c.l.bf16 %v1183_v61 }
 0x220   :  { %1475 = vmatpush1.bf16.msra.mxu0 %v5488_v40  ;;  %1516 = vmatpush1.bf16.msra.mxu1 %v5489_v45  ;;  %v1189_v40 = vunpack.c.h.bf16 %v1183_v61 }
 0x221   :  { %1526 = vmatprep.subr.bf16.mxu0 %v5490_v46  ;;  %1567 = vmatprep.subr.bf16.mxu1 %v5491_v47 }
 0x276   :  { %v1228_v52 = vpop.f32.mrb[8].mxu0  ;;  %v1269_v53 = vpop.f32.mrb[8].mxu1 }
 0x277   :  { %v1230_v44 = vpop.f32.mrb[9].mxu0  ;;  %v1271_v54 = vpop.f32.mrb[9].mxu1  ;;  %v1229_v30 = vadd.f32 %v1228_v52, %v1186_v36  ;;  %v1270_v45 = vadd.f32 %v1269_v53, %v1188_v62 }
 0x278   :  { %v1232_v39 = vpop.f32.mrb[10].mxu0  ;;  %v1273_v55 = vpop.f32.mrb[10].mxu1  ;;  %v1231_v29 = vadd.f32 %v1230_v44, %v1187_v31  ;;  %v1272_v46 = vadd.f32 %v1271_v54, %v1189_v40  ;;  %v1192_v31 = vunpack.c.l.bf16 %v1185_v20 }
 0x279   :  { %v1233_v38 = vpop.f32.mrb[11].mxu0  ;;  %v1274_v60 = vpop.f32.mrb[11].mxu1  ;;  %v3080_v28 = vmul.f32 -1.442695, %v1229_v30  ;;  %v3082_v47 = vmul.f32 -1.442695, %v1270_v45  ;;  %v1193_v45 = vunpack.c.h.bf16 %v1185_v20 }
 0x27a   :  { %v3081_v22 = vmul.f32 -1.442695, %v1231_v29  ;;  %v3083_v21 = vmul.f32 -1.442695, %v1272_v46  ;;  %v1184_v60 = vld [vmem:[#allocation5 + $0x30] sm:$0xff] }
 0x27b   :  { %3180 = vpow2.f32 %v3080_v28  ;;  %v1190_v52 = vunpack.c.l.bf16 %v1184_v60  ;;  %v1191_v30 = vunpack.c.h.bf16 %v1184_v60 }
 0x27c   :  { %3182 = vpow2.f32 %v3082_v47 }
 0x27d   :  { %3184 = vpow2.f32 %v3081_v22 }
 0x27e   :  { %3186 = vpow2.f32 %v3083_v21 }
 0x285   :  { %v3181_v38 = vpop.eup %3180 }
 0x286   :  { %v3183_v39 = vpop.eup %3182  ;;  %v1364_v37 = vadd.f32 1.0, %v3181_v38 }
 0x287   :  { %v3185_v55 = vpop.eup %3184  ;;  %v1376_v61 = vadd.f32 1.0, %v3183_v39 }
 0x288   :  { %v3187_v19 = vpop.eup %3186  ;;  %v1365_v36 = vadd.f32 1.0, %v3185_v55  ;;  %3188 = vrcp.f32 %v1364_v37 }
 0x289   :  { %v1377_v44 = vadd.f32 1.0, %v3187_v19  ;;  %3190 = vrcp.f32 %v1376_v61  ;;  %v118_v61 = vpop.permute.xlu1 %117 }
 0x28a   :  { %3192 = vrcp.f32 %v1365_v36 }
 0x28b   :  { %3194 = vrcp.f32 %v1377_v44 }
 0x292   :  { %v3189_v55 = vpop.eup %3188 }
 0x293   :  { %v3191_v60 = vpop.eup %3190 }
 0x294   :  { %v3193_v37 = vpop.eup %3192  ;;  %v1398_v44 = vmul.f32 %v3191_v60, %v4040_v58 }
 0x295   :  { %v3195_v36 = vpop.eup %3194 }
 0x2b6   :  { %v1310_v28 = vpop.f32.mrb[12].mxu0  ;;  %v1351_v29 = vpop.f32.mrb[12].mxu1 }
 0x2b7   :  { %v1311_v21 = vadd.f32 %v1310_v28, %v1190_v52  ;;  %v1352_v22 = vadd.f32 %v1351_v29, %v1192_v31  ;;  %v1312_v46 = vpop.f32.mrb[13].mxu0  ;;  %v1353_v47 = vpop.f32.mrb[13].mxu1  ;;  %v1399_v28 = vmul.f32 %v3195_v36, %v4042_v57  ;;  %v5493_v36 = vld [vmem:[#allocation89_spill] sm:$0xff] }
 0x2b8   :  { %v1313_v53 = vadd.f32 %v1312_v46, %v1191_v30  ;;  %v1354_v54 = vadd.f32 %v1353_v47, %v1193_v45  ;;  %v1314_v62 = vpop.f32.mrb[14].mxu0  ;;  %v1355_v40 = vpop.f32.mrb[14].mxu1 }
 0x2b9   :  { %3196 = vtanh.f32 %v1311_v21  ;;  %v3084_v38 = vmul.f32 -1.442695, %v1352_v22  ;;  %v1315_v39 = vpop.f32.mrb[15].mxu0  ;;  %v1356_v19 = vpop.f32.mrb[15].mxu1 }
 0x2ba   :  { %3198 = vtanh.f32 %v1313_v53  ;;  %v3085_v20 = vmul.f32 -1.442695, %v1354_v54  ;;  %v62_v47 = vpop.permute.xlu1 %61 }
 0x2bb   :  { %3200 = vpow2.f32 %v3084_v38 }
 0x2bc   :  { %3202 = vpow2.f32 %v3085_v20 }
 0x2c3   :  { %v3197_v52 = vpop.eup %3196 }
 0x2c4   :  { %v3199_v31 = vpop.eup %3198  ;;  %v1400_v30 = vmul.f32 %v3197_v52, %v3189_v55  ;;  %v5494_v52 = vld [vmem:[#allocation90_spill] sm:$0xff] }
 0x2c5   :  { %v3201_v45 = vpop.eup %3200  ;;  %v1401_v29 = vmul.f32 %v3199_v31, %v3193_v37  ;;  %v5495_v31 = vld [vmem:[#allocation91_spill] sm:$0xff] }
 0x2c6   :  { %v3203_v21 = vpop.eup %3202  ;;  %v1402_v22 = vadd.f32 %v1400_v30, %v1398_v44  ;;  %v1390_v46 = vadd.f32 1.0, %v3201_v45  ;;  %v5496_v44 = vld [vmem:[#allocation92_spill] sm:$0xff]  ;;  %v5497_v30 = vld [vmem:[#allocation93_spill] sm:$0xff]  ;;  %v5498_v45 = vld [vmem:[#allocation94_spill] sm:$0xff] }
 0x2c7   :  { %v1403_v53 = vadd.f32 %v1401_v29, %v1399_v28  ;;  %v1391_v54 = vadd.f32 1.0, %v3203_v21  ;;  %v5499_v28 = vld [vmem:[#allocation95_spill] sm:$0xff]  ;;  %v5500_v29 = vld [vmem:[#allocation96_spill] sm:$0xff]  ;;  %v5501_v21 = vld [vmem:[#allocation97_spill] sm:$0xff] }
 0x2c8   :  { %v4182_v62 = vmul.f32 %v1402_v22, %v62_v47  ;;  %3204 = vrcp.f32 %v1390_v46  ;;  %v5502_v22 = vld [vmem:[#allocation98_spill] sm:$0xff]  ;;  %v5503_v46 = vld [vmem:[#allocation99_spill] sm:$0xff]  ;;  %v5504_v47 = vld [vmem:[#allocation100_spill] sm:$0xff] }
 0x2c9   :  { %v4184_v40 = vmul.f32 %v1403_v53, %v118_v61  ;;  %3206 = vrcp.f32 %v1391_v54  ;;  %v5492_v61 = vld [vmem:[#allocation88_spill] sm:$0xff]  ;;  %v5505_v53 = vld [vmem:[#allocation101_spill] sm:$0xff]  ;;  %v5506_v54 = vld [vmem:[#allocation102_spill] sm:$0xff] }
 0x2ca   :  { %3208 = vtanh.f32 %v4182_v62 }
 0x2cb   :  { %3210 = vtanh.f32 %v4184_v40 }
 0x2d2   :  { %v3205_v58 = vpop.eup %3204 }
 0x2d3   :  { %v3207_v38 = vpop.eup %3206 }
 0x2d4   :  { %v3209_v57 = vpop.eup %3208 }
 0x2d5   :  { %v3211_v39 = vpop.eup %3210  ;;  %v1411_v19 = vmul.f32 %v3209_v57, %v3205_v58  ;;  %v5507_v58 = vld [vmem:[#allocation103_spill] sm:$0xff]  ;;  %v5509_v57 = vld [vmem:[#allocation105_spill] sm:$0xff] }
 0x2d6   :  { %v1412_v20 = vmul.f32 %v3211_v39, %v3207_v38  ;;  %v5508_v38 = vld [vmem:[#allocation104_spill] sm:$0xff]  ;;  %v5510_v39 = vld [vmem:[#allocation106_spill] sm:$0xff] }
 0x2d7   :  { %v4188_v37 = vpack.c.bf16 %v1411_v19, %v1411_v19 }
 0x2d8   :  { %v1430_v55 = vpack.c.bf16 %v1412_v20, %v1412_v20  ;;  %v3130_v60 = vpack.c.bf16 %v1412_v20, %v1411_v19  ;;  %v5511_v19 = vld [vmem:[#allocation107_spill] sm:$0xff]  ;;  %v5512_v20 = vld [vmem:[#allocation108_spill] sm:$0xff] }
 0x2da   :  { %1476 = vmatprep.mubr.bf16.mxu0 %v1430_v55  ;;  %1517 = vmatprep.mubr.bf16.mxu1 %v1430_v55  ;;  %1426 = vst [vmem:[#allocation10 + $0x8] sm:$0xff] %v3130_v60  ;;  %v5514_v60 = vld [vmem:[#allocation110_spill] sm:$0xff] }
 0x2db   :  { %1477 = vmatmul.mubr.bf16.vlgmr.msra.gmra.mrb[16].mxu0 %v4188_v37  ;;  %1518 = vmatmul.mubr.bf16.vlgmr.msra.gmra.mrb[16].mxu1 %v4188_v37 }
 0x2dc   :  { %1527 = vmatpush1.bf16.msra.mxu0 %v5406_v63  ;;  %1568 = vmatpush1.bf16.msra.mxu1 %v5407_v41 }
 0x2dd   :  { %1558 = vmatprep.mubr.bf16.mxu0 %v1430_v55  ;;  %1599 = vmatprep.mubr.bf16.mxu1 %v1430_v55  ;;  %v5513_v55 = vld [vmem:[#allocation109_spill] sm:$0xff] }
 0x2de   :  { %1528 = vmatprep.subr.bf16.mxu0 %v5408_v13  ;;  %1569 = vmatprep.subr.bf16.mxu1 %v5409_v8 }
 0x2e0   :  { %1529 = vmatpush1.bf16.msra.mxu0 %v5410_v24  ;;  %1570 = vmatpush1.bf16.msra.mxu1 %v5411_v12 }
 0x2e1   :  { %1530 = vmatprep.subr.bf16.mxu0 %v5412_v23  ;;  %1571 = vmatprep.subr.bf16.mxu1 %v5413_v42 }
 0x2e4   :  { %1531 = vmatpush1.bf16.msra.mxu0 %v5492_v61  ;;  %1572 = vmatpush1.bf16.msra.mxu1 %v5493_v36 }
 0x2e5   :  { %1532 = vmatprep.subr.bf16.mxu0 %v5494_v52  ;;  %1573 = vmatprep.subr.bf16.mxu1 %v5495_v31 }
 0x2e8   :  { %1533 = vmatpush1.bf16.msra.mxu0 %v5496_v44  ;;  %1574 = vmatpush1.bf16.msra.mxu1 %v5497_v30 }
 0x2e9   :  { %1534 = vmatprep.subr.bf16.mxu0 %v5498_v45  ;;  %1575 = vmatprep.subr.bf16.mxu1 %v5499_v28 }
 0x2ec   :  { %1535 = vmatpush1.bf16.msra.mxu0 %v5500_v29  ;;  %1576 = vmatpush1.bf16.msra.mxu1 %v5501_v21 }
 0x2ed   :  { %1536 = vmatprep.subr.bf16.mxu0 %v5502_v22  ;;  %1577 = vmatprep.subr.bf16.mxu1 %v5503_v46 }
 0x2f0   :  { %1537 = vmatpush1.bf16.msra.mxu0 %v5504_v47  ;;  %1578 = vmatpush1.bf16.msra.mxu1 %v5505_v53  ;;  %v5515_v47 = vld [vmem:[#allocation111_spill] sm:$0xff]  ;;  %v5516_v53 = vld [vmem:[#allocation112_spill] sm:$0xff] }
 0x2f1   :  { %1538 = vmatprep.subr.bf16.mxu0 %v5506_v54  ;;  %1579 = vmatprep.subr.bf16.mxu1 %v5507_v58  ;;  %v5517_v54 = vld [vmem:[#allocation113_spill] sm:$0xff]  ;;  %v5518_v58 = vld [vmem:[#allocation114_spill] sm:$0xff] }
 0x2f4   :  { %1539 = vmatpush1.bf16.msra.mxu0 %v5508_v38  ;;  %1580 = vmatpush1.bf16.msra.mxu1 %v5509_v57  ;;  %v5519_v38 = vld [vmem:[#allocation115_spill] sm:$0xff]  ;;  %v5520_v57 = vld [vmem:[#allocation116_spill] sm:$0xff] }
 0x2f5   :  { %1540 = vmatprep.subr.bf16.mxu0 %v5510_v39  ;;  %1581 = vmatprep.subr.bf16.mxu1 %v5511_v19 }
 0x2f8   :  { %1541 = vmatpush1.bf16.msra.mxu0 %v5512_v20  ;;  %1582 = vmatpush1.bf16.msra.mxu1 %v5513_v55  ;;  %v5521_v55 = vld [vmem:[#allocation120_spill] sm:$0xff] }
 0x2f9   :  { %1542 = vmatprep.subr.bf16.mxu0 %v5514_v60  ;;  %1583 = vmatprep.subr.bf16.mxu1 %v5515_v47 }
 0x2fc   :  { %1543 = vmatpush1.bf16.msra.mxu0 %v5516_v53  ;;  %1584 = vmatpush1.bf16.msra.mxu1 %v5517_v54 }
 0x2fd   :  { %1544 = vmatprep.subr.bf16.mxu0 %v5518_v58  ;;  %1585 = vmatprep.subr.bf16.mxu1 %v5519_v38 }
 0x300   :  { %1545 = vmatpush1.bf16.msra.mxu0 %v5520_v57  ;;  %1586 = vmatpush1.bf16.msra.mxu1 %v5443_v25 }
 0x301   :  { %1546 = vmatprep.subr.bf16.mxu0 %v5444_v26  ;;  %1587 = vmatprep.subr.bf16.mxu1 %v5445_v16 }
 0x304   :  { %1547 = vmatpush1.bf16.msra.mxu0 %v5521_v55  ;;  %1588 = vmatpush1.bf16.msra.mxu1 %v5447_v51 }
 0x305   :  { %1548 = vmatprep.subr.bf16.mxu0 %v5448_v33  ;;  %1589 = vmatprep.subr.bf16.mxu1 %v5449_v7 }
 0x308   :  { %1549 = vmatpush1.bf16.msra.mxu0 %v5450_v14  ;;  %1590 = vmatpush1.bf16.msra.mxu1 %v5451_v18 }
 0x309   :  { %1550 = vmatprep.subr.bf16.mxu0 %v5452_v32  ;;  %1591 = vmatprep.subr.bf16.mxu1 %v5453_v35  ;;  %v1435_v32 = vld [vmem:[#allocation5 + $0x58] sm:$0xff] }
 0x30c   :  { %1551 = vmatpush1.bf16.msra.mxu0 %v3903_v48  ;;  %1592 = vmatpush1.bf16.msra.mxu1 %v3907_v0 }
 0x30d   :  { %1552 = vmatprep.subr.bf16.mxu0 %v3909_v2  ;;  %1593 = vmatprep.subr.bf16.mxu1 %v5454_v27 }
 0x310   :  { %1553 = vmatpush1.bf16.msra.mxu0 %v3915_v43  ;;  %1594 = vmatpush1.bf16.msra.mxu1 %v3919_v59 }
 0x311   :  { %1554 = vmatprep.subr.bf16.mxu0 %v3921_v50  ;;  %1595 = vmatprep.subr.bf16.mxu1 %v3924_v3  ;;  %v1432_v50 = vld [vmem:[#allocation5 + $0x40] sm:$0xff] }
 0x312   :  { %v1436_v59 = vunpack.c.l.bf16 %v1432_v50  ;;  %v1437_v43 = vunpack.c.h.bf16 %v1432_v50 }
 0x314   :  { %1555 = vmatpush1.bf16.msra.mxu0 %v3927_v1  ;;  %1596 = vmatpush1.bf16.msra.mxu1 %v3931_v17 }
 0x315   :  { %1556 = vmatprep.subr.bf16.mxu0 %v3933_v5  ;;  %1597 = vmatprep.subr.bf16.mxu1 %v3936_v34  ;;  %v5522_v34 = vld [vmem:[#allocation20_spill] sm:$0xff]  ;;  %v5527_v5 = vld [vmem:[#allocation25_spill] sm:$0xff] }
 0x318   :  { %1557 = vmatpush1.bf16.msra.mxu0 %v3939_v49  ;;  %1598 = vmatpush1.bf16.msra.mxu1 %v3943_v56  ;;  %v5523_v49 = vld [vmem:[#allocation21_spill] sm:$0xff]  ;;  %v5524_v56 = vld [vmem:[#allocation22_spill] sm:$0xff] }
 0x319   :  { %1694 = vmatprep.subr.bf16.mxu0 %v3536_v4  ;;  %1735 = vmatprep.subr.bf16.mxu1 %v3540_v9  ;;  %v5525_v4 = vld [vmem:[#allocation23_spill] sm:$0xff]  ;;  %v5526_v9 = vld [vmem:[#allocation24_spill] sm:$0xff] }
 0x31b   :  { %1559 = vmatmul.mubr.bf16.vlgmr.msra.gmra.mrb[20].mxu0 %v4188_v37  ;;  %1600 = vmatmul.mubr.bf16.vlgmr.msra.gmra.mrb[20].mxu1 %v4188_v37  ;;  %v5528_v37 = vld [vmem:[#allocation26_spill] sm:$0xff] }
 0x31c   :  { %1695 = vmatpush1.bf16.msra.mxu0 %v3538_v6  ;;  %1736 = vmatpush1.bf16.msra.mxu1 %v3542_v10  ;;  %v5529_v6 = vld [vmem:[#allocation27_spill] sm:$0xff]  ;;  %v5530_v10 = vld [vmem:[#allocation28_spill] sm:$0xff] }
 0x31d   :  { %1696 = vmatprep.subr.bf16.mxu0 %v3544_v11  ;;  %1737 = vmatprep.subr.bf16.mxu1 %v3547_v15  ;;  %v5531_v11 = vld [vmem:[#allocation29_spill] sm:$0xff]  ;;  %v5532_v15 = vld [vmem:[#allocation30_spill] sm:$0xff] }
 0x320   :  { %1697 = vmatpush1.bf16.msra.mxu0 %v5522_v34  ;;  %1738 = vmatpush1.bf16.msra.mxu1 %v5523_v49  ;;  %v5533_v34 = vld [vmem:[#allocation31_spill] sm:$0xff]  ;;  %v5534_v49 = vld [vmem:[#allocation32_spill] sm:$0xff] }
 0x321   :  { %1698 = vmatprep.subr.bf16.mxu0 %v5524_v56  ;;  %1739 = vmatprep.subr.bf16.mxu1 %v5525_v4  ;;  %v5535_v56 = vld [vmem:[#allocation33_spill] sm:$0xff]  ;;  %v5536_v4 = vld [vmem:[#allocation34_spill] sm:$0xff] }
 0x324   :  { %1699 = vmatpush1.bf16.msra.mxu0 %v5526_v9  ;;  %1740 = vmatpush1.bf16.msra.mxu1 %v5527_v5  ;;  %v5537_v9 = vld [vmem:[#allocation35_spill] sm:$0xff]  ;;  %v5538_v5 = vld [vmem:[#allocation36_spill] sm:$0xff] }
 0x325   :  { %1700 = vmatprep.subr.bf16.mxu0 %v5528_v37  ;;  %1741 = vmatprep.subr.bf16.mxu1 %v5529_v6  ;;  %v5539_v37 = vld [vmem:[#allocation37_spill] sm:$0xff]  ;;  %v5540_v6 = vld [vmem:[#allocation38_spill] sm:$0xff] }
 0x328   :  { %1701 = vmatpush1.bf16.msra.mxu0 %v5530_v10  ;;  %1742 = vmatpush1.bf16.msra.mxu1 %v5531_v11  ;;  %v5541_v10 = vld [vmem:[#allocation39_spill] sm:$0xff]  ;;  %v5542_v11 = vld [vmem:[#allocation40_spill] sm:$0xff] }
 0x329   :  { %1702 = vmatprep.subr.bf16.mxu0 %v5532_v15  ;;  %1743 = vmatprep.subr.bf16.mxu1 %v5533_v34  ;;  %v5543_v15 = vld [vmem:[#allocation41_spill] sm:$0xff]  ;;  %v5544_v34 = vld [vmem:[#allocation42_spill] sm:$0xff] }
 0x32c   :  { %1703 = vmatpush1.bf16.msra.mxu0 %v5534_v49  ;;  %1744 = vmatpush1.bf16.msra.mxu1 %v5535_v56  ;;  %v5545_v49 = vld [vmem:[#allocation43_spill] sm:$0xff]  ;;  %v5546_v56 = vld [vmem:[#allocation44_spill] sm:$0xff] }
 0x32d   :  { %1704 = vmatprep.subr.bf16.mxu0 %v5536_v4  ;;  %1745 = vmatprep.subr.bf16.mxu1 %v5537_v9  ;;  %v5547_v4 = vld [vmem:[#allocation45_spill] sm:$0xff]  ;;  %v5548_v9 = vld [vmem:[#allocation46_spill] sm:$0xff] }
 0x330   :  { %1705 = vmatpush1.bf16.msra.mxu0 %v5538_v5  ;;  %1746 = vmatpush1.bf16.msra.mxu1 %v5539_v37  ;;  %v5549_v5 = vld [vmem:[#allocation47_spill] sm:$0xff]  ;;  %v5550_v37 = vld [vmem:[#allocation48_spill] sm:$0xff] }
 0x331   :  { %1706 = vmatprep.subr.bf16.mxu0 %v5540_v6  ;;  %1747 = vmatprep.subr.bf16.mxu1 %v5541_v10  ;;  %v5551_v6 = vld [vmem:[#allocation49_spill] sm:$0xff]  ;;  %v5552_v10 = vld [vmem:[#allocation50_spill] sm:$0xff] }
 0x334   :  { %1707 = vmatpush1.bf16.msra.mxu0 %v5542_v11  ;;  %1748 = vmatpush1.bf16.msra.mxu1 %v5543_v15  ;;  %v5553_v11 = vld [vmem:[#allocation51_spill] sm:$0xff]  ;;  %v5554_v15 = vld [vmem:[#allocation52_spill] sm:$0xff] }
 0x335   :  { %1708 = vmatprep.subr.bf16.mxu0 %v5544_v34  ;;  %1749 = vmatprep.subr.bf16.mxu1 %v5545_v49  ;;  %v5555_v34 = vld [vmem:[#allocation53_spill] sm:$0xff]  ;;  %v5556_v49 = vld [vmem:[#allocation54_spill] sm:$0xff] }
 0x338   :  { %1709 = vmatpush1.bf16.msra.mxu0 %v5546_v56  ;;  %1750 = vmatpush1.bf16.msra.mxu1 %v5547_v4  ;;  %v5557_v56 = vld [vmem:[#allocation55_spill] sm:$0xff]  ;;  %v5558_v4 = vld [vmem:[#allocation56_spill] sm:$0xff] }
 0x339   :  { %1710 = vmatprep.subr.bf16.mxu0 %v5548_v9  ;;  %1751 = vmatprep.subr.bf16.mxu1 %v5549_v5  ;;  %v5559_v9 = vld [vmem:[#allocation57_spill] sm:$0xff]  ;;  %v5560_v5 = vld [vmem:[#allocation58_spill] sm:$0xff] }
 0x33c   :  { %1711 = vmatpush1.bf16.msra.mxu0 %v5550_v37  ;;  %1752 = vmatpush1.bf16.msra.mxu1 %v5551_v6  ;;  %v5561_v37 = vld [vmem:[#allocation59_spill] sm:$0xff]  ;;  %v5562_v6 = vld [vmem:[#allocation60_spill] sm:$0xff] }
 0x33d   :  { %1712 = vmatprep.subr.bf16.mxu0 %v5552_v10  ;;  %1753 = vmatprep.subr.bf16.mxu1 %v5553_v11  ;;  %v5563_v10 = vld [vmem:[#allocation61_spill] sm:$0xff]  ;;  %v5564_v11 = vld [vmem:[#allocation62_spill] sm:$0xff] }
 0x340   :  { %1713 = vmatpush1.bf16.msra.mxu0 %v5554_v15  ;;  %1754 = vmatpush1.bf16.msra.mxu1 %v5555_v34  ;;  %v5565_v15 = vld [vmem:[#allocation63_spill] sm:$0xff]  ;;  %v5566_v34 = vld [vmem:[#allocation64_spill] sm:$0xff] }
 0x341   :  { %1714 = vmatprep.subr.bf16.mxu0 %v5556_v49  ;;  %1755 = vmatprep.subr.bf16.mxu1 %v5557_v56  ;;  %v5567_v49 = vld [vmem:[#allocation65_spill] sm:$0xff]  ;;  %v5568_v56 = vld [vmem:[#allocation66_spill] sm:$0xff] }
 0x344   :  { %1715 = vmatpush1.bf16.msra.mxu0 %v5558_v4  ;;  %1756 = vmatpush1.bf16.msra.mxu1 %v5559_v9  ;;  %v5569_v4 = vld [vmem:[#allocation67_spill] sm:$0xff]  ;;  %v5570_v9 = vld [vmem:[#allocation68_spill] sm:$0xff] }
 0x345   :  { %1716 = vmatprep.subr.bf16.mxu0 %v5560_v5  ;;  %1757 = vmatprep.subr.bf16.mxu1 %v5561_v37  ;;  %v5571_v5 = vld [vmem:[#allocation69_spill] sm:$0xff]  ;;  %v5572_v37 = vld [vmem:[#allocation70_spill] sm:$0xff] }
 0x348   :  { %1717 = vmatpush1.bf16.msra.mxu0 %v5562_v6  ;;  %1758 = vmatpush1.bf16.msra.mxu1 %v5563_v10  ;;  %v5573_v6 = vld [vmem:[#allocation71_spill] sm:$0xff]  ;;  %v5574_v10 = vld [vmem:[#allocation72_spill] sm:$0xff] }
 0x349   :  { %1718 = vmatprep.subr.bf16.mxu0 %v5564_v11  ;;  %1759 = vmatprep.subr.bf16.mxu1 %v5565_v15  ;;  %v5575_v11 = vld [vmem:[#allocation73_spill] sm:$0xff]  ;;  %v5576_v15 = vld [vmem:[#allocation74_spill] sm:$0xff] }
 0x34c   :  { %1719 = vmatpush1.bf16.msra.mxu0 %v5566_v34  ;;  %1760 = vmatpush1.bf16.msra.mxu1 %v5567_v49  ;;  %v5577_v34 = vld [vmem:[#allocation75_spill] sm:$0xff]  ;;  %v5578_v49 = vld [vmem:[#allocation76_spill] sm:$0xff] }
 0x34d   :  { %1720 = vmatprep.subr.bf16.mxu0 %v5568_v56  ;;  %1761 = vmatprep.subr.bf16.mxu1 %v5569_v4  ;;  %v5579_v56 = vld [vmem:[#allocation77_spill] sm:$0xff]  ;;  %v5580_v4 = vld [vmem:[#allocation78_spill] sm:$0xff] }
 0x350   :  { %1721 = vmatpush1.bf16.msra.mxu0 %v5570_v9  ;;  %1762 = vmatpush1.bf16.msra.mxu1 %v5571_v5  ;;  %v5581_v9 = vld [vmem:[#allocation79_spill] sm:$0xff] }
 0x351   :  { %1722 = vmatprep.subr.bf16.mxu0 %v5572_v37  ;;  %1763 = vmatprep.subr.bf16.mxu1 %v5573_v6 }
 0x354   :  { %1723 = vmatpush1.bf16.msra.mxu0 %v5574_v10  ;;  %1764 = vmatpush1.bf16.msra.mxu1 %v5575_v11 }
 0x355   :  { %1724 = vmatprep.subr.bf16.mxu0 %v5576_v15  ;;  %1765 = vmatprep.subr.bf16.mxu1 %v5577_v34  ;;  %v1433_v15 = vld [vmem:[#allocation5 + $0x48] sm:$0xff] }
 0x356   :  { %v1438_v34 = vunpack.c.l.bf16 %v1433_v15 }
 0x358   :  { %1725 = vmatpush1.bf16.msra.mxu0 %v5578_v49  ;;  %1766 = vmatpush1.bf16.msra.mxu1 %v5579_v56  ;;  %v1439_v49 = vunpack.c.h.bf16 %v1433_v15 }
 0x359   :  { %1776 = vmatprep.subr.bf16.mxu0 %v5580_v4  ;;  %1817 = vmatprep.subr.bf16.mxu1 %v5581_v9 }
 0x3ae   :  { %v1478_v5 = vpop.f32.mrb[16].mxu0  ;;  %v1519_v37 = vpop.f32.mrb[16].mxu1 }
 0x3af   :  { %v1480_v17 = vpop.f32.mrb[17].mxu0  ;;  %v1521_v6 = vpop.f32.mrb[17].mxu1  ;;  %v1479_v27 = vadd.f32 %v1478_v5, %v1436_v59  ;;  %v1520_v56 = vadd.f32 %v1519_v37, %v1438_v34 }
 0x3b0   :  { %v1482_v1 = vpop.f32.mrb[18].mxu0  ;;  %v1523_v10 = vpop.f32.mrb[18].mxu1  ;;  %v1481_v2 = vadd.f32 %v1480_v17, %v1437_v43  ;;  %v1522_v4 = vadd.f32 %v1521_v6, %v1439_v49  ;;  %v1442_v43 = vunpack.c.l.bf16 %v1435_v32  ;;  %v1443_v17 = vunpack.c.h.bf16 %v1435_v32 }
 0x3b1   :  { %v1483_v3 = vpop.f32.mrb[19].mxu0  ;;  %v1524_v11 = vpop.f32.mrb[19].mxu1  ;;  %v3087_v0 = vmul.f32 -1.442695, %v1479_v27  ;;  %v3089_v9 = vmul.f32 -1.442695, %v1520_v56 }
 0x3b2   :  { %v3088_v48 = vmul.f32 -1.442695, %v1481_v2  ;;  %v3090_v35 = vmul.f32 -1.442695, %v1522_v4  ;;  %v1434_v1 = vld [vmem:[#allocation5 + $0x50] sm:$0xff] }
 0x3b3   :  { %3212 = vpow2.f32 %v3087_v0  ;;  %v1440_v5 = vunpack.c.l.bf16 %v1434_v1  ;;  %v1441_v49 = vunpack.c.h.bf16 %v1434_v1 }
 0x3b4   :  { %3214 = vpow2.f32 %v3089_v9 }
 0x3b5   :  { %3216 = vpow2.f32 %v3088_v48 }
 0x3b6   :  { %3218 = vpow2.f32 %v3090_v35 }
 0x3bd   :  { %v3213_v10 = vpop.eup %3212 }
 0x3be   :  { %v3215_v11 = vpop.eup %3214  ;;  %v1614_v50 = vadd.f32 1.0, %v3213_v10 }
 0x3bf   :  { %v3217_v3 = vpop.eup %3216  ;;  %v1626_v15 = vadd.f32 1.0, %v3215_v11 }
 0x3c0   :  { %v3219_v18 = vpop.eup %3218  ;;  %v1615_v59 = vadd.f32 1.0, %v3217_v3  ;;  %3220 = vrcp.f32 %v1614_v50 }
 0x3c1   :  { %v1627_v6 = vadd.f32 1.0, %v3219_v18  ;;  %3222 = vrcp.f32 %v1626_v15 }
 0x3c2   :  { %3224 = vrcp.f32 %v1615_v59 }
 0x3c3   :  { %3226 = vrcp.f32 %v1627_v6 }
 0x3ca   :  { %v3221_v3 = vpop.eup %3220 }
 0x3cb   :  { %v3223_v1 = vpop.eup %3222 }
 0x3cc   :  { %v3225_v50 = vpop.eup %3224 }
 0x3cd   :  { %v3227_v15 = vpop.eup %3226 }
 0x3ee   :  { %v1560_v4 = vpop.f32.mrb[20].mxu0  ;;  %v1601_v9 = vpop.f32.mrb[20].mxu1 }
 0x3ef   :  { %v1561_v48 = vadd.f32 %v1560_v4, %v1440_v5  ;;  %v1602_v0 = vadd.f32 %v1601_v9, %v1442_v43  ;;  %v1562_v2 = vpop.f32.mrb[21].mxu0  ;;  %v1603_v34 = vpop.f32.mrb[21].mxu1  ;;  %v1648_v43 = vmul.f32 %v3223_v1, %v4182_v62 }
 0x3f0   :  { %v1563_v56 = vadd.f32 %v1562_v2, %v1441_v49  ;;  %v1604_v35 = vadd.f32 %v1603_v34, %v1443_v17  ;;  %v1564_v27 = vpop.f32.mrb[22].mxu0  ;;  %v1605_v37 = vpop.f32.mrb[22].mxu1  ;;  %v1649_v17 = vmul.f32 %v3227_v15, %v4184_v40  ;;  %v5582_v15 = vld [vmem:[#allocation100_spill] sm:$0xff] }
 0x3f1   :  { %3228 = vtanh.f32 %v1561_v48  ;;  %v3091_v10 = vmul.f32 -1.442695, %v1602_v0  ;;  %v1565_v11 = vpop.f32.mrb[23].mxu0  ;;  %v1606_v18 = vpop.f32.mrb[23].mxu1 }
 0x3f2   :  { %3230 = vtanh.f32 %v1563_v56  ;;  %v3092_v32 = vmul.f32 -1.442695, %v1604_v35  ;;  %v67_v2 = vpop.permute.xlu1 %66  ;;  %v123_v35 = vpop.permute.xlu0 %122 }
 0x3f3   :  { %3232 = vpow2.f32 %v3091_v10 }
 0x3f4   :  { %3234 = vpow2.f32 %v3092_v32 }
 0x3fb   :  { %v3229_v59 = vpop.eup %3228 }
 0x3fc   :  { %v3231_v5 = vpop.eup %3230  ;;  %v1650_v6 = vmul.f32 %v3229_v59, %v3221_v3  ;;  %v5583_v59 = vld [vmem:[#allocation101_spill] sm:$0xff] }
 0x3fd   :  { %v3233_v49 = vpop.eup %3232  ;;  %v1651_v4 = vmul.f32 %v3231_v5, %v3225_v50  ;;  %v5584_v5 = vld [vmem:[#allocation102_spill] sm:$0xff] }
 0x3fe   :  { %v3235_v9 = vpop.eup %3234  ;;  %v1652_v48 = vadd.f32 %v1650_v6, %v1648_v43  ;;  %v1640_v0 = vadd.f32 1.0, %v3233_v49  ;;  %v5585_v43 = vld [vmem:[#allocation103_spill] sm:$0xff]  ;;  %v5586_v6 = vld [vmem:[#allocation104_spill] sm:$0xff]  ;;  %v5587_v49 = vld [vmem:[#allocation105_spill] sm:$0xff] }
 0x3ff   :  { %v1653_v34 = vadd.f32 %v1651_v4, %v1649_v17  ;;  %v1641_v56 = vadd.f32 1.0, %v3235_v9  ;;  %v5588_v17 = vld [vmem:[#allocation109_spill] sm:$0xff]  ;;  %v5590_v9 = vld [vmem:[#allocation126_spill] sm:$0xff] }
 0x400   :  { %v4324_v27 = vmul.f32 %v1652_v48, %v67_v2  ;;  %3236 = vrcp.f32 %v1640_v0  ;;  %v5589_v4 = vld [vmem:[#allocation125_spill] sm:$0xff]  ;;  %v5591_v48 = vld [vmem:[#allocation127_spill] sm:$0xff]  ;;  %v5592_v0 = vld [vmem:[#allocation128_spill] sm:$0xff] }
 0x401   :  { %v4326_v37 = vmul.f32 %v1653_v34, %v123_v35  ;;  %3238 = vrcp.f32 %v1641_v56  ;;  %v5593_v2 = vld [vmem:[#allocation129_spill] sm:$0xff]  ;;  %v5594_v34 = vld [vmem:[#allocation130_spill] sm:$0xff]  ;;  %v5595_v56 = vld [vmem:[#allocation131_spill] sm:$0xff] }
 0x402   :  { %3240 = vtanh.f32 %v4324_v27  ;;  %v5596_v35 = vld [vmem:[#allocation132_spill] sm:$0xff] }
 0x403   :  { %3242 = vtanh.f32 %v4326_v37 }
 0x40a   :  { %v3237_v62 = vpop.eup %3236 }
 0x40b   :  { %v3239_v40 = vpop.eup %3238 }
 0x40c   :  { %v3241_v10 = vpop.eup %3240 }
 0x40d   :  { %v3243_v11 = vpop.eup %3242  ;;  %v1661_v18 = vmul.f32 %v3241_v10, %v3237_v62  ;;  %v5597_v62 = vld [vmem:[#allocation133_spill] sm:$0xff]  ;;  %v5599_v10 = vld [vmem:[#allocation135_spill] sm:$0xff] }
 0x40e   :  { %v1662_v32 = vmul.f32 %v3243_v11, %v3239_v40  ;;  %v5598_v40 = vld [vmem:[#allocation134_spill] sm:$0xff]  ;;  %v5600_v11 = vld [vmem:[#allocation136_spill] sm:$0xff] }
 0x40f   :  { %v4330_v50 = vpack.c.bf16 %v1661_v18, %v1661_v18 }
 0x410   :  { %v1680_v3 = vpack.c.bf16 %v1662_v32, %v1662_v32  ;;  %v3131_v1 = vpack.c.bf16 %v1662_v32, %v1661_v18  ;;  %v5601_v18 = vld [vmem:[#allocation137_spill] sm:$0xff]  ;;  %v5602_v32 = vld [vmem:[#allocation138_spill] sm:$0xff] }
 0x412   :  { %1726 = vmatprep.mubr.bf16.mxu0 %v1680_v3  ;;  %1767 = vmatprep.mubr.bf16.mxu1 %v1680_v3  ;;  %1676 = vst [vmem:[#allocation10 + $0x10] sm:$0xff] %v3131_v1  ;;  %v5604_v1 = vld [vmem:[#allocation140_spill] sm:$0xff] }
 0x413   :  { %1727 = vmatmul.mubr.bf16.vlgmr.msra.gmra.mrb[24].mxu0 %v4330_v50  ;;  %1768 = vmatmul.mubr.bf16.vlgmr.msra.gmra.mrb[24].mxu1 %v4330_v50 }
 0x414   :  { %1777 = vmatpush1.bf16.msra.mxu0 %v5406_v63  ;;  %1818 = vmatpush1.bf16.msra.mxu1 %v5407_v41 }
 0x415   :  { %1808 = vmatprep.mubr.bf16.mxu0 %v1680_v3  ;;  %1849 = vmatprep.mubr.bf16.mxu1 %v1680_v3  ;;  %v5603_v3 = vld [vmem:[#allocation139_spill] sm:$0xff] }
 0x416   :  { %1778 = vmatprep.subr.bf16.mxu0 %v5408_v13  ;;  %1819 = vmatprep.subr.bf16.mxu1 %v5409_v8 }
 0x418   :  { %1779 = vmatpush1.bf16.msra.mxu0 %v5410_v24  ;;  %1820 = vmatpush1.bf16.msra.mxu1 %v5411_v12 }
 0x419   :  { %1780 = vmatprep.subr.bf16.mxu0 %v5412_v23  ;;  %1821 = vmatprep.subr.bf16.mxu1 %v5413_v42 }
 0x41c   :  { %1781 = vmatpush1.bf16.msra.mxu0 %v5492_v61  ;;  %1822 = vmatpush1.bf16.msra.mxu1 %v5493_v36 }
 0x41d   :  { %1782 = vmatprep.subr.bf16.mxu0 %v5494_v52  ;;  %1823 = vmatprep.subr.bf16.mxu1 %v5495_v31 }
 0x420   :  { %1783 = vmatpush1.bf16.msra.mxu0 %v5496_v44  ;;  %1824 = vmatpush1.bf16.msra.mxu1 %v5497_v30 }
 0x421   :  { %1784 = vmatprep.subr.bf16.mxu0 %v5498_v45  ;;  %1825 = vmatprep.subr.bf16.mxu1 %v5499_v28 }
 0x424   :  { %1785 = vmatpush1.bf16.msra.mxu0 %v5500_v29  ;;  %1826 = vmatpush1.bf16.msra.mxu1 %v5501_v21 }
 0x425   :  { %1786 = vmatprep.subr.bf16.mxu0 %v5502_v22  ;;  %1827 = vmatprep.subr.bf16.mxu1 %v5503_v46 }
 0x428   :  { %1787 = vmatpush1.bf16.msra.mxu0 %v5582_v15  ;;  %1828 = vmatpush1.bf16.msra.mxu1 %v5583_v59 }
 0x429   :  { %1788 = vmatprep.subr.bf16.mxu0 %v5584_v5  ;;  %1829 = vmatprep.subr.bf16.mxu1 %v5585_v43 }
 0x42c   :  { %1789 = vmatpush1.bf16.msra.mxu0 %v5586_v6  ;;  %1830 = vmatpush1.bf16.msra.mxu1 %v5587_v49 }
 0x42d   :  { %1790 = vmatprep.subr.bf16.mxu0 %v5510_v39  ;;  %1831 = vmatprep.subr.bf16.mxu1 %v5511_v19 }
 0x430   :  { %1791 = vmatpush1.bf16.msra.mxu0 %v5512_v20  ;;  %1832 = vmatpush1.bf16.msra.mxu1 %v5588_v17 }
 0x431   :  { %1792 = vmatprep.subr.bf16.mxu0 %v5514_v60  ;;  %1833 = vmatprep.subr.bf16.mxu1 %v5515_v47 }
 0x434   :  { %1793 = vmatpush1.bf16.msra.mxu0 %v5516_v53  ;;  %1834 = vmatpush1.bf16.msra.mxu1 %v5517_v54 }
 0x435   :  { %1794 = vmatprep.subr.bf16.mxu0 %v5518_v58  ;;  %1835 = vmatprep.subr.bf16.mxu1 %v5519_v38 }
 0x438   :  { %1795 = vmatpush1.bf16.msra.mxu0 %v5520_v57  ;;  %1836 = vmatpush1.bf16.msra.mxu1 %v5443_v25 }
 0x439   :  { %1796 = vmatprep.subr.bf16.mxu0 %v5444_v26  ;;  %1837 = vmatprep.subr.bf16.mxu1 %v5445_v16  ;;  %v1685_v16 = vld [vmem:[#allocation5 + $0x78] sm:$0xff] }
 0x43c   :  { %1797 = vmatpush1.bf16.msra.mxu0 %v5521_v55  ;;  %1838 = vmatpush1.bf16.msra.mxu1 %v5447_v51 }
 0x43d   :  { %1798 = vmatprep.subr.bf16.mxu0 %v5448_v33  ;;  %1839 = vmatprep.subr.bf16.mxu1 %v5449_v7 }
 0x440   :  { %1799 = vmatpush1.bf16.msra.mxu0 %v5450_v14  ;;  %1840 = vmatpush1.bf16.msra.mxu1 %v5589_v4 }
 0x441   :  { %1800 = vmatprep.subr.bf16.mxu0 %v5590_v9  ;;  %1841 = vmatprep.subr.bf16.mxu1 %v5591_v48  ;;  %v1682_v48 = vld [vmem:[#allocation5 + $0x60] sm:$0xff] }
 0x442   :  { %v1686_v9 = vunpack.c.l.bf16 %v1682_v48  ;;  %v1687_v4 = vunpack.c.h.bf16 %v1682_v48 }
 0x444   :  { %1801 = vmatpush1.bf16.msra.mxu0 %v5592_v0  ;;  %1842 = vmatpush1.bf16.msra.mxu1 %v5593_v2 }
 0x445   :  { %1802 = vmatprep.subr.bf16.mxu0 %v5594_v34  ;;  %1843 = vmatprep.subr.bf16.mxu1 %v5595_v56  ;;  %v5605_v34 = vld [vmem:[#allocation141_spill] sm:$0xff]  ;;  %v5606_v56 = vld [vmem:[#allocation14_spill] sm:$0xff] }
 0x448   :  { %1803 = vmatpush1.bf16.msra.mxu0 %v5596_v35  ;;  %1844 = vmatpush1.bf16.msra.mxu1 %v5597_v62  ;;  %v5607_v35 = vld [vmem:[#allocation16_spill] sm:$0xff] }
 0x449   :  { %1804 = vmatprep.subr.bf16.mxu0 %v5598_v40  ;;  %1845 = vmatprep.subr.bf16.mxu1 %v5599_v10  ;;  %v5608_v10 = vld [vmem:[#allocation15_spill] sm:$0xff]  ;;  %v5617_v40 = vld [vmem:[#allocation25_spill] sm:$0xff] }
 0x44c   :  { %1805 = vmatpush1.bf16.msra.mxu0 %v5600_v11  ;;  %1846 = vmatpush1.bf16.msra.mxu1 %v5601_v18  ;;  %v5609_v11 = vld [vmem:[#allocation17_spill] sm:$0xff]  ;;  %v5610_v18 = vld [vmem:[#allocation18_spill] sm:$0xff] }
 0x44d   :  { %1806 = vmatprep.subr.bf16.mxu0 %v5602_v32  ;;  %1847 = vmatprep.subr.bf16.mxu1 %v5603_v3  ;;  %v5611_v32 = vld [vmem:[#allocation19_spill] sm:$0xff]  ;;  %v5612_v3 = vld [vmem:[#allocation20_spill] sm:$0xff] }
 0x450   :  { %1807 = vmatpush1.bf16.msra.mxu0 %v5604_v1  ;;  %1848 = vmatpush1.bf16.msra.mxu1 %v5605_v34  ;;  %v5613_v1 = vld [vmem:[#allocation21_spill] sm:$0xff]  ;;  %v5614_v34 = vld [vmem:[#allocation22_spill] sm:$0xff] }
 0x451   :  { %1944 = vmatprep.subr.bf16.mxu0 %v5606_v56  ;;  %1985 = vmatprep.subr.bf16.mxu1 %v5607_v35  ;;  %v5615_v56 = vld [vmem:[#allocation23_spill] sm:$0xff]  ;;  %v5616_v35 = vld [vmem:[#allocation24_spill] sm:$0xff] }
 0x453   :  { %1809 = vmatmul.mubr.bf16.vlgmr.msra.gmra.mrb[28].mxu0 %v4330_v50  ;;  %1850 = vmatmul.mubr.bf16.vlgmr.msra.gmra.mrb[28].mxu1 %v4330_v50  ;;  %v5618_v50 = vld [vmem:[#allocation26_spill] sm:$0xff] }
 0x454   :  { %1945 = vmatpush1.bf16.msra.mxu0 %v5608_v10  ;;  %1986 = vmatpush1.bf16.msra.mxu1 %v5609_v11  ;;  %v5619_v10 = vld [vmem:[#allocation27_spill] sm:$0xff]  ;;  %v5620_v11 = vld [vmem:[#allocation28_spill] sm:$0xff] }
 0x455   :  { %1946 = vmatprep.subr.bf16.mxu0 %v5610_v18  ;;  %1987 = vmatprep.subr.bf16.mxu1 %v5611_v32  ;;  %v5621_v18 = vld [vmem:[#allocation29_spill] sm:$0xff]  ;;  %v5622_v32 = vld [vmem:[#allocation30_spill] sm:$0xff] }
 0x458   :  { %1947 = vmatpush1.bf16.msra.mxu0 %v5612_v3  ;;  %1988 = vmatpush1.bf16.msra.mxu1 %v5613_v1  ;;  %v5623_v3 = vld [vmem:[#allocation31_spill] sm:$0xff]  ;;  %v5624_v1 = vld [vmem:[#allocation32_spill] sm:$0xff] }
 0x459   :  { %1948 = vmatprep.subr.bf16.mxu0 %v5614_v34  ;;  %1989 = vmatprep.subr.bf16.mxu1 %v5615_v56  ;;  %v5625_v34 = vld [vmem:[#allocation33_spill] sm:$0xff]  ;;  %v5626_v56 = vld [vmem:[#allocation34_spill] sm:$0xff] }
 0x45c   :  { %1949 = vmatpush1.bf16.msra.mxu0 %v5616_v35  ;;  %1990 = vmatpush1.bf16.msra.mxu1 %v5617_v40  ;;  %v5627_v35 = vld [vmem:[#allocation35_spill] sm:$0xff]  ;;  %v5628_v40 = vld [vmem:[#allocation36_spill] sm:$0xff] }
 0x45d   :  { %1950 = vmatprep.subr.bf16.mxu0 %v5618_v50  ;;  %1991 = vmatprep.subr.bf16.mxu1 %v5619_v10  ;;  %v5629_v50 = vld [vmem:[#allocation37_spill] sm:$0xff]  ;;  %v5630_v10 = vld [vmem:[#allocation38_spill] sm:$0xff] }
 0x460   :  { %1951 = vmatpush1.bf16.msra.mxu0 %v5620_v11  ;;  %1992 = vmatpush1.bf16.msra.mxu1 %v5621_v18  ;;  %v5631_v11 = vld [vmem:[#allocation39_spill] sm:$0xff]  ;;  %v5632_v18 = vld [vmem:[#allocation40_spill] sm:$0xff] }
 0x461   :  { %1952 = vmatprep.subr.bf16.mxu0 %v5622_v32  ;;  %1993 = vmatprep.subr.bf16.mxu1 %v5623_v3  ;;  %v5633_v32 = vld [vmem:[#allocation41_spill] sm:$0xff]  ;;  %v5634_v3 = vld [vmem:[#allocation42_spill] sm:$0xff] }
 0x464   :  { %1953 = vmatpush1.bf16.msra.mxu0 %v5624_v1  ;;  %1994 = vmatpush1.bf16.msra.mxu1 %v5625_v34  ;;  %v5635_v1 = vld [vmem:[#allocation43_spill] sm:$0xff]  ;;  %v5636_v34 = vld [vmem:[#allocation44_spill] sm:$0xff] }
 0x465   :  { %1954 = vmatprep.subr.bf16.mxu0 %v5626_v56  ;;  %1995 = vmatprep.subr.bf16.mxu1 %v5627_v35  ;;  %v5637_v56 = vld [vmem:[#allocation45_spill] sm:$0xff]  ;;  %v5638_v35 = vld [vmem:[#allocation46_spill] sm:$0xff] }
 0x468   :  { %1955 = vmatpush1.bf16.msra.mxu0 %v5628_v40  ;;  %1996 = vmatpush1.bf16.msra.mxu1 %v5629_v50  ;;  %v5639_v40 = vld [vmem:[#allocation47_spill] sm:$0xff]  ;;  %v5640_v50 = vld [vmem:[#allocation48_spill] sm:$0xff] }
 0x469   :  { %1956 = vmatprep.subr.bf16.mxu0 %v5630_v10  ;;  %1997 = vmatprep.subr.bf16.mxu1 %v5631_v11  ;;  %v5641_v10 = vld [vmem:[#allocation49_spill] sm:$0xff]  ;;  %v5642_v11 = vld [vmem:[#allocation50_spill] sm:$0xff] }
 0x46c   :  { %1957 = vmatpush1.bf16.msra.mxu0 %v5632_v18  ;;  %1998 = vmatpush1.bf16.msra.mxu1 %v5633_v32  ;;  %v5643_v18 = vld [vmem:[#allocation51_spill] sm:$0xff]  ;;  %v5644_v32 = vld [vmem:[#allocation52_spill] sm:$0xff] }
 0x46d   :  { %1958 = vmatprep.subr.bf16.mxu0 %v5634_v3  ;;  %1999 = vmatprep.subr.bf16.mxu1 %v5635_v1  ;;  %v5645_v3 = vld [vmem:[#allocation53_spill] sm:$0xff]  ;;  %v5646_v1 = vld [vmem:[#allocation54_spill] sm:$0xff] }
 0x470   :  { %1959 = vmatpush1.bf16.msra.mxu0 %v5636_v34  ;;  %2000 = vmatpush1.bf16.msra.mxu1 %v5637_v56  ;;  %v5647_v34 = vld [vmem:[#allocation55_spill] sm:$0xff]  ;;  %v5648_v56 = vld [vmem:[#allocation56_spill] sm:$0xff] }
 0x471   :  { %1960 = vmatprep.subr.bf16.mxu0 %v5638_v35  ;;  %2001 = vmatprep.subr.bf16.mxu1 %v5639_v40  ;;  %v5649_v35 = vld [vmem:[#allocation57_spill] sm:$0xff]  ;;  %v5650_v40 = vld [vmem:[#allocation58_spill] sm:$0xff] }
 0x474   :  { %1961 = vmatpush1.bf16.msra.mxu0 %v5640_v50  ;;  %2002 = vmatpush1.bf16.msra.mxu1 %v5641_v10  ;;  %v5651_v50 = vld [vmem:[#allocation59_spill] sm:$0xff]  ;;  %v5652_v10 = vld [vmem:[#allocation60_spill] sm:$0xff] }
 0x475   :  { %1962 = vmatprep.subr.bf16.mxu0 %v5642_v11  ;;  %2003 = vmatprep.subr.bf16.mxu1 %v5643_v18  ;;  %v5653_v11 = vld [vmem:[#allocation61_spill] sm:$0xff]  ;;  %v5654_v18 = vld [vmem:[#allocation62_spill] sm:$0xff] }
 0x478   :  { %1963 = vmatpush1.bf16.msra.mxu0 %v5644_v32  ;;  %2004 = vmatpush1.bf16.msra.mxu1 %v5645_v3  ;;  %v5655_v32 = vld [vmem:[#allocation63_spill] sm:$0xff]  ;;  %v5656_v3 = vld [vmem:[#allocation64_spill] sm:$0xff] }
 0x479   :  { %1964 = vmatprep.subr.bf16.mxu0 %v5646_v1  ;;  %2005 = vmatprep.subr.bf16.mxu1 %v5647_v34  ;;  %v5657_v1 = vld [vmem:[#allocation65_spill] sm:$0xff]  ;;  %v5658_v34 = vld [vmem:[#allocation66_spill] sm:$0xff] }
 0x47c   :  { %1965 = vmatpush1.bf16.msra.mxu0 %v5648_v56  ;;  %2006 = vmatpush1.bf16.msra.mxu1 %v5649_v35  ;;  %v5659_v56 = vld [vmem:[#allocation67_spill] sm:$0xff]  ;;  %v5660_v35 = vld [vmem:[#allocation68_spill] sm:$0xff] }
 0x47d   :  { %1966 = vmatprep.subr.bf16.mxu0 %v5650_v40  ;;  %2007 = vmatprep.subr.bf16.mxu1 %v5651_v50  ;;  %v5661_v40 = vld [vmem:[#allocation69_spill] sm:$0xff]  ;;  %v5662_v50 = vld [vmem:[#allocation70_spill] sm:$0xff] }
 0x480   :  { %1967 = vmatpush1.bf16.msra.mxu0 %v5652_v10  ;;  %2008 = vmatpush1.bf16.msra.mxu1 %v5653_v11  ;;  %v5663_v10 = vld [vmem:[#allocation71_spill] sm:$0xff]  ;;  %v5664_v11 = vld [vmem:[#allocation72_spill] sm:$0xff] }
 0x481   :  { %1968 = vmatprep.subr.bf16.mxu0 %v5654_v18  ;;  %2009 = vmatprep.subr.bf16.mxu1 %v5655_v32  ;;  %v5665_v18 = vld [vmem:[#allocation73_spill] sm:$0xff]  ;;  %v5666_v32 = vld [vmem:[#allocation74_spill] sm:$0xff] }
 0x484   :  { %1969 = vmatpush1.bf16.msra.mxu0 %v5656_v3  ;;  %2010 = vmatpush1.bf16.msra.mxu1 %v5657_v1  ;;  %v5667_v3 = vld [vmem:[#allocation75_spill] sm:$0xff]  ;;  %v5668_v1 = vld [vmem:[#allocation76_spill] sm:$0xff] }
 0x485   :  { %1970 = vmatprep.subr.bf16.mxu0 %v5658_v34  ;;  %2011 = vmatprep.subr.bf16.mxu1 %v5659_v56  ;;  %v5669_v34 = vld [vmem:[#allocation77_spill] sm:$0xff]  ;;  %v5670_v56 = vld [vmem:[#allocation78_spill] sm:$0xff] }
 0x488   :  { %1971 = vmatpush1.bf16.msra.mxu0 %v5660_v35  ;;  %2012 = vmatpush1.bf16.msra.mxu1 %v5661_v40  ;;  %v5671_v35 = vld [vmem:[#allocation79_spill] sm:$0xff] }
 0x489   :  { %1972 = vmatprep.subr.bf16.mxu0 %v5662_v50  ;;  %2013 = vmatprep.subr.bf16.mxu1 %v5663_v10 }
 0x48c   :  { %1973 = vmatpush1.bf16.msra.mxu0 %v5664_v11  ;;  %2014 = vmatpush1.bf16.msra.mxu1 %v5665_v18 }
 0x48d   :  { %1974 = vmatprep.subr.bf16.mxu0 %v5666_v32  ;;  %2015 = vmatprep.subr.bf16.mxu1 %v5667_v3  ;;  %v1683_v32 = vld [vmem:[#allocation5 + $0x68] sm:$0xff] }
 0x48e   :  { %v1688_v3 = vunpack.c.l.bf16 %v1683_v32 }
 0x490   :  { %1975 = vmatpush1.bf16.msra.mxu0 %v5668_v1  ;;  %2016 = vmatpush1.bf16.msra.mxu1 %v5669_v34  ;;  %v1689_v1 = vunpack.c.h.bf16 %v1683_v32 }
 0x491   :  { %2026 = vmatprep.subr.bf16.mxu0 %v5670_v56  ;;  %2067 = vmatprep.subr.bf16.mxu1 %v5671_v35 }
 0x4e6   :  { %v1728_v40 = vpop.f32.mrb[24].mxu0  ;;  %v1769_v50 = vpop.f32.mrb[24].mxu1 }
 0x4e7   :  { %v1730_v62 = vpop.f32.mrb[25].mxu0  ;;  %v1771_v10 = vpop.f32.mrb[25].mxu1  ;;  %v1729_v14 = vadd.f32 %v1728_v40, %v1686_v9  ;;  %v1770_v34 = vadd.f32 %v1769_v50, %v1688_v3 }
 0x4e8   :  { %v1732_v2 = vpop.f32.mrb[26].mxu0  ;;  %v1773_v11 = vpop.f32.mrb[26].mxu1  ;;  %v1731_v7 = vadd.f32 %v1730_v62, %v1687_v4  ;;  %v1772_v56 = vadd.f32 %v1771_v10, %v1689_v1  ;;  %v1692_v4 = vunpack.c.l.bf16 %v1685_v16 }
 0x4e9   :  { %v1733_v0 = vpop.f32.mrb[27].mxu0  ;;  %v1774_v18 = vpop.f32.mrb[27].mxu1  ;;  %v3094_v33 = vmul.f32 -1.442695, %v1729_v14  ;;  %v3096_v35 = vmul.f32 -1.442695, %v1770_v34  ;;  %v1693_v34 = vunpack.c.h.bf16 %v1685_v16 }
 0x4ea   :  { %v3095_v51 = vmul.f32 -1.442695, %v1731_v7  ;;  %v3097_v55 = vmul.f32 -1.442695, %v1772_v56  ;;  %v1684_v18 = vld [vmem:[#allocation5 + $0x70] sm:$0xff] }
 0x4eb   :  { %3244 = vpow2.f32 %v3094_v33  ;;  %v1690_v40 = vunpack.c.l.bf16 %v1684_v18  ;;  %v1691_v14 = vunpack.c.h.bf16 %v1684_v18 }
 0x4ec   :  { %3246 = vpow2.f32 %v3096_v35 }
 0x4ed   :  { %3248 = vpow2.f32 %v3095_v51 }
 0x4ee   :  { %3250 = vpow2.f32 %v3097_v55 }
 0x4f5   :  { %v3245_v0 = vpop.eup %3244 }
 0x4f6   :  { %v3247_v2 = vpop.eup %3246  ;;  %v1864_v48 = vadd.f32 1.0, %v3245_v0 }
 0x4f7   :  { %v3249_v11 = vpop.eup %3248  ;;  %v1876_v32 = vadd.f32 1.0, %v3247_v2 }
 0x4f8   :  { %v3251_v26 = vpop.eup %3250  ;;  %v1865_v9 = vadd.f32 1.0, %v3249_v11  ;;  %3252 = vrcp.f32 %v1864_v48 }
 0x4f9   :  { %v1877_v62 = vadd.f32 1.0, %v3251_v26  ;;  %3254 = vrcp.f32 %v1876_v32 }
 0x4fa   :  { %3256 = vrcp.f32 %v1865_v9 }
 0x4fb   :  { %3258 = vrcp.f32 %v1877_v62 }
 0x502   :  { %v3253_v11 = vpop.eup %3252 }
 0x503   :  { %v3255_v18 = vpop.eup %3254 }
 0x504   :  { %v3257_v48 = vpop.eup %3256 }
 0x505   :  { %v3259_v32 = vpop.eup %3258 }
 0x526   :  { %v1810_v33 = vpop.f32.mrb[28].mxu0  ;;  %v1851_v7 = vpop.f32.mrb[28].mxu1 }
 0x527   :  { %v1811_v51 = vadd.f32 %v1810_v33, %v1690_v40  ;;  %v1852_v55 = vadd.f32 %v1851_v7, %v1692_v4  ;;  %v1812_v56 = vpop.f32.mrb[29].mxu0  ;;  %v1853_v35 = vpop.f32.mrb[29].mxu1  ;;  %v1898_v4 = vmul.f32 %v3255_v18, %v4324_v27 }
 0x528   :  { %v1813_v10 = vadd.f32 %v1812_v56, %v1691_v14  ;;  %v1854_v3 = vadd.f32 %v1853_v35, %v1693_v34  ;;  %v1814_v1 = vpop.f32.mrb[30].mxu0  ;;  %v1855_v50 = vpop.f32.mrb[30].mxu1  ;;  %v1899_v34 = vmul.f32 %v3259_v32, %v4326_v37  ;;  %v5672_v32 = vld [vmem:[#allocation118_spill] sm:$0xff] }
 0x529   :  { %3260 = vtanh.f32 %v1811_v51  ;;  %v3098_v0 = vmul.f32 -1.442695, %v1852_v55  ;;  %v1815_v2 = vpop.f32.mrb[31].mxu0  ;;  %v1856_v26 = vpop.f32.mrb[31].mxu1 }
 0x52a   :  { %3262 = vtanh.f32 %v1813_v10  ;;  %v3099_v16 = vmul.f32 -1.442695, %v1854_v3  ;;  %v72_v56 = vpop.permute.xlu1 %71  ;;  %v128_v3 = vpop.permute.xlu0 %127 }
 0x52b   :  { %3264 = vpow2.f32 %v3098_v0 }
 0x52c   :  { %3266 = vpow2.f32 %v3099_v16 }
 0x533   :  { %v3261_v9 = vpop.eup %3260 }
 0x534   :  { %v3263_v40 = vpop.eup %3262  ;;  %v1900_v62 = vmul.f32 %v3261_v9, %v3253_v11  ;;  %v5673_v9 = vld [vmem:[#allocation119_spill] sm:$0xff] }
 0x535   :  { %v3265_v14 = vpop.eup %3264  ;;  %v1901_v33 = vmul.f32 %v3263_v40, %v3257_v48  ;;  %v5674_v40 = vld [vmem:[#allocation120_spill] sm:$0xff] }
 0x536   :  { %v3267_v7 = vpop.eup %3266  ;;  %v1902_v51 = vadd.f32 %v1900_v62, %v1898_v4  ;;  %v1890_v55 = vadd.f32 1.0, %v3265_v14  ;;  %v5675_v4 = vld [vmem:[#allocation121_spill] sm:$0xff]  ;;  %v5676_v62 = vld [vmem:[#allocation122_spill] sm:$0xff]  ;;  %v5677_v14 = vld [vmem:[#allocation123_spill] sm:$0xff] }
 0x537   :  { %v1903_v35 = vadd.f32 %v1901_v33, %v1899_v34  ;;  %v1891_v10 = vadd.f32 1.0, %v3267_v7  ;;  %v5678_v34 = vld [vmem:[#allocation124_spill] sm:$0xff]  ;;  %v5679_v33 = vld [vmem:[#allocation125_spill] sm:$0xff]  ;;  %v5680_v7 = vld [vmem:[#allocation126_spill] sm:$0xff] }
 0x538   :  { %v4466_v1 = vmul.f32 %v1902_v51, %v72_v56  ;;  %3268 = vrcp.f32 %v1890_v55  ;;  %v5681_v51 = vld [vmem:[#allocation127_spill] sm:$0xff]  ;;  %v5682_v55 = vld [vmem:[#allocation128_spill] sm:$0xff]  ;;  %v5683_v56 = vld [vmem:[#allocation129_spill] sm:$0xff] }
 0x539   :  { %v4468_v50 = vmul.f32 %v1903_v35, %v128_v3  ;;  %3270 = vrcp.f32 %v1891_v10  ;;  %v5684_v35 = vld [vmem:[#allocation130_spill] sm:$0xff]  ;;  %v5685_v10 = vld [vmem:[#allocation131_spill] sm:$0xff]  ;;  %v5686_v3 = vld [vmem:[#allocation132_spill] sm:$0xff] }
 0x53a   :  { %3272 = vtanh.f32 %v4466_v1 }
 0x53b   :  { %3274 = vtanh.f32 %v4468_v50 }
 0x542   :  { %v3269_v27 = vpop.eup %3268 }
 0x543   :  { %v3271_v37 = vpop.eup %3270 }
 0x544   :  { %v3273_v0 = vpop.eup %3272 }
 0x545   :  { %v3275_v2 = vpop.eup %3274  ;;  %v1911_v26 = vmul.f32 %v3273_v0, %v3269_v27  ;;  %v5687_v27 = vld [vmem:[#allocation133_spill] sm:$0xff]  ;;  %v5689_v0 = vld [vmem:[#allocation135_spill] sm:$0xff] }
 0x546   :  { %v1912_v16 = vmul.f32 %v3275_v2, %v3271_v37  ;;  %v5688_v37 = vld [vmem:[#allocation134_spill] sm:$0xff]  ;;  %v5690_v2 = vld [vmem:[#allocation136_spill] sm:$0xff] }
 0x547   :  { %v4472_v48 = vpack.c.bf16 %v1911_v26, %v1911_v26 }
 0x548   :  { %v1930_v11 = vpack.c.bf16 %v1912_v16, %v1912_v16  ;;  %v3132_v18 = vpack.c.bf16 %v1912_v16, %v1911_v26  ;;  %v5691_v26 = vld [vmem:[#allocation137_spill] sm:$0xff]  ;;  %v5692_v16 = vld [vmem:[#allocation138_spill] sm:$0xff] }
 0x54a   :  { %1976 = vmatprep.mubr.bf16.mxu0 %v1930_v11  ;;  %2017 = vmatprep.mubr.bf16.mxu1 %v1930_v11  ;;  %1926 = vst [vmem:[#allocation10 + $0x18] sm:$0xff] %v3132_v18  ;;  %v5694_v18 = vld [vmem:[#allocation140_spill] sm:$0xff] }
 0x54b   :  { %1977 = vmatmul.mubr.bf16.vlgmr.msra.gmra.mrb[32].mxu0 %v4472_v48  ;;  %2018 = vmatmul.mubr.bf16.vlgmr.msra.gmra.mrb[32].mxu1 %v4472_v48 }
 0x54c   :  { %2027 = vmatpush1.bf16.msra.mxu0 %v5406_v63  ;;  %2068 = vmatpush1.bf16.msra.mxu1 %v5407_v41 }
 0x54d   :  { %2058 = vmatprep.mubr.bf16.mxu0 %v1930_v11  ;;  %2099 = vmatprep.mubr.bf16.mxu1 %v1930_v11  ;;  %v5693_v11 = vld [vmem:[#allocation139_spill] sm:$0xff] }
 0x54e   :  { %2028 = vmatprep.subr.bf16.mxu0 %v5408_v13  ;;  %2069 = vmatprep.subr.bf16.mxu1 %v5409_v8 }
 0x550   :  { %2029 = vmatpush1.bf16.msra.mxu0 %v5410_v24  ;;  %2070 = vmatpush1.bf16.msra.mxu1 %v5411_v12 }
 0x551   :  { %2030 = vmatprep.subr.bf16.mxu0 %v5412_v23  ;;  %2071 = vmatprep.subr.bf16.mxu1 %v5413_v42 }
 0x554   :  { %2031 = vmatpush1.bf16.msra.mxu0 %v5492_v61  ;;  %2072 = vmatpush1.bf16.msra.mxu1 %v5493_v36 }
 0x555   :  { %2032 = vmatprep.subr.bf16.mxu0 %v5494_v52  ;;  %2073 = vmatprep.subr.bf16.mxu1 %v5495_v31 }
 0x558   :  { %2033 = vmatpush1.bf16.msra.mxu0 %v5496_v44  ;;  %2074 = vmatpush1.bf16.msra.mxu1 %v5497_v30 }
 0x559   :  { %2034 = vmatprep.subr.bf16.mxu0 %v5498_v45  ;;  %2075 = vmatprep.subr.bf16.mxu1 %v5499_v28 }
 0x55c   :  { %2035 = vmatpush1.bf16.msra.mxu0 %v5500_v29  ;;  %2076 = vmatpush1.bf16.msra.mxu1 %v5501_v21 }
 0x55d   :  { %2036 = vmatprep.subr.bf16.mxu0 %v5502_v22  ;;  %2077 = vmatprep.subr.bf16.mxu1 %v5503_v46 }
 0x560   :  { %2037 = vmatpush1.bf16.msra.mxu0 %v5582_v15  ;;  %2078 = vmatpush1.bf16.msra.mxu1 %v5583_v59 }
 0x561   :  { %2038 = vmatprep.subr.bf16.mxu0 %v5584_v5  ;;  %2079 = vmatprep.subr.bf16.mxu1 %v5585_v43 }
 0x564   :  { %2039 = vmatpush1.bf16.msra.mxu0 %v5586_v6  ;;  %2080 = vmatpush1.bf16.msra.mxu1 %v5587_v49 }
 0x565   :  { %2040 = vmatprep.subr.bf16.mxu0 %v5510_v39  ;;  %2081 = vmatprep.subr.bf16.mxu1 %v5511_v19 }
 0x568   :  { %2041 = vmatpush1.bf16.msra.mxu0 %v5512_v20  ;;  %2082 = vmatpush1.bf16.msra.mxu1 %v5588_v17 }
 0x569   :  { %2042 = vmatprep.subr.bf16.mxu0 %v5514_v60  ;;  %2083 = vmatprep.subr.bf16.mxu1 %v5515_v47 }
 0x56c   :  { %2043 = vmatpush1.bf16.msra.mxu0 %v5516_v53  ;;  %2084 = vmatpush1.bf16.msra.mxu1 %v5517_v54 }
 0x56d   :  { %2044 = vmatprep.subr.bf16.mxu0 %v5518_v58  ;;  %2085 = vmatprep.subr.bf16.mxu1 %v5519_v38 }
 0x570   :  { %2045 = vmatpush1.bf16.msra.mxu0 %v5520_v57  ;;  %2086 = vmatpush1.bf16.msra.mxu1 %v5443_v25 }
 0x571   :  { %2046 = vmatprep.subr.bf16.mxu0 %v5672_v32  ;;  %2087 = vmatprep.subr.bf16.mxu1 %v5673_v9  ;;  %v1935_v9 = vld [vmem:[#allocation5 + $0x98] sm:$0xff] }
 0x574   :  { %2047 = vmatpush1.bf16.msra.mxu0 %v5674_v40  ;;  %2088 = vmatpush1.bf16.msra.mxu1 %v5675_v4 }
 0x575   :  { %2048 = vmatprep.subr.bf16.mxu0 %v5676_v62  ;;  %2089 = vmatprep.subr.bf16.mxu1 %v5677_v14 }
 0x578   :  { %2049 = vmatpush1.bf16.msra.mxu0 %v5678_v34  ;;  %2090 = vmatpush1.bf16.msra.mxu1 %v5679_v33 }
 0x579   :  { %2050 = vmatprep.subr.bf16.mxu0 %v5680_v7  ;;  %2091 = vmatprep.subr.bf16.mxu1 %v5681_v51  ;;  %v1932_v51 = vld [vmem:[#allocation5 + $0x80] sm:$0xff] }
 0x57a   :  { %v1936_v7 = vunpack.c.l.bf16 %v1932_v51  ;;  %v1937_v33 = vunpack.c.h.bf16 %v1932_v51 }
 0x57c   :  { %2051 = vmatpush1.bf16.msra.mxu0 %v5682_v55  ;;  %2092 = vmatpush1.bf16.msra.mxu1 %v5683_v56 }
 0x57d   :  { %2052 = vmatprep.subr.bf16.mxu0 %v5684_v35  ;;  %2093 = vmatprep.subr.bf16.mxu1 %v5685_v10  ;;  %v5695_v35 = vld [vmem:[#allocation141_spill] sm:$0xff]  ;;  %v5696_v10 = vld [vmem:[#allocation14_spill] sm:$0xff] }
 0x580   :  { %2053 = vmatpush1.bf16.msra.mxu0 %v5686_v3  ;;  %2094 = vmatpush1.bf16.msra.mxu1 %v5687_v27  ;;  %v5697_v3 = vld [vmem:[#allocation16_spill] sm:$0xff] }
 0x581   :  { %2054 = vmatprep.subr.bf16.mxu0 %v5688_v37  ;;  %2095 = vmatprep.subr.bf16.mxu1 %v5689_v0  ;;  %v5698_v0 = vld [vmem:[#allocation15_spill] sm:$0xff]  ;;  %v5707_v37 = vld [vmem:[#allocation25_spill] sm:$0xff] }
 0x584   :  { %2055 = vmatpush1.bf16.msra.mxu0 %v5690_v2  ;;  %2096 = vmatpush1.bf16.msra.mxu1 %v5691_v26  ;;  %v5699_v2 = vld [vmem:[#allocation17_spill] sm:$0xff]  ;;  %v5700_v26 = vld [vmem:[#allocation18_spill] sm:$0xff] }
 0x585   :  { %2056 = vmatprep.subr.bf16.mxu0 %v5692_v16  ;;  %2097 = vmatprep.subr.bf16.mxu1 %v5693_v11  ;;  %v5701_v16 = vld [vmem:[#allocation19_spill] sm:$0xff]  ;;  %v5702_v11 = vld [vmem:[#allocation20_spill] sm:$0xff] }
 0x588   :  { %2057 = vmatpush1.bf16.msra.mxu0 %v5694_v18  ;;  %2098 = vmatpush1.bf16.msra.mxu1 %v5695_v35  ;;  %v5703_v18 = vld [vmem:[#allocation21_spill] sm:$0xff]  ;;  %v5704_v35 = vld [vmem:[#allocation22_spill] sm:$0xff] }
 0x589   :  { %2194 = vmatprep.subr.bf16.mxu0 %v5696_v10  ;;  %2235 = vmatprep.subr.bf16.mxu1 %v5697_v3  ;;  %v5705_v10 = vld [vmem:[#allocation23_spill] sm:$0xff]  ;;  %v5706_v3 = vld [vmem:[#allocation24_spill] sm:$0xff] }
 0x58b   :  { %2059 = vmatmul.mubr.bf16.vlgmr.msra.gmra.mrb[36].mxu0 %v4472_v48  ;;  %2100 = vmatmul.mubr.bf16.vlgmr.msra.gmra.mrb[36].mxu1 %v4472_v48  ;;  %v5708_v48 = vld [vmem:[#allocation26_spill] sm:$0xff] }
 0x58c   :  { %2195 = vmatpush1.bf16.msra.mxu0 %v5698_v0  ;;  %2236 = vmatpush1.bf16.msra.mxu1 %v5699_v2  ;;  %v5709_v0 = vld [vmem:[#allocation27_spill] sm:$0xff]  ;;  %v5710_v2 = vld [vmem:[#allocation28_spill] sm:$0xff] }
 0x58d   :  { %2196 = vmatprep.subr.bf16.mxu0 %v5700_v26  ;;  %2237 = vmatprep.subr.bf16.mxu1 %v5701_v16  ;;  %v5711_v26 = vld [vmem:[#allocation29_spill] sm:$0xff]  ;;  %v5712_v16 = vld [vmem:[#allocation30_spill] sm:$0xff] }
 0x590   :  { %2197 = vmatpush1.bf16.msra.mxu0 %v5702_v11  ;;  %2238 = vmatpush1.bf16.msra.mxu1 %v5703_v18  ;;  %v5713_v11 = vld [vmem:[#allocation31_spill] sm:$0xff]  ;;  %v5714_v18 = vld [vmem:[#allocation32_spill] sm:$0xff] }
 0x591   :  { %2198 = vmatprep.subr.bf16.mxu0 %v5704_v35  ;;  %2239 = vmatprep.subr.bf16.mxu1 %v5705_v10  ;;  %v5715_v35 = vld [vmem:[#allocation33_spill] sm:$0xff]  ;;  %v5716_v10 = vld [vmem:[#allocation34_spill] sm:$0xff] }
 0x594   :  { %2199 = vmatpush1.bf16.msra.mxu0 %v5706_v3  ;;  %2240 = vmatpush1.bf16.msra.mxu1 %v5707_v37  ;;  %v5717_v3 = vld [vmem:[#allocation35_spill] sm:$0xff]  ;;  %v5718_v37 = vld [vmem:[#allocation36_spill] sm:$0xff] }
 0x595   :  { %2200 = vmatprep.subr.bf16.mxu0 %v5708_v48  ;;  %2241 = vmatprep.subr.bf16.mxu1 %v5709_v0  ;;  %v5719_v48 = vld [vmem:[#allocation37_spill] sm:$0xff]  ;;  %v5720_v0 = vld [vmem:[#allocation38_spill] sm:$0xff] }
 0x598   :  { %2201 = vmatpush1.bf16.msra.mxu0 %v5710_v2  ;;  %2242 = vmatpush1.bf16.msra.mxu1 %v5711_v26  ;;  %v5721_v2 = vld [vmem:[#allocation39_spill] sm:$0xff]  ;;  %v5722_v26 = vld [vmem:[#allocation40_spill] sm:$0xff] }
 0x599   :  { %2202 = vmatprep.subr.bf16.mxu0 %v5712_v16  ;;  %2243 = vmatprep.subr.bf16.mxu1 %v5713_v11  ;;  %v5723_v16 = vld [vmem:[#allocation41_spill] sm:$0xff]  ;;  %v5724_v11 = vld [vmem:[#allocation42_spill] sm:$0xff] }
 0x59c   :  { %2203 = vmatpush1.bf16.msra.mxu0 %v5714_v18  ;;  %2244 = vmatpush1.bf16.msra.mxu1 %v5715_v35  ;;  %v5725_v18 = vld [vmem:[#allocation43_spill] sm:$0xff]  ;;  %v5726_v35 = vld [vmem:[#allocation44_spill] sm:$0xff] }
 0x59d   :  { %2204 = vmatprep.subr.bf16.mxu0 %v5716_v10  ;;  %2245 = vmatprep.subr.bf16.mxu1 %v5717_v3  ;;  %v5727_v10 = vld [vmem:[#allocation45_spill] sm:$0xff]  ;;  %v5728_v3 = vld [vmem:[#allocation46_spill] sm:$0xff] }
 0x5a0   :  { %2205 = vmatpush1.bf16.msra.mxu0 %v5718_v37  ;;  %2246 = vmatpush1.bf16.msra.mxu1 %v5719_v48  ;;  %v5729_v37 = vld [vmem:[#allocation47_spill] sm:$0xff]  ;;  %v5730_v48 = vld [vmem:[#allocation48_spill] sm:$0xff] }
 0x5a1   :  { %2206 = vmatprep.subr.bf16.mxu0 %v5720_v0  ;;  %2247 = vmatprep.subr.bf16.mxu1 %v5721_v2  ;;  %v5731_v0 = vld [vmem:[#allocation49_spill] sm:$0xff]  ;;  %v5732_v2 = vld [vmem:[#allocation50_spill] sm:$0xff] }
 0x5a4   :  { %2207 = vmatpush1.bf16.msra.mxu0 %v5722_v26  ;;  %2248 = vmatpush1.bf16.msra.mxu1 %v5723_v16  ;;  %v5733_v26 = vld [vmem:[#allocation51_spill] sm:$0xff]  ;;  %v5734_v16 = vld [vmem:[#allocation52_spill] sm:$0xff] }
 0x5a5   :  { %2208 = vmatprep.subr.bf16.mxu0 %v5724_v11  ;;  %2249 = vmatprep.subr.bf16.mxu1 %v5725_v18  ;;  %v5735_v11 = vld [vmem:[#allocation53_spill] sm:$0xff]  ;;  %v5736_v18 = vld [vmem:[#allocation54_spill] sm:$0xff] }
 0x5a8   :  { %2209 = vmatpush1.bf16.msra.mxu0 %v5726_v35  ;;  %2250 = vmatpush1.bf16.msra.mxu1 %v5727_v10  ;;  %v5737_v35 = vld [vmem:[#allocation55_spill] sm:$0xff]  ;;  %v5738_v10 = vld [vmem:[#allocation56_spill] sm:$0xff] }
 0x5a9   :  { %2210 = vmatprep.subr.bf16.mxu0 %v5728_v3  ;;  %2251 = vmatprep.subr.bf16.mxu1 %v5729_v37  ;;  %v5739_v3 = vld [vmem:[#allocation57_spill] sm:$0xff]  ;;  %v5740_v37 = vld [vmem:[#allocation58_spill] sm:$0xff] }
 0x5ac   :  { %2211 = vmatpush1.bf16.msra.mxu0 %v5730_v48  ;;  %2252 = vmatpush1.bf16.msra.mxu1 %v5731_v0  ;;  %v5741_v48 = vld [vmem:[#allocation59_spill] sm:$0xff]  ;;  %v5742_v0 = vld [vmem:[#allocation60_spill] sm:$0xff] }
 0x5ad   :  { %2212 = vmatprep.subr.bf16.mxu0 %v5732_v2  ;;  %2253 = vmatprep.subr.bf16.mxu1 %v5733_v26  ;;  %v5743_v2 = vld [vmem:[#allocation61_spill] sm:$0xff]  ;;  %v5744_v26 = vld [vmem:[#allocation62_spill] sm:$0xff] }
 0x5b0   :  { %2213 = vmatpush1.bf16.msra.mxu0 %v5734_v16  ;;  %2254 = vmatpush1.bf16.msra.mxu1 %v5735_v11  ;;  %v5745_v16 = vld [vmem:[#allocation63_spill] sm:$0xff]  ;;  %v5746_v11 = vld [vmem:[#allocation64_spill] sm:$0xff] }
 0x5b1   :  { %2214 = vmatprep.subr.bf16.mxu0 %v5736_v18  ;;  %2255 = vmatprep.subr.bf16.mxu1 %v5737_v35  ;;  %v5747_v18 = vld [vmem:[#allocation65_spill] sm:$0xff]  ;;  %v5748_v35 = vld [vmem:[#allocation66_spill] sm:$0xff] }
 0x5b4   :  { %2215 = vmatpush1.bf16.msra.mxu0 %v5738_v10  ;;  %2256 = vmatpush1.bf16.msra.mxu1 %v5739_v3  ;;  %v5749_v10 = vld [vmem:[#allocation67_spill] sm:$0xff]  ;;  %v5750_v3 = vld [vmem:[#allocation68_spill] sm:$0xff] }
 0x5b5   :  { %2216 = vmatprep.subr.bf16.mxu0 %v5740_v37  ;;  %2257 = vmatprep.subr.bf16.mxu1 %v5741_v48  ;;  %v5751_v37 = vld [vmem:[#allocation69_spill] sm:$0xff]  ;;  %v5752_v48 = vld [vmem:[#allocation70_spill] sm:$0xff] }
 0x5b8   :  { %2217 = vmatpush1.bf16.msra.mxu0 %v5742_v0  ;;  %2258 = vmatpush1.bf16.msra.mxu1 %v5743_v2  ;;  %v5753_v0 = vld [vmem:[#allocation71_spill] sm:$0xff]  ;;  %v5754_v2 = vld [vmem:[#allocation72_spill] sm:$0xff] }
 0x5b9   :  { %2218 = vmatprep.subr.bf16.mxu0 %v5744_v26  ;;  %2259 = vmatprep.subr.bf16.mxu1 %v5745_v16  ;;  %v5755_v26 = vld [vmem:[#allocation73_spill] sm:$0xff]  ;;  %v5756_v16 = vld [vmem:[#allocation74_spill] sm:$0xff] }
 0x5bc   :  { %2219 = vmatpush1.bf16.msra.mxu0 %v5746_v11  ;;  %2260 = vmatpush1.bf16.msra.mxu1 %v5747_v18  ;;  %v5757_v11 = vld [vmem:[#allocation75_spill] sm:$0xff]  ;;  %v5758_v18 = vld [vmem:[#allocation76_spill] sm:$0xff] }
 0x5bd   :  { %2220 = vmatprep.subr.bf16.mxu0 %v5748_v35  ;;  %2261 = vmatprep.subr.bf16.mxu1 %v5749_v10  ;;  %v5759_v35 = vld [vmem:[#allocation77_spill] sm:$0xff]  ;;  %v5760_v10 = vld [vmem:[#allocation78_spill] sm:$0xff] }
 0x5c0   :  { %2221 = vmatpush1.bf16.msra.mxu0 %v5750_v3  ;;  %2262 = vmatpush1.bf16.msra.mxu1 %v5751_v37  ;;  %v5761_v3 = vld [vmem:[#allocation79_spill] sm:$0xff] }
 0x5c1   :  { %2222 = vmatprep.subr.bf16.mxu0 %v5752_v48  ;;  %2263 = vmatprep.subr.bf16.mxu1 %v5753_v0 }
 0x5c4   :  { %2223 = vmatpush1.bf16.msra.mxu0 %v5754_v2  ;;  %2264 = vmatpush1.bf16.msra.mxu1 %v5755_v26 }
 0x5c5   :  { %2224 = vmatprep.subr.bf16.mxu0 %v5756_v16  ;;  %2265 = vmatprep.subr.bf16.mxu1 %v5757_v11  ;;  %v1933_v16 = vld [vmem:[#allocation5 + $0x88] sm:$0xff] }
 0x5c6   :  { %v1938_v11 = vunpack.c.l.bf16 %v1933_v16 }
 0x5c8   :  { %2225 = vmatpush1.bf16.msra.mxu0 %v5758_v18  ;;  %2266 = vmatpush1.bf16.msra.mxu1 %v5759_v35  ;;  %v1939_v18 = vunpack.c.h.bf16 %v1933_v16 }
 0x5c9   :  { %2276 = vmatprep.subr.bf16.mxu0 %v5760_v10  ;;  %2317 = vmatprep.subr.bf16.mxu1 %v5761_v3 }
 0x61e   :  { %v1978_v37 = vpop.f32.mrb[32].mxu0  ;;  %v2019_v48 = vpop.f32.mrb[32].mxu1 }
 0x61f   :  { %v1980_v27 = vpop.f32.mrb[33].mxu0  ;;  %v2021_v0 = vpop.f32.mrb[33].mxu1  ;;  %v1979_v34 = vadd.f32 %v1978_v37, %v1936_v7  ;;  %v2020_v35 = vadd.f32 %v2019_v48, %v1938_v11 }
 0x620   :  { %v1982_v56 = vpop.f32.mrb[34].mxu0  ;;  %v2023_v2 = vpop.f32.mrb[34].mxu1  ;;  %v1981_v14 = vadd.f32 %v1980_v27, %v1937_v33  ;;  %v2022_v10 = vadd.f32 %v2021_v0, %v1939_v18  ;;  %v1942_v33 = vunpack.c.l.bf16 %v1935_v9 }
 0x621   :  { %v1983_v55 = vpop.f32.mrb[35].mxu0  ;;  %v2024_v26 = vpop.f32.mrb[35].mxu1  ;;  %v3101_v62 = vmul.f32 -1.442695, %v1979_v34  ;;  %v3103_v3 = vmul.f32 -1.442695, %v2020_v35  ;;  %v1943_v35 = vunpack.c.h.bf16 %v1935_v9 }
 0x622   :  { %v3102_v4 = vmul.f32 -1.442695, %v1981_v14  ;;  %v3104_v40 = vmul.f32 -1.442695, %v2022_v10  ;;  %v1934_v26 = vld [vmem:[#allocation5 + $0x90] sm:$0xff] }
 0x623   :  { %3276 = vpow2.f32 %v3101_v62  ;;  %v1940_v37 = vunpack.c.l.bf16 %v1934_v26  ;;  %v1941_v34 = vunpack.c.h.bf16 %v1934_v26 }
 0x624   :  { %3278 = vpow2.f32 %v3103_v3 }
 0x625   :  { %3280 = vpow2.f32 %v3102_v4 }
 0x626   :  { %3282 = vpow2.f32 %v3104_v40 }
 0x62d   :  { %v3277_v55 = vpop.eup %3276 }
 0x62e   :  { %v3279_v56 = vpop.eup %3278  ;;  %v2114_v51 = vadd.f32 1.0, %v3277_v55 }
 0x62f   :  { %v3281_v2 = vpop.eup %3280  ;;  %v2126_v16 = vadd.f32 1.0, %v3279_v56 }
 0x630   :  { %v3283_v32 = vpop.eup %3282  ;;  %v2115_v7 = vadd.f32 1.0, %v3281_v2  ;;  %3284 = vrcp.f32 %v2114_v51 }
 0x631   :  { %v2127_v27 = vadd.f32 1.0, %v3283_v32  ;;  %3286 = vrcp.f32 %v2126_v16 }
 0x632   :  { %3288 = vrcp.f32 %v2115_v7 }
 0x633   :  { %3290 = vrcp.f32 %v2127_v27 }
 0x63a   :  { %v3285_v2 = vpop.eup %3284 }
 0x63b   :  { %v3287_v26 = vpop.eup %3286 }
 0x63c   :  { %v3289_v51 = vpop.eup %3288 }
 0x63d   :  { %v3291_v16 = vpop.eup %3290 }
 0x65e   :  { %v2060_v62 = vpop.f32.mrb[36].mxu0  ;;  %v2101_v14 = vpop.f32.mrb[36].mxu1 }
 0x65f   :  { %v2061_v40 = vadd.f32 %v2060_v62, %v1940_v37  ;;  %v2102_v4 = vadd.f32 %v2101_v14, %v1942_v33  ;;  %v2062_v10 = vpop.f32.mrb[37].mxu0  ;;  %v2103_v3 = vpop.f32.mrb[37].mxu1  ;;  %v2148_v33 = vmul.f32 %v3287_v26, %v4466_v1 }
 0x660   :  { %v2063_v0 = vadd.f32 %v2062_v10, %v1941_v34  ;;  %v2104_v11 = vadd.f32 %v2103_v3, %v1943_v35  ;;  %v2064_v18 = vpop.f32.mrb[38].mxu0  ;;  %v2105_v48 = vpop.f32.mrb[38].mxu1  ;;  %v2149_v35 = vmul.f32 %v3291_v16, %v4468_v50  ;;  %v5762_v16 = vld [vmem:[#allocation118_spill] sm:$0xff] }
 0x661   :  { %3292 = vtanh.f32 %v2061_v40  ;;  %v3105_v55 = vmul.f32 -1.442695, %v2102_v4  ;;  %v2065_v56 = vpop.f32.mrb[39].mxu0  ;;  %v2106_v32 = vpop.f32.mrb[39].mxu1 }
 0x662   :  { %3294 = vtanh.f32 %v2063_v0  ;;  %v3106_v9 = vmul.f32 -1.442695, %v2104_v11  ;;  %v77_v10 = vpop.permute.xlu1 %76  ;;  %v133_v11 = vpop.permute.xlu0 %132 }
 0x663   :  { %3296 = vpow2.f32 %v3105_v55 }
 0x664   :  { %3298 = vpow2.f32 %v3106_v9 }
 0x66b   :  { %v3293_v7 = vpop.eup %3292 }
 0x66c   :  { %v3295_v37 = vpop.eup %3294  ;;  %v2150_v27 = vmul.f32 %v3293_v7, %v3285_v2  ;;  %v5763_v7 = vld [vmem:[#allocation119_spill] sm:$0xff] }
 0x66d   :  { %v3297_v34 = vpop.eup %3296  ;;  %v2151_v62 = vmul.f32 %v3295_v37, %v3289_v51  ;;  %v5764_v37 = vld [vmem:[#allocation120_spill] sm:$0xff] }
 0x66e   :  { %v3299_v14 = vpop.eup %3298  ;;  %v2152_v40 = vadd.f32 %v2150_v27, %v2148_v33  ;;  %v2140_v4 = vadd.f32 1.0, %v3297_v34  ;;  %v5765_v33 = vld [vmem:[#allocation121_spill] sm:$0xff]  ;;  %v5766_v27 = vld [vmem:[#allocation122_spill] sm:$0xff]  ;;  %v5767_v34 = vld [vmem:[#allocation123_spill] sm:$0xff] }
 0x66f   :  { %v2153_v3 = vadd.f32 %v2151_v62, %v2149_v35  ;;  %v2141_v0 = vadd.f32 1.0, %v3299_v14  ;;  %v5768_v35 = vld [vmem:[#allocation124_spill] sm:$0xff]  ;;  %v5769_v62 = vld [vmem:[#allocation125_spill] sm:$0xff]  ;;  %v5770_v14 = vld [vmem:[#allocation126_spill] sm:$0xff] }
 0x670   :  { %v4608_v18 = vmul.f32 %v2152_v40, %v77_v10  ;;  %3300 = vrcp.f32 %v2140_v4  ;;  %v5771_v40 = vld [vmem:[#allocation127_spill] sm:$0xff]  ;;  %v5772_v4 = vld [vmem:[#allocation128_spill] sm:$0xff]  ;;  %v5773_v10 = vld [vmem:[#allocation129_spill] sm:$0xff] }
 0x671   :  { %v4610_v48 = vmul.f32 %v2153_v3, %v133_v11  ;;  %3302 = vrcp.f32 %v2141_v0  ;;  %v5774_v3 = vld [vmem:[#allocation130_spill] sm:$0xff]  ;;  %v5775_v0 = vld [vmem:[#allocation131_spill] sm:$0xff]  ;;  %v5776_v11 = vld [vmem:[#allocation132_spill] sm:$0xff] }
 0x672   :  { %3304 = vtanh.f32 %v4608_v18 }
 0x673   :  { %3306 = vtanh.f32 %v4610_v48 }
 0x67a   :  { %v3301_v1 = vpop.eup %3300 }
 0x67b   :  { %v3303_v50 = vpop.eup %3302 }
 0x67c   :  { %v3305_v55 = vpop.eup %3304 }
 0x67d   :  { %v3307_v56 = vpop.eup %3306  ;;  %v2161_v32 = vmul.f32 %v3305_v55, %v3301_v1  ;;  %v5777_v1 = vld [vmem:[#allocation133_spill] sm:$0xff]  ;;  %v5779_v55 = vld [vmem:[#allocation135_spill] sm:$0xff] }
 0x67e   :  { %v2162_v9 = vmul.f32 %v3307_v56, %v3303_v50  ;;  %v5778_v50 = vld [vmem:[#allocation134_spill] sm:$0xff]  ;;  %v5780_v56 = vld [vmem:[#allocation136_spill] sm:$0xff] }
 0x67f   :  { %v4614_v51 = vpack.c.bf16 %v2161_v32, %v2161_v32 }
 0x680   :  { %v2180_v2 = vpack.c.bf16 %v2162_v9, %v2162_v9  ;;  %v3133_v26 = vpack.c.bf16 %v2162_v9, %v2161_v32  ;;  %v5781_v32 = vld [vmem:[#allocation137_spill] sm:$0xff]  ;;  %v5782_v9 = vld [vmem:[#allocation138_spill] sm:$0xff] }
 0x682   :  { %2226 = vmatprep.mubr.bf16.mxu0 %v2180_v2  ;;  %2267 = vmatprep.mubr.bf16.mxu1 %v2180_v2  ;;  %2176 = vst [vmem:[#allocation10 + $0x20] sm:$0xff] %v3133_v26  ;;  %v5784_v26 = vld [vmem:[#allocation140_spill] sm:$0xff] }
 0x683   :  { %2227 = vmatmul.mubr.bf16.vlgmr.msra.gmra.mrb[40].mxu0 %v4614_v51  ;;  %2268 = vmatmul.mubr.bf16.vlgmr.msra.gmra.mrb[40].mxu1 %v4614_v51 }
 0x684   :  { %2277 = vmatpush1.bf16.msra.mxu0 %v5406_v63  ;;  %2318 = vmatpush1.bf16.msra.mxu1 %v5407_v41 }
 0x685   :  { %2308 = vmatprep.mubr.bf16.mxu0 %v2180_v2  ;;  %2349 = vmatprep.mubr.bf16.mxu1 %v2180_v2  ;;  %v5783_v2 = vld [vmem:[#allocation139_spill] sm:$0xff] }
 0x686   :  { %2278 = vmatprep.subr.bf16.mxu0 %v5408_v13  ;;  %2319 = vmatprep.subr.bf16.mxu1 %v5409_v8 }
 0x688   :  { %2279 = vmatpush1.bf16.msra.mxu0 %v5410_v24  ;;  %2320 = vmatpush1.bf16.msra.mxu1 %v5411_v12 }
 0x689   :  { %2280 = vmatprep.subr.bf16.mxu0 %v5412_v23  ;;  %2321 = vmatprep.subr.bf16.mxu1 %v5413_v42 }
 0x68c   :  { %2281 = vmatpush1.bf16.msra.mxu0 %v5492_v61  ;;  %2322 = vmatpush1.bf16.msra.mxu1 %v5493_v36 }
 0x68d   :  { %2282 = vmatprep.subr.bf16.mxu0 %v5494_v52  ;;  %2323 = vmatprep.subr.bf16.mxu1 %v5495_v31 }
 0x690   :  { %2283 = vmatpush1.bf16.msra.mxu0 %v5496_v44  ;;  %2324 = vmatpush1.bf16.msra.mxu1 %v5497_v30 }
 0x691   :  { %2284 = vmatprep.subr.bf16.mxu0 %v5498_v45  ;;  %2325 = vmatprep.subr.bf16.mxu1 %v5499_v28 }
 0x694   :  { %2285 = vmatpush1.bf16.msra.mxu0 %v5500_v29  ;;  %2326 = vmatpush1.bf16.msra.mxu1 %v5501_v21 }
 0x695   :  { %2286 = vmatprep.subr.bf16.mxu0 %v5502_v22  ;;  %2327 = vmatprep.subr.bf16.mxu1 %v5503_v46 }
 0x698   :  { %2287 = vmatpush1.bf16.msra.mxu0 %v5582_v15  ;;  %2328 = vmatpush1.bf16.msra.mxu1 %v5583_v59 }
 0x699   :  { %2288 = vmatprep.subr.bf16.mxu0 %v5584_v5  ;;  %2329 = vmatprep.subr.bf16.mxu1 %v5585_v43 }
 0x69c   :  { %2289 = vmatpush1.bf16.msra.mxu0 %v5586_v6  ;;  %2330 = vmatpush1.bf16.msra.mxu1 %v5587_v49 }
 0x69d   :  { %2290 = vmatprep.subr.bf16.mxu0 %v5510_v39  ;;  %2331 = vmatprep.subr.bf16.mxu1 %v5511_v19 }
 0x6a0   :  { %2291 = vmatpush1.bf16.msra.mxu0 %v5512_v20  ;;  %2332 = vmatpush1.bf16.msra.mxu1 %v5588_v17 }
 0x6a1   :  { %2292 = vmatprep.subr.bf16.mxu0 %v5514_v60  ;;  %2333 = vmatprep.subr.bf16.mxu1 %v5515_v47 }
 0x6a4   :  { %2293 = vmatpush1.bf16.msra.mxu0 %v5516_v53  ;;  %2334 = vmatpush1.bf16.msra.mxu1 %v5517_v54 }
 0x6a5   :  { %2294 = vmatprep.subr.bf16.mxu0 %v5518_v58  ;;  %2335 = vmatprep.subr.bf16.mxu1 %v5519_v38 }
 0x6a8   :  { %2295 = vmatpush1.bf16.msra.mxu0 %v5520_v57  ;;  %2336 = vmatpush1.bf16.msra.mxu1 %v5443_v25 }
 0x6a9   :  { %2296 = vmatprep.subr.bf16.mxu0 %v5762_v16  ;;  %2337 = vmatprep.subr.bf16.mxu1 %v5763_v7  ;;  %v2185_v7 = vld [vmem:[#allocation5 + $0xb8] sm:$0xff] }
 0x6ac   :  { %2297 = vmatpush1.bf16.msra.mxu0 %v5764_v37  ;;  %2338 = vmatpush1.bf16.msra.mxu1 %v5765_v33 }
 0x6ad   :  { %2298 = vmatprep.subr.bf16.mxu0 %v5766_v27  ;;  %2339 = vmatprep.subr.bf16.mxu1 %v5767_v34 }
 0x6b0   :  { %2299 = vmatpush1.bf16.msra.mxu0 %v5768_v35  ;;  %2340 = vmatpush1.bf16.msra.mxu1 %v5769_v62 }
 0x6b1   :  { %2300 = vmatprep.subr.bf16.mxu0 %v5770_v14  ;;  %2341 = vmatprep.subr.bf16.mxu1 %v5771_v40  ;;  %v2182_v40 = vld [vmem:[#allocation5 + $0xa0] sm:$0xff] }
 0x6b2   :  { %v2186_v14 = vunpack.c.l.bf16 %v2182_v40  ;;  %v2187_v62 = vunpack.c.h.bf16 %v2182_v40 }
 0x6b4   :  { %2301 = vmatpush1.bf16.msra.mxu0 %v5772_v4  ;;  %2342 = vmatpush1.bf16.msra.mxu1 %v5773_v10 }
 0x6b5   :  { %2302 = vmatprep.subr.bf16.mxu0 %v5774_v3  ;;  %2343 = vmatprep.subr.bf16.mxu1 %v5775_v0  ;;  %v5785_v3 = vld [vmem:[#allocation141_spill] sm:$0xff]  ;;  %v5786_v0 = vld [vmem:[#allocation14_spill] sm:$0xff] }
 0x6b8   :  { %2303 = vmatpush1.bf16.msra.mxu0 %v5776_v11  ;;  %2344 = vmatpush1.bf16.msra.mxu1 %v5777_v1  ;;  %v5787_v11 = vld [vmem:[#allocation16_spill] sm:$0xff] }
 0x6b9   :  { %2304 = vmatprep.subr.bf16.mxu0 %v5778_v50  ;;  %2345 = vmatprep.subr.bf16.mxu1 %v5779_v55  ;;  %v5788_v55 = vld [vmem:[#allocation15_spill] sm:$0xff]  ;;  %v5797_v50 = vld [vmem:[#allocation25_spill] sm:$0xff] }
 0x6bc   :  { %2305 = vmatpush1.bf16.msra.mxu0 %v5780_v56  ;;  %2346 = vmatpush1.bf16.msra.mxu1 %v5781_v32  ;;  %v5789_v56 = vld [vmem:[#allocation17_spill] sm:$0xff]  ;;  %v5790_v32 = vld [vmem:[#allocation18_spill] sm:$0xff] }
 0x6bd   :  { %2306 = vmatprep.subr.bf16.mxu0 %v5782_v9  ;;  %2347 = vmatprep.subr.bf16.mxu1 %v5783_v2  ;;  %v5791_v9 = vld [vmem:[#allocation19_spill] sm:$0xff]  ;;  %v5792_v2 = vld [vmem:[#allocation20_spill] sm:$0xff] }
 0x6c0   :  { %2307 = vmatpush1.bf16.msra.mxu0 %v5784_v26  ;;  %2348 = vmatpush1.bf16.msra.mxu1 %v5785_v3  ;;  %v5793_v26 = vld [vmem:[#allocation21_spill] sm:$0xff]  ;;  %v5794_v3 = vld [vmem:[#allocation22_spill] sm:$0xff] }
 0x6c1   :  { %2444 = vmatprep.subr.bf16.mxu0 %v5786_v0  ;;  %2485 = vmatprep.subr.bf16.mxu1 %v5787_v11  ;;  %v5795_v0 = vld [vmem:[#allocation23_spill] sm:$0xff]  ;;  %v5796_v11 = vld [vmem:[#allocation24_spill] sm:$0xff] }
 0x6c3   :  { %2309 = vmatmul.mubr.bf16.vlgmr.msra.gmra.mrb[44].mxu0 %v4614_v51  ;;  %2350 = vmatmul.mubr.bf16.vlgmr.msra.gmra.mrb[44].mxu1 %v4614_v51  ;;  %v5798_v51 = vld [vmem:[#allocation26_spill] sm:$0xff] }
 0x6c4   :  { %2445 = vmatpush1.bf16.msra.mxu0 %v5788_v55  ;;  %2486 = vmatpush1.bf16.msra.mxu1 %v5789_v56  ;;  %v5799_v55 = vld [vmem:[#allocation27_spill] sm:$0xff]  ;;  %v5800_v56 = vld [vmem:[#allocation28_spill] sm:$0xff] }
 0x6c5   :  { %2446 = vmatprep.subr.bf16.mxu0 %v5790_v32  ;;  %2487 = vmatprep.subr.bf16.mxu1 %v5791_v9  ;;  %v5801_v32 = vld [vmem:[#allocation29_spill] sm:$0xff]  ;;  %v5802_v9 = vld [vmem:[#allocation30_spill] sm:$0xff] }
 0x6c8   :  { %2447 = vmatpush1.bf16.msra.mxu0 %v5792_v2  ;;  %2488 = vmatpush1.bf16.msra.mxu1 %v5793_v26  ;;  %v5803_v2 = vld [vmem:[#allocation31_spill] sm:$0xff]  ;;  %v5804_v26 = vld [vmem:[#allocation32_spill] sm:$0xff] }
 0x6c9   :  { %2448 = vmatprep.subr.bf16.mxu0 %v5794_v3  ;;  %2489 = vmatprep.subr.bf16.mxu1 %v5795_v0  ;;  %v5805_v3 = vld [vmem:[#allocation33_spill] sm:$0xff]  ;;  %v5806_v0 = vld [vmem:[#allocation34_spill] sm:$0xff] }
 0x6cc   :  { %2449 = vmatpush1.bf16.msra.mxu0 %v5796_v11  ;;  %2490 = vmatpush1.bf16.msra.mxu1 %v5797_v50  ;;  %v5807_v11 = vld [vmem:[#allocation35_spill] sm:$0xff]  ;;  %v5808_v50 = vld [vmem:[#allocation36_spill] sm:$0xff] }
 0x6cd   :  { %2450 = vmatprep.subr.bf16.mxu0 %v5798_v51  ;;  %2491 = vmatprep.subr.bf16.mxu1 %v5799_v55  ;;  %v5809_v51 = vld [vmem:[#allocation37_spill] sm:$0xff]  ;;  %v5810_v55 = vld [vmem:[#allocation38_spill] sm:$0xff] }
 0x6d0   :  { %2451 = vmatpush1.bf16.msra.mxu0 %v5800_v56  ;;  %2492 = vmatpush1.bf16.msra.mxu1 %v5801_v32  ;;  %v5811_v56 = vld [vmem:[#allocation39_spill] sm:$0xff]  ;;  %v5812_v32 = vld [vmem:[#allocation40_spill] sm:$0xff] }
 0x6d1   :  { %2452 = vmatprep.subr.bf16.mxu0 %v5802_v9  ;;  %2493 = vmatprep.subr.bf16.mxu1 %v5803_v2  ;;  %v5813_v9 = vld [vmem:[#allocation41_spill] sm:$0xff]  ;;  %v5814_v2 = vld [vmem:[#allocation42_spill] sm:$0xff] }
 0x6d4   :  { %2453 = vmatpush1.bf16.msra.mxu0 %v5804_v26  ;;  %2494 = vmatpush1.bf16.msra.mxu1 %v5805_v3  ;;  %v5815_v26 = vld [vmem:[#allocation43_spill] sm:$0xff]  ;;  %v5816_v3 = vld [vmem:[#allocation44_spill] sm:$0xff] }
 0x6d5   :  { %2454 = vmatprep.subr.bf16.mxu0 %v5806_v0  ;;  %2495 = vmatprep.subr.bf16.mxu1 %v5807_v11  ;;  %v5817_v0 = vld [vmem:[#allocation45_spill] sm:$0xff]  ;;  %v5818_v11 = vld [vmem:[#allocation46_spill] sm:$0xff] }
 0x6d8   :  { %2455 = vmatpush1.bf16.msra.mxu0 %v5808_v50  ;;  %2496 = vmatpush1.bf16.msra.mxu1 %v5809_v51  ;;  %v5819_v50 = vld [vmem:[#allocation47_spill] sm:$0xff]  ;;  %v5820_v51 = vld [vmem:[#allocation48_spill] sm:$0xff] }
 0x6d9   :  { %2456 = vmatprep.subr.bf16.mxu0 %v5810_v55  ;;  %2497 = vmatprep.subr.bf16.mxu1 %v5811_v56  ;;  %v5821_v55 = vld [vmem:[#allocation49_spill] sm:$0xff]  ;;  %v5822_v56 = vld [vmem:[#allocation50_spill] sm:$0xff] }
 0x6dc   :  { %2457 = vmatpush1.bf16.msra.mxu0 %v5812_v32  ;;  %2498 = vmatpush1.bf16.msra.mxu1 %v5813_v9  ;;  %v5823_v32 = vld [vmem:[#allocation51_spill] sm:$0xff]  ;;  %v5824_v9 = vld [vmem:[#allocation52_spill] sm:$0xff] }
 0x6dd   :  { %2458 = vmatprep.subr.bf16.mxu0 %v5814_v2  ;;  %2499 = vmatprep.subr.bf16.mxu1 %v5815_v26  ;;  %v5825_v2 = vld [vmem:[#allocation53_spill] sm:$0xff]  ;;  %v5826_v26 = vld [vmem:[#allocation54_spill] sm:$0xff] }
 0x6e0   :  { %2459 = vmatpush1.bf16.msra.mxu0 %v5816_v3  ;;  %2500 = vmatpush1.bf16.msra.mxu1 %v5817_v0  ;;  %v5827_v3 = vld [vmem:[#allocation55_spill] sm:$0xff]  ;;  %v5828_v0 = vld [vmem:[#allocation56_spill] sm:$0xff] }
 0x6e1   :  { %2460 = vmatprep.subr.bf16.mxu0 %v5818_v11  ;;  %2501 = vmatprep.subr.bf16.mxu1 %v5819_v50  ;;  %v5829_v11 = vld [vmem:[#allocation57_spill] sm:$0xff]  ;;  %v5830_v50 = vld [vmem:[#allocation58_spill] sm:$0xff] }
 0x6e4   :  { %2461 = vmatpush1.bf16.msra.mxu0 %v5820_v51  ;;  %2502 = vmatpush1.bf16.msra.mxu1 %v5821_v55  ;;  %v5831_v51 = vld [vmem:[#allocation59_spill] sm:$0xff]  ;;  %v5832_v55 = vld [vmem:[#allocation60_spill] sm:$0xff] }
 0x6e5   :  { %2462 = vmatprep.subr.bf16.mxu0 %v5822_v56  ;;  %2503 = vmatprep.subr.bf16.mxu1 %v5823_v32  ;;  %v5833_v56 = vld [vmem:[#allocation61_spill] sm:$0xff]  ;;  %v5834_v32 = vld [vmem:[#allocation62_spill] sm:$0xff] }
 0x6e8   :  { %2463 = vmatpush1.bf16.msra.mxu0 %v5824_v9  ;;  %2504 = vmatpush1.bf16.msra.mxu1 %v5825_v2  ;;  %v5835_v9 = vld [vmem:[#allocation63_spill] sm:$0xff]  ;;  %v5836_v2 = vld [vmem:[#allocation64_spill] sm:$0xff] }
 0x6e9   :  { %2464 = vmatprep.subr.bf16.mxu0 %v5826_v26  ;;  %2505 = vmatprep.subr.bf16.mxu1 %v5827_v3  ;;  %v5837_v26 = vld [vmem:[#allocation65_spill] sm:$0xff]  ;;  %v5838_v3 = vld [vmem:[#allocation66_spill] sm:$0xff] }
 0x6ec   :  { %2465 = vmatpush1.bf16.msra.mxu0 %v5828_v0  ;;  %2506 = vmatpush1.bf16.msra.mxu1 %v5829_v11  ;;  %v5839_v0 = vld [vmem:[#allocation67_spill] sm:$0xff]  ;;  %v5840_v11 = vld [vmem:[#allocation68_spill] sm:$0xff] }
 0x6ed   :  { %2466 = vmatprep.subr.bf16.mxu0 %v5830_v50  ;;  %2507 = vmatprep.subr.bf16.mxu1 %v5831_v51  ;;  %v5841_v50 = vld [vmem:[#allocation69_spill] sm:$0xff]  ;;  %v5842_v51 = vld [vmem:[#allocation70_spill] sm:$0xff] }
 0x6f0   :  { %2467 = vmatpush1.bf16.msra.mxu0 %v5832_v55  ;;  %2508 = vmatpush1.bf16.msra.mxu1 %v5833_v56  ;;  %v5843_v55 = vld [vmem:[#allocation71_spill] sm:$0xff]  ;;  %v5844_v56 = vld [vmem:[#allocation72_spill] sm:$0xff] }
 0x6f1   :  { %2468 = vmatprep.subr.bf16.mxu0 %v5834_v32  ;;  %2509 = vmatprep.subr.bf16.mxu1 %v5835_v9  ;;  %v5845_v32 = vld [vmem:[#allocation73_spill] sm:$0xff]  ;;  %v5846_v9 = vld [vmem:[#allocation74_spill] sm:$0xff] }
 0x6f4   :  { %2469 = vmatpush1.bf16.msra.mxu0 %v5836_v2  ;;  %2510 = vmatpush1.bf16.msra.mxu1 %v5837_v26  ;;  %v5847_v2 = vld [vmem:[#allocation75_spill] sm:$0xff]  ;;  %v5848_v26 = vld [vmem:[#allocation76_spill] sm:$0xff] }
 0x6f5   :  { %2470 = vmatprep.subr.bf16.mxu0 %v5838_v3  ;;  %2511 = vmatprep.subr.bf16.mxu1 %v5839_v0  ;;  %v5849_v3 = vld [vmem:[#allocation77_spill] sm:$0xff]  ;;  %v5850_v0 = vld [vmem:[#allocation78_spill] sm:$0xff] }
 0x6f8   :  { %2471 = vmatpush1.bf16.msra.mxu0 %v5840_v11  ;;  %2512 = vmatpush1.bf16.msra.mxu1 %v5841_v50  ;;  %v5851_v11 = vld [vmem:[#allocation79_spill] sm:$0xff] }
 0x6f9   :  { %2472 = vmatprep.subr.bf16.mxu0 %v5842_v51  ;;  %2513 = vmatprep.subr.bf16.mxu1 %v5843_v55 }
 0x6fc   :  { %2473 = vmatpush1.bf16.msra.mxu0 %v5844_v56  ;;  %2514 = vmatpush1.bf16.msra.mxu1 %v5845_v32 }
 0x6fd   :  { %2474 = vmatprep.subr.bf16.mxu0 %v5846_v9  ;;  %2515 = vmatprep.subr.bf16.mxu1 %v5847_v2  ;;  %v2183_v9 = vld [vmem:[#allocation5 + $0xa8] sm:$0xff] }
 0x6fe   :  { %v2188_v2 = vunpack.c.l.bf16 %v2183_v9 }
 0x700   :  { %2475 = vmatpush1.bf16.msra.mxu0 %v5848_v26  ;;  %2516 = vmatpush1.bf16.msra.mxu1 %v5849_v3  ;;  %v2189_v26 = vunpack.c.h.bf16 %v2183_v9 }
 0x701   :  { %2526 = vmatprep.subr.bf16.mxu0 %v5850_v0  ;;  %2567 = vmatprep.subr.bf16.mxu1 %v5851_v11 }
 0x756   :  { %v2228_v50 = vpop.f32.mrb[40].mxu0  ;;  %v2269_v51 = vpop.f32.mrb[40].mxu1 }
 0x757   :  { %v2230_v1 = vpop.f32.mrb[41].mxu0  ;;  %v2271_v55 = vpop.f32.mrb[41].mxu1  ;;  %v2229_v35 = vadd.f32 %v2228_v50, %v2186_v14  ;;  %v2270_v3 = vadd.f32 %v2269_v51, %v2188_v2 }
 0x758   :  { %v2232_v10 = vpop.f32.mrb[42].mxu0  ;;  %v2273_v56 = vpop.f32.mrb[42].mxu1  ;;  %v2231_v34 = vadd.f32 %v2230_v1, %v2187_v62  ;;  %v2272_v0 = vadd.f32 %v2271_v55, %v2189_v26  ;;  %v2192_v62 = vunpack.c.l.bf16 %v2185_v7 }
 0x759   :  { %v2233_v4 = vpop.f32.mrb[43].mxu0  ;;  %v2274_v32 = vpop.f32.mrb[43].mxu1  ;;  %v3108_v27 = vmul.f32 -1.442695, %v2229_v35  ;;  %v3110_v11 = vmul.f32 -1.442695, %v2270_v3  ;;  %v2193_v3 = vunpack.c.h.bf16 %v2185_v7 }
 0x75a   :  { %v3109_v33 = vmul.f32 -1.442695, %v2231_v34  ;;  %v3111_v37 = vmul.f32 -1.442695, %v2272_v0  ;;  %v2184_v32 = vld [vmem:[#allocation5 + $0xb0] sm:$0xff] }
 0x75b   :  { %3308 = vpow2.f32 %v3108_v27  ;;  %v2190_v50 = vunpack.c.l.bf16 %v2184_v32  ;;  %v2191_v35 = vunpack.c.h.bf16 %v2184_v32 }
 0x75c   :  { %3310 = vpow2.f32 %v3110_v11 }
 0x75d   :  { %3312 = vpow2.f32 %v3109_v33 }
 0x75e   :  { %3314 = vpow2.f32 %v3111_v37 }
 0x765   :  { %v3309_v4 = vpop.eup %3308 }
 0x766   :  { %v3311_v10 = vpop.eup %3310  ;;  %v2364_v40 = vadd.f32 1.0, %v3309_v4 }
 0x767   :  { %v3313_v56 = vpop.eup %3312  ;;  %v2376_v9 = vadd.f32 1.0, %v3311_v10 }
 0x768   :  { %v3315_v16 = vpop.eup %3314  ;;  %v2365_v14 = vadd.f32 1.0, %v3313_v56  ;;  %3316 = vrcp.f32 %v2364_v40 }
 0x769   :  { %v2377_v1 = vadd.f32 1.0, %v3315_v16  ;;  %3318 = vrcp.f32 %v2376_v9 }
 0x76a   :  { %3320 = vrcp.f32 %v2365_v14 }
 0x76b   :  { %3322 = vrcp.f32 %v2377_v1 }
 0x772   :  { %v3317_v56 = vpop.eup %3316 }
 0x773   :  { %v3319_v32 = vpop.eup %3318 }
 0x774   :  { %v3321_v40 = vpop.eup %3320 }
 0x775   :  { %v3323_v9 = vpop.eup %3322 }
 0x796   :  { %v2310_v27 = vpop.f32.mrb[44].mxu0  ;;  %v2351_v34 = vpop.f32.mrb[44].mxu1 }
 0x797   :  { %v2311_v37 = vadd.f32 %v2310_v27, %v2190_v50  ;;  %v2352_v33 = vadd.f32 %v2351_v34, %v2192_v62  ;;  %v2312_v0 = vpop.f32.mrb[45].mxu0  ;;  %v2353_v11 = vpop.f32.mrb[45].mxu1  ;;  %v2398_v62 = vmul.f32 %v3319_v32, %v4608_v18 }
 0x798   :  { %v2313_v55 = vadd.f32 %v2312_v0, %v2191_v35  ;;  %v2354_v2 = vadd.f32 %v2353_v11, %v2193_v3  ;;  %v2314_v26 = vpop.f32.mrb[46].mxu0  ;;  %v2355_v51 = vpop.f32.mrb[46].mxu1  ;;  %v2399_v3 = vmul.f32 %v3323_v9, %v4610_v48  ;;  %v5852_v9 = vld [vmem:[#allocation118_spill] sm:$0xff] }
 0x799   :  { %3324 = vtanh.f32 %v2311_v37  ;;  %v3112_v4 = vmul.f32 -1.442695, %v2352_v33  ;;  %v2315_v10 = vpop.f32.mrb[47].mxu0  ;;  %v2356_v16 = vpop.f32.mrb[47].mxu1 }
 0x79a   :  { %3326 = vtanh.f32 %v2313_v55  ;;  %v3113_v7 = vmul.f32 -1.442695, %v2354_v2  ;;  %v82_v0 = vpop.permute.xlu1 %81  ;;  %v138_v2 = vpop.permute.xlu0 %137 }
 0x79b   :  { %3328 = vpow2.f32 %v3112_v4 }
 0x79c   :  { %3330 = vpow2.f32 %v3113_v7 }
 0x7a3   :  { %v3325_v14 = vpop.eup %3324 }
 0x7a4   :  { %v3327_v50 = vpop.eup %3326  ;;  %v2400_v1 = vmul.f32 %v3325_v14, %v3317_v56  ;;  %v5853_v14 = vld [vmem:[#allocation119_spill] sm:$0xff] }
 0x7a5   :  { %v3329_v35 = vpop.eup %3328  ;;  %v2401_v27 = vmul.f32 %v3327_v50, %v3321_v40  ;;  %v5854_v50 = vld [vmem:[#allocation120_spill] sm:$0xff] }
 0x7a6   :  { %v3331_v34 = vpop.eup %3330  ;;  %v2402_v37 = vadd.f32 %v2400_v1, %v2398_v62  ;;  %v2390_v33 = vadd.f32 1.0, %v3329_v35  ;;  %v5855_v62 = vld [vmem:[#allocation121_spill] sm:$0xff]  ;;  %v5856_v1 = vld [vmem:[#allocation122_spill] sm:$0xff]  ;;  %v5857_v35 = vld [vmem:[#allocation123_spill] sm:$0xff] }
 0x7a7   :  { %v2403_v11 = vadd.f32 %v2401_v27, %v2399_v3  ;;  %v2391_v55 = vadd.f32 1.0, %v3331_v34  ;;  %v5858_v3 = vld [vmem:[#allocation124_spill] sm:$0xff]  ;;  %v5859_v27 = vld [vmem:[#allocation125_spill] sm:$0xff]  ;;  %v5860_v34 = vld [vmem:[#allocation126_spill] sm:$0xff] }
 0x7a8   :  { %v4750_v26 = vmul.f32 %v2402_v37, %v82_v0  ;;  %3332 = vrcp.f32 %v2390_v33  ;;  %v5861_v37 = vld [vmem:[#allocation127_spill] sm:$0xff]  ;;  %v5862_v33 = vld [vmem:[#allocation128_spill] sm:$0xff]  ;;  %v5863_v0 = vld [vmem:[#allocation129_spill] sm:$0xff] }
 0x7a9   :  { %v4752_v51 = vmul.f32 %v2403_v11, %v138_v2  ;;  %3334 = vrcp.f32 %v2391_v55  ;;  %v5864_v11 = vld [vmem:[#allocation130_spill] sm:$0xff]  ;;  %v5865_v55 = vld [vmem:[#allocation131_spill] sm:$0xff]  ;;  %v5866_v2 = vld [vmem:[#allocation132_spill] sm:$0xff] }
 0x7aa   :  { %3336 = vtanh.f32 %v4750_v26 }
 0x7ab   :  { %3338 = vtanh.f32 %v4752_v51 }
 0x7b2   :  { %v3333_v18 = vpop.eup %3332 }
 0x7b3   :  { %v3335_v48 = vpop.eup %3334 }
 0x7b4   :  { %v3337_v4 = vpop.eup %3336 }
 0x7b5   :  { %v3339_v10 = vpop.eup %3338  ;;  %v2411_v16 = vmul.f32 %v3337_v4, %v3333_v18  ;;  %v5867_v18 = vld [vmem:[#allocation133_spill] sm:$0xff]  ;;  %v5869_v4 = vld [vmem:[#allocation135_spill] sm:$0xff] }
 0x7b6   :  { %v2412_v7 = vmul.f32 %v3339_v10, %v3335_v48  ;;  %v5868_v48 = vld [vmem:[#allocation134_spill] sm:$0xff]  ;;  %v5870_v10 = vld [vmem:[#allocation136_spill] sm:$0xff] }
 0x7b7   :  { %v4756_v40 = vpack.c.bf16 %v2411_v16, %v2411_v16 }
 0x7b8   :  { %v2430_v56 = vpack.c.bf16 %v2412_v7, %v2412_v7  ;;  %v3134_v32 = vpack.c.bf16 %v2412_v7, %v2411_v16  ;;  %v5871_v16 = vld [vmem:[#allocation137_spill] sm:$0xff]  ;;  %v5872_v7 = vld [vmem:[#allocation138_spill] sm:$0xff] }
 0x7ba   :  { %2476 = vmatprep.mubr.bf16.mxu0 %v2430_v56  ;;  %2517 = vmatprep.mubr.bf16.mxu1 %v2430_v56  ;;  %2426 = vst [vmem:[#allocation10 + $0x28] sm:$0xff] %v3134_v32  ;;  %v5874_v32 = vld [vmem:[#allocation140_spill] sm:$0xff] }
 0x7bb   :  { %2477 = vmatmul.mubr.bf16.vlgmr.msra.gmra.mrb[48].mxu0 %v4756_v40  ;;  %2518 = vmatmul.mubr.bf16.vlgmr.msra.gmra.mrb[48].mxu1 %v4756_v40 }
 0x7bc   :  { %2527 = vmatpush1.bf16.msra.mxu0 %v5406_v63  ;;  %2568 = vmatpush1.bf16.msra.mxu1 %v5407_v41 }
 0x7bd   :  { %2558 = vmatprep.mubr.bf16.mxu0 %v2430_v56  ;;  %2599 = vmatprep.mubr.bf16.mxu1 %v2430_v56  ;;  %v5873_v56 = vld [vmem:[#allocation139_spill] sm:$0xff] }
 0x7be   :  { %2528 = vmatprep.subr.bf16.mxu0 %v5408_v13  ;;  %2569 = vmatprep.subr.bf16.mxu1 %v5409_v8 }
 0x7c0   :  { %2529 = vmatpush1.bf16.msra.mxu0 %v5410_v24  ;;  %2570 = vmatpush1.bf16.msra.mxu1 %v5411_v12 }
 0x7c1   :  { %2530 = vmatprep.subr.bf16.mxu0 %v5412_v23  ;;  %2571 = vmatprep.subr.bf16.mxu1 %v5413_v42 }
 0x7c4   :  { %2531 = vmatpush1.bf16.msra.mxu0 %v5492_v61  ;;  %2572 = vmatpush1.bf16.msra.mxu1 %v5493_v36 }
 0x7c5   :  { %2532 = vmatprep.subr.bf16.mxu0 %v5494_v52  ;;  %2573 = vmatprep.subr.bf16.mxu1 %v5495_v31 }
 0x7c8   :  { %2533 = vmatpush1.bf16.msra.mxu0 %v5496_v44  ;;  %2574 = vmatpush1.bf16.msra.mxu1 %v5497_v30 }
 0x7c9   :  { %2534 = vmatprep.subr.bf16.mxu0 %v5498_v45  ;;  %2575 = vmatprep.subr.bf16.mxu1 %v5499_v28 }
 0x7cc   :  { %2535 = vmatpush1.bf16.msra.mxu0 %v5500_v29  ;;  %2576 = vmatpush1.bf16.msra.mxu1 %v5501_v21 }
 0x7cd   :  { %2536 = vmatprep.subr.bf16.mxu0 %v5502_v22  ;;  %2577 = vmatprep.subr.bf16.mxu1 %v5503_v46 }
 0x7d0   :  { %2537 = vmatpush1.bf16.msra.mxu0 %v5582_v15  ;;  %2578 = vmatpush1.bf16.msra.mxu1 %v5583_v59 }
 0x7d1   :  { %2538 = vmatprep.subr.bf16.mxu0 %v5584_v5  ;;  %2579 = vmatprep.subr.bf16.mxu1 %v5585_v43 }
 0x7d4   :  { %2539 = vmatpush1.bf16.msra.mxu0 %v5586_v6  ;;  %2580 = vmatpush1.bf16.msra.mxu1 %v5587_v49 }
 0x7d5   :  { %2540 = vmatprep.subr.bf16.mxu0 %v5510_v39  ;;  %2581 = vmatprep.subr.bf16.mxu1 %v5511_v19 }
 0x7d8   :  { %2541 = vmatpush1.bf16.msra.mxu0 %v5512_v20  ;;  %2582 = vmatpush1.bf16.msra.mxu1 %v5588_v17 }
 0x7d9   :  { %2542 = vmatprep.subr.bf16.mxu0 %v5514_v60  ;;  %2583 = vmatprep.subr.bf16.mxu1 %v5515_v47 }
 0x7dc   :  { %2543 = vmatpush1.bf16.msra.mxu0 %v5516_v53  ;;  %2584 = vmatpush1.bf16.msra.mxu1 %v5517_v54 }
 0x7dd   :  { %2544 = vmatprep.subr.bf16.mxu0 %v5518_v58  ;;  %2585 = vmatprep.subr.bf16.mxu1 %v5519_v38 }
 0x7e0   :  { %2545 = vmatpush1.bf16.msra.mxu0 %v5520_v57  ;;  %2586 = vmatpush1.bf16.msra.mxu1 %v5443_v25 }
 0x7e1   :  { %2546 = vmatprep.subr.bf16.mxu0 %v5852_v9  ;;  %2587 = vmatprep.subr.bf16.mxu1 %v5853_v14  ;;  %v2435_v14 = vld [vmem:[#allocation5 + $0xd8] sm:$0xff] }
 0x7e4   :  { %2547 = vmatpush1.bf16.msra.mxu0 %v5854_v50  ;;  %2588 = vmatpush1.bf16.msra.mxu1 %v5855_v62 }
 0x7e5   :  { %2548 = vmatprep.subr.bf16.mxu0 %v5856_v1  ;;  %2589 = vmatprep.subr.bf16.mxu1 %v5857_v35 }
 0x7e8   :  { %2549 = vmatpush1.bf16.msra.mxu0 %v5858_v3  ;;  %2590 = vmatpush1.bf16.msra.mxu1 %v5859_v27 }
 0x7e9   :  { %2550 = vmatprep.subr.bf16.mxu0 %v5860_v34  ;;  %2591 = vmatprep.subr.bf16.mxu1 %v5861_v37  ;;  %v2432_v37 = vld [vmem:[#allocation5 + $0xc0] sm:$0xff] }
 0x7ea   :  { %v2436_v34 = vunpack.c.l.bf16 %v2432_v37  ;;  %v2437_v27 = vunpack.c.h.bf16 %v2432_v37 }
 0x7ec   :  { %2551 = vmatpush1.bf16.msra.mxu0 %v5862_v33  ;;  %2592 = vmatpush1.bf16.msra.mxu1 %v5863_v0 }
 0x7ed   :  { %2552 = vmatprep.subr.bf16.mxu0 %v5864_v11  ;;  %2593 = vmatprep.subr.bf16.mxu1 %v5865_v55  ;;  %v5875_v11 = vld [vmem:[#allocation141_spill] sm:$0xff]  ;;  %v5876_v55 = vld [vmem:[#allocation14_spill] sm:$0xff] }
 0x7f0   :  { %2553 = vmatpush1.bf16.msra.mxu0 %v5866_v2  ;;  %2594 = vmatpush1.bf16.msra.mxu1 %v5867_v18  ;;  %v5877_v2 = vld [vmem:[#allocation16_spill] sm:$0xff] }
 0x7f1   :  { %2554 = vmatprep.subr.bf16.mxu0 %v5868_v48  ;;  %2595 = vmatprep.subr.bf16.mxu1 %v5869_v4  ;;  %v5878_v4 = vld [vmem:[#allocation15_spill] sm:$0xff]  ;;  %v5887_v48 = vld [vmem:[#allocation25_spill] sm:$0xff] }
 0x7f4   :  { %2555 = vmatpush1.bf16.msra.mxu0 %v5870_v10  ;;  %2596 = vmatpush1.bf16.msra.mxu1 %v5871_v16  ;;  %v5879_v10 = vld [vmem:[#allocation17_spill] sm:$0xff]  ;;  %v5880_v16 = vld [vmem:[#allocation18_spill] sm:$0xff] }
 0x7f5   :  { %2556 = vmatprep.subr.bf16.mxu0 %v5872_v7  ;;  %2597 = vmatprep.subr.bf16.mxu1 %v5873_v56  ;;  %v5881_v7 = vld [vmem:[#allocation19_spill] sm:$0xff]  ;;  %v5882_v56 = vld [vmem:[#allocation20_spill] sm:$0xff] }
 0x7f8   :  { %2557 = vmatpush1.bf16.msra.mxu0 %v5874_v32  ;;  %2598 = vmatpush1.bf16.msra.mxu1 %v5875_v11  ;;  %v5883_v32 = vld [vmem:[#allocation21_spill] sm:$0xff]  ;;  %v5884_v11 = vld [vmem:[#allocation22_spill] sm:$0xff] }
 0x7f9   :  { %2694 = vmatprep.subr.bf16.mxu0 %v5876_v55  ;;  %2735 = vmatprep.subr.bf16.mxu1 %v5877_v2  ;;  %v5885_v55 = vld [vmem:[#allocation23_spill] sm:$0xff]  ;;  %v5886_v2 = vld [vmem:[#allocation24_spill] sm:$0xff] }
 0x7fb   :  { %2559 = vmatmul.mubr.bf16.vlgmr.msra.gmra.mrb[52].mxu0 %v4756_v40  ;;  %2600 = vmatmul.mubr.bf16.vlgmr.msra.gmra.mrb[52].mxu1 %v4756_v40  ;;  %v5888_v40 = vld [vmem:[#allocation26_spill] sm:$0xff] }
 0x7fc   :  { %2695 = vmatpush1.bf16.msra.mxu0 %v5878_v4  ;;  %2736 = vmatpush1.bf16.msra.mxu1 %v5879_v10  ;;  %v5889_v4 = vld [vmem:[#allocation27_spill] sm:$0xff]  ;;  %v5890_v10 = vld [vmem:[#allocation28_spill] sm:$0xff] }
 0x7fd   :  { %2696 = vmatprep.subr.bf16.mxu0 %v5880_v16  ;;  %2737 = vmatprep.subr.bf16.mxu1 %v5881_v7  ;;  %v5891_v16 = vld [vmem:[#allocation29_spill] sm:$0xff]  ;;  %v5892_v7 = vld [vmem:[#allocation30_spill] sm:$0xff] }
 0x800   :  { %2697 = vmatpush1.bf16.msra.mxu0 %v5882_v56  ;;  %2738 = vmatpush1.bf16.msra.mxu1 %v5883_v32  ;;  %v5893_v56 = vld [vmem:[#allocation31_spill] sm:$0xff]  ;;  %v5894_v32 = vld [vmem:[#allocation32_spill] sm:$0xff] }
 0x801   :  { %2698 = vmatprep.subr.bf16.mxu0 %v5884_v11  ;;  %2739 = vmatprep.subr.bf16.mxu1 %v5885_v55  ;;  %v5895_v11 = vld [vmem:[#allocation33_spill] sm:$0xff]  ;;  %v5896_v55 = vld [vmem:[#allocation34_spill] sm:$0xff] }
 0x804   :  { %2699 = vmatpush1.bf16.msra.mxu0 %v5886_v2  ;;  %2740 = vmatpush1.bf16.msra.mxu1 %v5887_v48  ;;  %v5897_v2 = vld [vmem:[#allocation35_spill] sm:$0xff]  ;;  %v5898_v48 = vld [vmem:[#allocation36_spill] sm:$0xff] }
 0x805   :  { %2700 = vmatprep.subr.bf16.mxu0 %v5888_v40  ;;  %2741 = vmatprep.subr.bf16.mxu1 %v5889_v4  ;;  %v5899_v40 = vld [vmem:[#allocation37_spill] sm:$0xff]  ;;  %v5900_v4 = vld [vmem:[#allocation38_spill] sm:$0xff] }
 0x808   :  { %2701 = vmatpush1.bf16.msra.mxu0 %v5890_v10  ;;  %2742 = vmatpush1.bf16.msra.mxu1 %v5891_v16  ;;  %v5901_v10 = vld [vmem:[#allocation39_spill] sm:$0xff]  ;;  %v5902_v16 = vld [vmem:[#allocation40_spill] sm:$0xff] }
 0x809   :  { %2702 = vmatprep.subr.bf16.mxu0 %v5892_v7  ;;  %2743 = vmatprep.subr.bf16.mxu1 %v5893_v56  ;;  %v5903_v7 = vld [vmem:[#allocation41_spill] sm:$0xff]  ;;  %v5904_v56 = vld [vmem:[#allocation42_spill] sm:$0xff] }
 0x80c   :  { %2703 = vmatpush1.bf16.msra.mxu0 %v5894_v32  ;;  %2744 = vmatpush1.bf16.msra.mxu1 %v5895_v11  ;;  %v5905_v32 = vld [vmem:[#allocation43_spill] sm:$0xff]  ;;  %v5906_v11 = vld [vmem:[#allocation44_spill] sm:$0xff] }
 0x80d   :  { %2704 = vmatprep.subr.bf16.mxu0 %v5896_v55  ;;  %2745 = vmatprep.subr.bf16.mxu1 %v5897_v2  ;;  %v5907_v55 = vld [vmem:[#allocation45_spill] sm:$0xff]  ;;  %v5908_v2 = vld [vmem:[#allocation46_spill] sm:$0xff] }
 0x810   :  { %2705 = vmatpush1.bf16.msra.mxu0 %v5898_v48  ;;  %2746 = vmatpush1.bf16.msra.mxu1 %v5899_v40  ;;  %v5909_v48 = vld [vmem:[#allocation47_spill] sm:$0xff]  ;;  %v5910_v40 = vld [vmem:[#allocation48_spill] sm:$0xff] }
 0x811   :  { %2706 = vmatprep.subr.bf16.mxu0 %v5900_v4  ;;  %2747 = vmatprep.subr.bf16.mxu1 %v5901_v10  ;;  %v5911_v4 = vld [vmem:[#allocation49_spill] sm:$0xff]  ;;  %v5912_v10 = vld [vmem:[#allocation50_spill] sm:$0xff] }
 0x814   :  { %2707 = vmatpush1.bf16.msra.mxu0 %v5902_v16  ;;  %2748 = vmatpush1.bf16.msra.mxu1 %v5903_v7  ;;  %v5913_v16 = vld [vmem:[#allocation51_spill] sm:$0xff]  ;;  %v5914_v7 = vld [vmem:[#allocation52_spill] sm:$0xff] }
 0x815   :  { %2708 = vmatprep.subr.bf16.mxu0 %v5904_v56  ;;  %2749 = vmatprep.subr.bf16.mxu1 %v5905_v32  ;;  %v5915_v56 = vld [vmem:[#allocation53_spill] sm:$0xff]  ;;  %v5916_v32 = vld [vmem:[#allocation54_spill] sm:$0xff] }
 0x818   :  { %2709 = vmatpush1.bf16.msra.mxu0 %v5906_v11  ;;  %2750 = vmatpush1.bf16.msra.mxu1 %v5907_v55  ;;  %v5917_v11 = vld [vmem:[#allocation55_spill] sm:$0xff]  ;;  %v5918_v55 = vld [vmem:[#allocation56_spill] sm:$0xff] }
 0x819   :  { %2710 = vmatprep.subr.bf16.mxu0 %v5908_v2  ;;  %2751 = vmatprep.subr.bf16.mxu1 %v5909_v48  ;;  %v5919_v2 = vld [vmem:[#allocation57_spill] sm:$0xff]  ;;  %v5920_v48 = vld [vmem:[#allocation58_spill] sm:$0xff] }
 0x81c   :  { %2711 = vmatpush1.bf16.msra.mxu0 %v5910_v40  ;;  %2752 = vmatpush1.bf16.msra.mxu1 %v5911_v4  ;;  %v5921_v40 = vld [vmem:[#allocation59_spill] sm:$0xff]  ;;  %v5922_v4 = vld [vmem:[#allocation60_spill] sm:$0xff] }
 0x81d   :  { %2712 = vmatprep.subr.bf16.mxu0 %v5912_v10  ;;  %2753 = vmatprep.subr.bf16.mxu1 %v5913_v16  ;;  %v5923_v10 = vld [vmem:[#allocation61_spill] sm:$0xff]  ;;  %v5924_v16 = vld [vmem:[#allocation62_spill] sm:$0xff] }
 0x820   :  { %2713 = vmatpush1.bf16.msra.mxu0 %v5914_v7  ;;  %2754 = vmatpush1.bf16.msra.mxu1 %v5915_v56  ;;  %v5925_v7 = vld [vmem:[#allocation63_spill] sm:$0xff]  ;;  %v5926_v56 = vld [vmem:[#allocation64_spill] sm:$0xff] }
 0x821   :  { %2714 = vmatprep.subr.bf16.mxu0 %v5916_v32  ;;  %2755 = vmatprep.subr.bf16.mxu1 %v5917_v11  ;;  %v5927_v32 = vld [vmem:[#allocation65_spill] sm:$0xff]  ;;  %v5928_v11 = vld [vmem:[#allocation66_spill] sm:$0xff] }
 0x824   :  { %2715 = vmatpush1.bf16.msra.mxu0 %v5918_v55  ;;  %2756 = vmatpush1.bf16.msra.mxu1 %v5919_v2  ;;  %v5929_v55 = vld [vmem:[#allocation67_spill] sm:$0xff]  ;;  %v5930_v2 = vld [vmem:[#allocation68_spill] sm:$0xff] }
 0x825   :  { %2716 = vmatprep.subr.bf16.mxu0 %v5920_v48  ;;  %2757 = vmatprep.subr.bf16.mxu1 %v5921_v40  ;;  %v5931_v48 = vld [vmem:[#allocation69_spill] sm:$0xff]  ;;  %v5932_v40 = vld [vmem:[#allocation70_spill] sm:$0xff] }
 0x828   :  { %2717 = vmatpush1.bf16.msra.mxu0 %v5922_v4  ;;  %2758 = vmatpush1.bf16.msra.mxu1 %v5923_v10  ;;  %v5933_v4 = vld [vmem:[#allocation71_spill] sm:$0xff]  ;;  %v5934_v10 = vld [vmem:[#allocation72_spill] sm:$0xff] }
 0x829   :  { %2718 = vmatprep.subr.bf16.mxu0 %v5924_v16  ;;  %2759 = vmatprep.subr.bf16.mxu1 %v5925_v7  ;;  %v5935_v16 = vld [vmem:[#allocation73_spill] sm:$0xff]  ;;  %v5936_v7 = vld [vmem:[#allocation74_spill] sm:$0xff] }
 0x82c   :  { %2719 = vmatpush1.bf16.msra.mxu0 %v5926_v56  ;;  %2760 = vmatpush1.bf16.msra.mxu1 %v5927_v32  ;;  %v5937_v56 = vld [vmem:[#allocation75_spill] sm:$0xff]  ;;  %v5938_v32 = vld [vmem:[#allocation76_spill] sm:$0xff] }
 0x82d   :  { %2720 = vmatprep.subr.bf16.mxu0 %v5928_v11  ;;  %2761 = vmatprep.subr.bf16.mxu1 %v5929_v55  ;;  %v5939_v11 = vld [vmem:[#allocation77_spill] sm:$0xff]  ;;  %v5940_v55 = vld [vmem:[#allocation78_spill] sm:$0xff] }
 0x830   :  { %2721 = vmatpush1.bf16.msra.mxu0 %v5930_v2  ;;  %2762 = vmatpush1.bf16.msra.mxu1 %v5931_v48  ;;  %v5941_v2 = vld [vmem:[#allocation79_spill] sm:$0xff] }
 0x831   :  { %2722 = vmatprep.subr.bf16.mxu0 %v5932_v40  ;;  %2763 = vmatprep.subr.bf16.mxu1 %v5933_v4 }
 0x834   :  { %2723 = vmatpush1.bf16.msra.mxu0 %v5934_v10  ;;  %2764 = vmatpush1.bf16.msra.mxu1 %v5935_v16 }
 0x835   :  { %2724 = vmatprep.subr.bf16.mxu0 %v5936_v7  ;;  %2765 = vmatprep.subr.bf16.mxu1 %v5937_v56  ;;  %v2433_v7 = vld [vmem:[#allocation5 + $0xc8] sm:$0xff] }
 0x836   :  { %v2438_v56 = vunpack.c.l.bf16 %v2433_v7 }
 0x838   :  { %2725 = vmatpush1.bf16.msra.mxu0 %v5938_v32  ;;  %2766 = vmatpush1.bf16.msra.mxu1 %v5939_v11  ;;  %v2439_v32 = vunpack.c.h.bf16 %v2433_v7 }
 0x839   :  { %2776 = vmatprep.subr.bf16.mxu0 %v5940_v55  ;;  %2817 = vmatprep.subr.bf16.mxu1 %v5941_v2 }
 0x88e   :  { %v2478_v48 = vpop.f32.mrb[48].mxu0  ;;  %v2519_v40 = vpop.f32.mrb[48].mxu1 }
 0x88f   :  { %v2480_v18 = vpop.f32.mrb[49].mxu0  ;;  %v2521_v4 = vpop.f32.mrb[49].mxu1  ;;  %v2479_v3 = vadd.f32 %v2478_v48, %v2436_v34  ;;  %v2520_v11 = vadd.f32 %v2519_v40, %v2438_v56  ;;  %v2443_v40 = vunpack.c.h.bf16 %v2435_v14 }
 0x890   :  { %v2482_v0 = vpop.f32.mrb[50].mxu0  ;;  %v2523_v10 = vpop.f32.mrb[50].mxu1  ;;  %v2481_v35 = vadd.f32 %v2480_v18, %v2437_v27  ;;  %v2522_v55 = vadd.f32 %v2521_v4, %v2439_v32  ;;  %v2442_v27 = vunpack.c.l.bf16 %v2435_v14 }
 0x891   :  { %v2483_v33 = vpop.f32.mrb[51].mxu0  ;;  %v2524_v16 = vpop.f32.mrb[51].mxu1  ;;  %v3115_v1 = vmul.f32 -1.442695, %v2479_v3  ;;  %v3117_v2 = vmul.f32 -1.442695, %v2520_v11 }
 0x892   :  { %v3116_v62 = vmul.f32 -1.442695, %v2481_v35  ;;  %v3118_v50 = vmul.f32 -1.442695, %v2522_v55  ;;  %v2434_v16 = vld [vmem:[#allocation5 + $0xd0] sm:$0xff] }
 0x893   :  { %3340 = vpow2.f32 %v3115_v1  ;;  %v2440_v48 = vunpack.c.l.bf16 %v2434_v16  ;;  %v2441_v3 = vunpack.c.h.bf16 %v2434_v16 }
 0x894   :  { %3342 = vpow2.f32 %v3117_v2 }
 0x895   :  { %3344 = vpow2.f32 %v3116_v62 }
 0x896   :  { %3346 = vpow2.f32 %v3118_v50 }
 0x89d   :  { %v3341_v33 = vpop.eup %3340 }
 0x89e   :  { %v3343_v0 = vpop.eup %3342  ;;  %v2614_v37 = vadd.f32 1.0, %v3341_v33 }
 0x89f   :  { %v3345_v10 = vpop.eup %3344  ;;  %v2626_v7 = vadd.f32 1.0, %v3343_v0 }
 0x8a0   :  { %v3347_v9 = vpop.eup %3346  ;;  %v2615_v34 = vadd.f32 1.0, %v3345_v10  ;;  %3348 = vrcp.f32 %v2614_v37 }
 0x8a1   :  { %v2627_v18 = vadd.f32 1.0, %v3347_v9  ;;  %3350 = vrcp.f32 %v2626_v7 }
 0x8a2   :  { %3352 = vrcp.f32 %v2615_v34 }
 0x8a3   :  { %3354 = vrcp.f32 %v2627_v18 }
 0x8aa   :  { %v3349_v10 = vpop.eup %3348 }
 0x8ab   :  { %v3351_v16 = vpop.eup %3350 }
 0x8ac   :  { %v3353_v37 = vpop.eup %3352 }
 0x8ad   :  { %v3355_v7 = vpop.eup %3354 }
 0x8ce   :  { %v2560_v1 = vpop.f32.mrb[52].mxu0  ;;  %v2601_v35 = vpop.f32.mrb[52].mxu1 }
 0x8cf   :  { %v2561_v50 = vadd.f32 %v2560_v1, %v2440_v48  ;;  %v2602_v62 = vadd.f32 %v2601_v35, %v2442_v27  ;;  %v2562_v4 = vpop.f32.mrb[53].mxu0  ;;  %v2603_v56 = vpop.f32.mrb[53].mxu1  ;;  %v2648_v27 = vmul.f32 %v3351_v16, %v4750_v26 }
 0x8d0   :  { %v2563_v32 = vadd.f32 %v2562_v4, %v2441_v3  ;;  %v2604_v11 = vadd.f32 %v2603_v56, %v2443_v40  ;;  %v2564_v55 = vpop.f32.mrb[54].mxu0  ;;  %v2605_v2 = vpop.f32.mrb[54].mxu1  ;;  %v2649_v40 = vmul.f32 %v3355_v7, %v4752_v51 }
 0x8d1   :  { %3356 = vtanh.f32 %v2561_v50  ;;  %v3119_v33 = vmul.f32 -1.442695, %v2602_v62  ;;  %v2565_v0 = vpop.f32.mrb[55].mxu0  ;;  %v2606_v9 = vpop.f32.mrb[55].mxu1 }
 0x8d2   :  { %3358 = vtanh.f32 %v2563_v32  ;;  %v3120_v14 = vmul.f32 -1.442695, %v2604_v11  ;;  %v87_v4 = vpop.permute.xlu1 %86  ;;  %v143_v11 = vpop.permute.xlu0 %142 }
 0x8d3   :  { %3360 = vpow2.f32 %v3119_v33 }
 0x8d4   :  { %3362 = vpow2.f32 %v3120_v14 }
 0x8db   :  { %v3357_v34 = vpop.eup %3356 }
 0x8dc   :  { %v3359_v48 = vpop.eup %3358  ;;  %v2650_v18 = vmul.f32 %v3357_v34, %v3349_v10 }
 0x8dd   :  { %v3361_v3 = vpop.eup %3360  ;;  %v2651_v1 = vmul.f32 %v3359_v48, %v3353_v37 }
 0x8de   :  { %v3363_v35 = vpop.eup %3362  ;;  %v2652_v50 = vadd.f32 %v2650_v18, %v2648_v27  ;;  %v2640_v62 = vadd.f32 1.0, %v3361_v3 }
 0x8df   :  { %v2653_v56 = vadd.f32 %v2651_v1, %v2649_v40  ;;  %v2641_v32 = vadd.f32 1.0, %v3363_v35 }
 0x8e0   :  { %v4892_v55 = vmul.f32 %v2652_v50, %v87_v4  ;;  %3364 = vrcp.f32 %v2640_v62  ;;  %v2684_v4 = vld [vmem:[#allocation5 + $0xf0] sm:$0xff] }
 0x8e1   :  { %v4894_v2 = vmul.f32 %v2653_v56, %v143_v11  ;;  %3366 = vrcp.f32 %v2641_v32  ;;  %v2685_v56 = vld [vmem:[#allocation5 + $0xf8] sm:$0xff] }
 0x8e2   :  { %3368 = vtanh.f32 %v4892_v55 }
 0x8e3   :  { %3370 = vtanh.f32 %v4894_v2 }
 0x8ea   :  { %v3365_v26 = vpop.eup %3364 }
 0x8eb   :  { %v3367_v51 = vpop.eup %3366 }
 0x8ec   :  { %v3369_v33 = vpop.eup %3368 }
 0x8ed   :  { %v3371_v0 = vpop.eup %3370  ;;  %v2661_v9 = vmul.f32 %v3369_v33, %v3365_v26  ;;  %v2690_v33 = vunpack.c.l.bf16 %v2684_v4 }
 0x8ee   :  { %v2662_v14 = vmul.f32 %v3371_v0, %v3367_v51  ;;  %v2692_v0 = vunpack.c.l.bf16 %v2685_v56 }
 0x8ef   :  { %v4898_v37 = vpack.c.bf16 %v2661_v9, %v2661_v9 }
 0x8f0   :  { %v2680_v10 = vpack.c.bf16 %v2662_v14, %v2662_v14  ;;  %v3135_v16 = vpack.c.bf16 %v2662_v14, %v2661_v9  ;;  %v2691_v14 = vunpack.c.h.bf16 %v2684_v4 }
 0x8f2   :  { %2726 = vmatprep.mubr.bf16.mxu0 %v2680_v10  ;;  %2767 = vmatprep.mubr.bf16.mxu1 %v2680_v10  ;;  %2676 = vst [vmem:[#allocation10 + $0x30] sm:$0xff] %v3135_v16 }
 0x8f3   :  { %2727 = vmatmul.mubr.bf16.vlgmr.msra.gmra.mrb[56].mxu0 %v4898_v37  ;;  %2768 = vmatmul.mubr.bf16.vlgmr.msra.gmra.mrb[56].mxu1 %v4898_v37 }
 0x8f4   :  { %2777 = vmatpush1.bf16.msra.mxu0 %v5406_v63  ;;  %2818 = vmatpush1.bf16.msra.mxu1 %v5407_v41  ;;  %v5942_v63 = vld [vmem:[#allocation118_spill] sm:$0xff]  ;;  %v5943_v41 = vld [vmem:[#allocation119_spill] sm:$0xff] }
 0x8f5   :  { %2808 = vmatprep.mubr.bf16.mxu0 %v2680_v10  ;;  %2849 = vmatprep.mubr.bf16.mxu1 %v2680_v10  ;;  %v2693_v10 = vunpack.c.h.bf16 %v2685_v56 }
 0x8f6   :  { %2778 = vmatprep.subr.bf16.mxu0 %v5408_v13  ;;  %2819 = vmatprep.subr.bf16.mxu1 %v5409_v8  ;;  %v5944_v13 = vld [vmem:[#allocation120_spill] sm:$0xff]  ;;  %v5945_v8 = vld [vmem:[#allocation121_spill] sm:$0xff] }
 0x8f8   :  { %2779 = vmatpush1.bf16.msra.mxu0 %v5410_v24  ;;  %2820 = vmatpush1.bf16.msra.mxu1 %v5411_v12  ;;  %v5946_v24 = vld [vmem:[#allocation122_spill] sm:$0xff]  ;;  %v5947_v12 = vld [vmem:[#allocation123_spill] sm:$0xff] }
 0x8f9   :  { %2780 = vmatprep.subr.bf16.mxu0 %v5412_v23  ;;  %2821 = vmatprep.subr.bf16.mxu1 %v5413_v42  ;;  %v5948_v23 = vld [vmem:[#allocation124_spill] sm:$0xff]  ;;  %v5949_v42 = vld [vmem:[#allocation125_spill] sm:$0xff] }
 0x8fc   :  { %2781 = vmatpush1.bf16.msra.mxu0 %v5492_v61  ;;  %2822 = vmatpush1.bf16.msra.mxu1 %v5493_v36  ;;  %v5950_v61 = vld [vmem:[#allocation126_spill] sm:$0xff]  ;;  %v5951_v36 = vld [vmem:[#allocation127_spill] sm:$0xff] }
 0x8fd   :  { %2782 = vmatprep.subr.bf16.mxu0 %v5494_v52  ;;  %2823 = vmatprep.subr.bf16.mxu1 %v5495_v31  ;;  %v5953_v52 = vld [vmem:[#allocation129_spill] sm:$0xff]  ;;  %v5954_v31 = vld [vmem:[#allocation130_spill] sm:$0xff] }
 0x900   :  { %2783 = vmatpush1.bf16.msra.mxu0 %v5496_v44  ;;  %2824 = vmatpush1.bf16.msra.mxu1 %v5497_v30  ;;  %v5955_v44 = vld [vmem:[#allocation131_spill] sm:$0xff]  ;;  %v5956_v30 = vld [vmem:[#allocation132_spill] sm:$0xff] }
 0x901   :  { %2784 = vmatprep.subr.bf16.mxu0 %v5498_v45  ;;  %2825 = vmatprep.subr.bf16.mxu1 %v5499_v28  ;;  %v5957_v45 = vld [vmem:[#allocation133_spill] sm:$0xff]  ;;  %v5958_v28 = vld [vmem:[#allocation134_spill] sm:$0xff] }
 0x904   :  { %2785 = vmatpush1.bf16.msra.mxu0 %v5500_v29  ;;  %2826 = vmatpush1.bf16.msra.mxu1 %v5501_v21  ;;  %v5959_v29 = vld [vmem:[#allocation135_spill] sm:$0xff]  ;;  %v5960_v21 = vld [vmem:[#allocation136_spill] sm:$0xff] }
 0x905   :  { %2786 = vmatprep.subr.bf16.mxu0 %v5502_v22  ;;  %2827 = vmatprep.subr.bf16.mxu1 %v5503_v46  ;;  %v5961_v22 = vld [vmem:[#allocation137_spill] sm:$0xff]  ;;  %v5962_v46 = vld [vmem:[#allocation138_spill] sm:$0xff] }
 0x908   :  { %2787 = vmatpush1.bf16.msra.mxu0 %v5582_v15  ;;  %2828 = vmatpush1.bf16.msra.mxu1 %v5583_v59  ;;  %v2682_v59 = vld [vmem:[#allocation5 + $0xe0] sm:$0xff] }
 0x909   :  { %2788 = vmatprep.subr.bf16.mxu0 %v5584_v5  ;;  %2829 = vmatprep.subr.bf16.mxu1 %v5585_v43  ;;  %v2683_v5 = vld [vmem:[#allocation5 + $0xe8] sm:$0xff]  ;;  %v2686_v43 = vunpack.c.l.bf16 %v2682_v59 }
 0x90c   :  { %2789 = vmatpush1.bf16.msra.mxu0 %v5586_v6  ;;  %2830 = vmatpush1.bf16.msra.mxu1 %v5587_v49  ;;  %v2688_v6 = vunpack.c.l.bf16 %v2683_v5  ;;  %v2687_v49 = vunpack.c.h.bf16 %v2682_v59 }
 0x90d   :  { %2790 = vmatprep.subr.bf16.mxu0 %v5510_v39  ;;  %2831 = vmatprep.subr.bf16.mxu1 %v5511_v19 }
 0x910   :  { %2791 = vmatpush1.bf16.msra.mxu0 %v5512_v20  ;;  %2832 = vmatpush1.bf16.msra.mxu1 %v5588_v17  ;;  %v2689_v17 = vunpack.c.h.bf16 %v2683_v5 }
 0x911   :  { %2792 = vmatprep.subr.bf16.mxu0 %v5514_v60  ;;  %2833 = vmatprep.subr.bf16.mxu1 %v5515_v47  ;;  %v5963_v47 = vld [vmem:[#allocation139_spill] sm:$0xff] }
 0x914   :  { %2793 = vmatpush1.bf16.msra.mxu0 %v5516_v53  ;;  %2834 = vmatpush1.bf16.msra.mxu1 %v5517_v54  ;;  %v5964_v53 = vld [vmem:[#allocation140_spill] sm:$0xff]  ;;  %v5965_v54 = vld [vmem:[#allocation141_spill] sm:$0xff] }
 0x915   :  { %2794 = vmatprep.subr.bf16.mxu0 %v5518_v58  ;;  %2835 = vmatprep.subr.bf16.mxu1 %v5519_v38 }
 0x918   :  { %2795 = vmatpush1.bf16.msra.mxu0 %v5520_v57  ;;  %2836 = vmatpush1.bf16.msra.mxu1 %v5443_v25  ;;  %v5952_v25 = vld [vmem:[#allocation128_spill] sm:$0xff] }
 0x919   :  { %2796 = vmatprep.subr.bf16.mxu0 %v5942_v63  ;;  %2837 = vmatprep.subr.bf16.mxu1 %v5943_v41 }
 0x91c   :  { %2797 = vmatpush1.bf16.msra.mxu0 %v5944_v13  ;;  %2838 = vmatpush1.bf16.msra.mxu1 %v5945_v8 }
 0x91d   :  { %2798 = vmatprep.subr.bf16.mxu0 %v5946_v24  ;;  %2839 = vmatprep.subr.bf16.mxu1 %v5947_v12 }
 0x920   :  { %2799 = vmatpush1.bf16.msra.mxu0 %v5948_v23  ;;  %2840 = vmatpush1.bf16.msra.mxu1 %v5949_v42 }
 0x921   :  { %2800 = vmatprep.subr.bf16.mxu0 %v5950_v61  ;;  %2841 = vmatprep.subr.bf16.mxu1 %v5951_v36 }
 0x924   :  { %2801 = vmatpush1.bf16.msra.mxu0 %v5952_v25  ;;  %2842 = vmatpush1.bf16.msra.mxu1 %v5953_v52 }
 0x925   :  { %2802 = vmatprep.subr.bf16.mxu0 %v5954_v31  ;;  %2843 = vmatprep.subr.bf16.mxu1 %v5955_v44 }
 0x928   :  { %2803 = vmatpush1.bf16.msra.mxu0 %v5956_v30  ;;  %2844 = vmatpush1.bf16.msra.mxu1 %v5957_v45 }
 0x929   :  { %2804 = vmatprep.subr.bf16.mxu0 %v5958_v28  ;;  %2845 = vmatprep.subr.bf16.mxu1 %v5959_v29 }
 0x92c   :  { %2805 = vmatpush1.bf16.msra.mxu0 %v5960_v21  ;;  %2846 = vmatpush1.bf16.msra.mxu1 %v5961_v22 }
 0x92d   :  { %2806 = vmatprep.subr.bf16.mxu0 %v5962_v46  ;;  %2847 = vmatprep.subr.bf16.mxu1 %v5963_v47 }
 0x930   :  { %2807 = vmatpush1.bf16.msra.mxu0 %v5964_v53  ;;  %2848 = vmatpush1.bf16.msra.mxu1 %v5965_v54 }
 0x933   :  { %2809 = vmatmul.mubr.bf16.vlgmr.msra.gmra.mrb[60].mxu0 %v4898_v37  ;;  %2850 = vmatmul.mubr.bf16.vlgmr.msra.gmra.mrb[60].mxu1 %v4898_v37 }
 0x9c6   :  { %v2728_v58 = vpop.f32.mrb[56].mxu0  ;;  %v2769_v38 = vpop.f32.mrb[56].mxu1 }
 0x9c7   :  { %v2730_v57 = vpop.f32.mrb[57].mxu0  ;;  %v2771_v39 = vpop.f32.mrb[57].mxu1  ;;  %v2729_v7 = vadd.f32 %v2728_v58, %v2686_v43  ;;  %v2770_v34 = vadd.f32 %v2769_v38, %v2688_v6 }
 0x9c8   :  { %v2732_v19 = vpop.f32.mrb[58].mxu0  ;;  %v2773_v20 = vpop.f32.mrb[58].mxu1  ;;  %v2731_v48 = vadd.f32 %v2730_v57, %v2687_v49  ;;  %v2772_v27 = vadd.f32 %v2771_v39, %v2689_v17 }
 0x9c9   :  { %v2733_v60 = vpop.f32.mrb[59].mxu0  ;;  %v2774_v15 = vpop.f32.mrb[59].mxu1  ;;  %v3122_v18 = vmul.f32 -1.442695, %v2729_v7  ;;  %v3124_v3 = vmul.f32 -1.442695, %v2770_v34 }
 0x9ca   :  { %v3123_v40 = vmul.f32 -1.442695, %v2731_v48  ;;  %v3125_v1 = vmul.f32 -1.442695, %v2772_v27  ;;  %v92_v57 = vpop.permute.xlu0 %91  ;;  %v148_v20 = vpop.permute.xlu1 %147 }
 0x9cb   :  { %3372 = vpow2.f32 %v3122_v18 }
 0x9cc   :  { %3374 = vpow2.f32 %v3124_v3 }
 0x9cd   :  { %3376 = vpow2.f32 %v3123_v40 }
 0x9ce   :  { %3378 = vpow2.f32 %v3125_v1 }
 0x9d5   :  { %v3373_v35 = vpop.eup %3372 }
 0x9d6   :  { %v3375_v50 = vpop.eup %3374  ;;  %v2864_v11 = vadd.f32 1.0, %v3373_v35 }
 0x9d7   :  { %v3377_v62 = vpop.eup %3376  ;;  %v2876_v26 = vadd.f32 1.0, %v3375_v50 }
 0x9d8   :  { %v3379_v32 = vpop.eup %3378  ;;  %v2865_v51 = vadd.f32 1.0, %v3377_v62  ;;  %3380 = vrcp.f32 %v2864_v11 }
 0x9d9   :  { %v2877_v9 = vadd.f32 1.0, %v3379_v32  ;;  %3382 = vrcp.f32 %v2876_v26 }
 0x9da   :  { %3384 = vrcp.f32 %v2865_v51 }
 0x9db   :  { %3386 = vrcp.f32 %v2877_v9 }
 0x9e2   :  { %v3381_v31 = vpop.eup %3380 }
 0x9e3   :  { %v3383_v44 = vpop.eup %3382 }
 0x9e4   :  { %v3385_v30 = vpop.eup %3384  ;;  %v2898_v21 = vmul.f32 %v3383_v44, %v4892_v55 }
 0x9e5   :  { %v3387_v45 = vpop.eup %3386 }
 0x9e6   :  { %v2899_v47 = vmul.f32 %v3387_v45, %v4894_v2 }
 0xa06   :  { %v2810_v16 = vpop.f32.mrb[60].mxu0  ;;  %v2851_v37 = vpop.f32.mrb[60].mxu1 }
 0xa07   :  { %v2811_v63 = vadd.f32 %v2810_v16, %v2690_v33  ;;  %v2852_v41 = vadd.f32 %v2851_v37, %v2692_v0  ;;  %v2812_v13 = vpop.f32.mrb[61].mxu0  ;;  %v2853_v8 = vpop.f32.mrb[61].mxu1 }
 0xa08   :  { %v2813_v24 = vadd.f32 %v2812_v13, %v2691_v14  ;;  %v2854_v12 = vadd.f32 %v2853_v8, %v2693_v10  ;;  %v2814_v23 = vpop.f32.mrb[62].mxu0  ;;  %v2855_v42 = vpop.f32.mrb[62].mxu1 }
 0xa09   :  { %3388 = vtanh.f32 %v2811_v63  ;;  %v3126_v61 = vmul.f32 -1.442695, %v2852_v41  ;;  %v2815_v36 = vpop.f32.mrb[63].mxu0  ;;  %v2856_v25 = vpop.f32.mrb[63].mxu1 }
 0xa0a   :  { %3390 = vtanh.f32 %v2813_v24  ;;  %v3127_v52 = vmul.f32 -1.442695, %v2854_v12 }
 0xa0b   :  { %3392 = vpow2.f32 %v3126_v61 }
 0xa0c   :  { %3394 = vpow2.f32 %v3127_v52 }
 0xa13   :  { %v3389_v28 = vpop.eup %3388 }
 0xa14   :  { %v3391_v29 = vpop.eup %3390  ;;  %v2900_v22 = vmul.f32 %v3389_v28, %v3381_v31 }
 0xa15   :  { %v3393_v46 = vpop.eup %3392  ;;  %v2901_v53 = vmul.f32 %v3391_v29, %v3385_v30 }
 0xa16   :  { %v3395_v54 = vpop.eup %3394  ;;  %v2902_v58 = vadd.f32 %v2900_v22, %v2898_v21  ;;  %v2890_v38 = vadd.f32 1.0, %v3393_v46 }
 0xa17   :  { %v2903_v39 = vadd.f32 %v2901_v53, %v2899_v47  ;;  %v2891_v19 = vadd.f32 1.0, %v3395_v54 }
 0xa18   :  { %v2907_v60 = vmul.f32 %v2902_v58, %v92_v57  ;;  %3396 = vrcp.f32 %v2890_v38 }
 0xa19   :  { %v2908_v15 = vmul.f32 %v2903_v39, %v148_v20  ;;  %3398 = vrcp.f32 %v2891_v19 }
 0xa1a   :  { %3400 = vtanh.f32 %v2907_v60 }
 0xa1b   :  { %3402 = vtanh.f32 %v2908_v15 }
 0xa22   :  { %v3397_v59 = vpop.eup %3396 }
 0xa23   :  { %v3399_v55 = vpop.eup %3398 }
 0xa24   :  { %v3401_v5 = vpop.eup %3400 }
 0xa25   :  { %v3403_v43 = vpop.eup %3402  ;;  %v2911_v6 = vmul.f32 %v3401_v5, %v3397_v59 }
 0xa26   :  { %v2912_v2 = vmul.f32 %v3403_v43, %v3399_v55 }
 0xa28   :  { %v3136_v49 = vpack.c.bf16 %v2912_v2, %v2911_v6 }
 0xa2a   :  { %2926 = vst [vmem:[#allocation10 + $0x38] sm:$0xff] %v3136_v49 }
 0xa2b   :  { %3459 = shalt.err (!%p3456_p6)
}
 0xa2c   :  { %s3460_s20 = scalar_lea.hbm %s4984_s4, 1024 }
 0xa2d   :  { %p3461_p7 = scmp.ne.s32.totalorder %s4984_s4, %s3460_s20  ;;  %p3464_p8 = scmp.lt.u32.totalorder %s3460_s20, %s4984_s4 }
 0xa2f   :  { %p3466_p9 = pnand %p3464_p8, %p3461_p7 }
 0xa31   :  { %3469 = shalt.err (!%p3466_p9)
}
 0xa32   :  { %s3483_s25 = smov 128   ;;  %s3484_s26 = smov 8  }
 0xa33   :  { %2938 = dma.vmem_to_hbm [thread:$0]  %s2933_s2, 1024, %s4984_s4, [#allocation7], %s3483_s25, %s3483_s25, %s3484_s26  }
 0xa34   :  { %3474 = dma.done.wait [#allocation7], 1024  }
 0xa35   :  { %3475 = vsyncadd [#allocation7], 4294966272 }
 0xa36   :  { %2942 = vsyncpa [#allocation6], 1 }
 0xa37   :  { %2943 = vsyncpa [#allocation9], 1 }
 0xa38   :  { %2944 = vsyncpa [#allocation7], 1 }

</bundles_post_ra>
